<compile_context>
chip_gen: v6e
topology: v6e:2x2x1
jax: 0.10.0
libtpu: 0.0.40
codegen_flags: <defaults>
</compile_context>

<pallas_src>
import jax
import jax.numpy as jnp
from jax.experimental import pallas as pl
from jax.experimental.pallas import tpu as pltpu


def _pct_kernel(feat_ref, xyz_ref, ctr_ref,
                wq_f_ref, wq_p_ref, wk_f_ref, wk_p_ref, wv_f_ref, wv_p_ref,
                wf_ref, bn_shift_ref, out_ref):
    """One batch slice; nsample (M) is the batched-matmul axis.

    feat_ref : (M, C, N)   group_features for this batch
    xyz_ref  : (M, 3, N)   group_xyz
    ctr_ref  : (M, 3, N)   group_ctr_xyz
    w*_f     : (out_ch, C) feature-column block of the 1x1 conv weight (bf16)
    w*_p     : (out_ch, 3) position-column block of the 1x1 conv weight (bf16)
    wf_ref   : (C, C)      final conv weight with BN scale folded in (bf16)
    bn_shift : (1, C, 1)   BN shift (f32)
    out_ref  : (M, C, N)
    """
    M, C, N = feat_ref.shape

    feat = feat_ref[...].astype(jnp.float32)                    # (M, C, N)
    rel = (ctr_ref[...] - xyz_ref[...]).astype(jnp.float32)     # (M, 3, N)

    feat_b = feat.astype(jnp.bfloat16)
    rel_b = rel.astype(jnp.bfloat16)

    # Broadcast the (already bf16) weights across the nsample batch axis once
    # (hoisted straight-line code; JAX does not CSE broadcasts).
    def bcast(ref):
        w = ref[...]
        return jnp.broadcast_to(w, (M,) + w.shape)

    wq_f, wq_p = bcast(wq_f_ref), bcast(wq_p_ref)
    wk_f, wk_p = bcast(wk_f_ref), bcast(wk_p_ref)
    wv_f, wv_p = bcast(wv_f_ref), bcast(wv_p_ref)
    wf = bcast(wf_ref)

    def conv1x1(w_feat, w_pos):
        # (M,O,C)@(M,C,N) + (M,O,3)@(M,3,N) -> (M,O,N), bf16 operands, f32 accumulate.
        return (jnp.einsum('moc,mcn->mon', w_feat, feat_b,
                           preferred_element_type=jnp.float32)
                + jnp.einsum('mop,mpn->mon', w_pos, rel_b,
                             preferred_element_type=jnp.float32))

    q = conv1x1(wq_f, wq_p)          # (M, inter, N) f32
    k = conv1x1(wk_f, wk_p)          # (M, inter, N) f32
    v = conv1x1(wv_f, wv_p)          # (M, C, N)     f32

    # att[m, n, j] = sum_o k[m, o, n] * q[m, o, j].  Transpose the small k once so the
    # contraction is the canonical batched-MXU pattern (no relayout inside the matmul).
    k_t = jnp.swapaxes(k, 1, 2).astype(jnp.bfloat16)            # (M, N, inter)
    att = jnp.einsum('mno,moj->mnj', k_t, q.astype(jnp.bfloat16),
                     preferred_element_type=jnp.float32)        # (M, N, N)

    # Softmax over the key axis (n), fused with the redundant "/(sum + 1e-9)" renorm:
    #   exp / s / (1 + 1e-9)  ==  exp * reciprocal(s * (1 + 1e-9)).  Kept in f32.
    att = att - jnp.max(att, axis=1, keepdims=True)
    att = jnp.exp(att)
    denom = jnp.sum(att, axis=1, keepdims=True) * (1.0 + 1e-9)
    att = att * pl.reciprocal(denom, approx=True)

    # att_feat[m, c, j] = sum_n v[m, c, n] * att[m, n, j]
    att_feat = jnp.einsum('mcn,mnj->mcj', v.astype(jnp.bfloat16),
                          att.astype(jnp.bfloat16),
                          preferred_element_type=jnp.float32)   # (M, C, N)

    offset = att_feat - feat
    # final_conv with the eval-mode BN scale pre-folded into its rows.
    final = jnp.einsum('moc,mcj->moj', wf, offset.astype(jnp.bfloat16),
                       preferred_element_type=jnp.float32)      # (M, C, N)

    lbr = jnp.maximum(final + bn_shift_ref[...], 0.0)           # BN shift + ReLU
    out_ref[...] = (lbr + feat).astype(out_ref.dtype)           # residual add


def pct_layer_forward(group_xyz, group_features, group_ctr_xyz, params):
    """Mirrors PCT_Layer.forward (use_pose_encoding=False).

    group_xyz      : (B, 3, N, nsample)
    group_features : (B, C, N, nsample)
    group_ctr_xyz  : (B, 3, N, nsample)
    returns        : (B, C, N, nsample)
    """
    wq, wk, wv, wf, bn_scale, bn_shift = params
    B, C, N, M = group_features.shape
    inter = wq.shape[0]
    mm_dtype = jnp.bfloat16

    # Split 1x1-conv weights column-wise (feature block | position block): the
    # concatenated (B, C+3, N, M) tensor is never built, so no extra HBM pass.
    # (When C % 8 == 0 this also keeps the feature contraction sublane-aligned.)
    wq_f, wq_p = wq[:, :C].astype(mm_dtype), wq[:, C:].astype(mm_dtype)
    wk_f, wk_p = wk[:, :C].astype(mm_dtype), wk[:, C:].astype(mm_dtype)
    wv_f, wv_p = wv[:, :C].astype(mm_dtype), wv[:, C:].astype(mm_dtype)
    # Fold eval-mode BN scale into final_conv rows; only the shift goes to the kernel.
    wf_s = (wf * bn_scale[:, None]).astype(mm_dtype)
    shift = bn_shift.reshape(1, C, 1).astype(jnp.float32)

    # Layout: (B, nsample, channels, N) — nsample is the batched-matmul axis, N is the
    # lane axis (lane-dense for N >= 128).  xyz/ctr carry only 3 channels each.
    feat_t = jnp.transpose(group_features, (0, 3, 1, 2))   # (B, M, C, N)
    xyz_t = jnp.transpose(group_xyz, (0, 3, 1, 2))         # (B, M, 3, N)
    ctr_t = jnp.transpose(group_ctr_xyz, (0, 3, 1, 2))     # (B, M, 3, N)

    out_t = pl.pallas_call(
        _pct_kernel,
        out_shape=jax.ShapeDtypeStruct((B, M, C, N), group_features.dtype),
        grid=(B,),
        in_specs=[
            pl.BlockSpec((None, M, C, N), lambda b: (b, 0, 0, 0)),
            pl.BlockSpec((None, M, 3, N), lambda b: (b, 0, 0, 0)),
            pl.BlockSpec((None, M, 3, N), lambda b: (b, 0, 0, 0)),
            pl.BlockSpec((inter, C), lambda b: (0, 0)),
            pl.BlockSpec((inter, 3), lambda b: (0, 0)),
            pl.BlockSpec((inter, C), lambda b: (0, 0)),
            pl.BlockSpec((inter, 3), lambda b: (0, 0)),
            pl.BlockSpec((C, C), lambda b: (0, 0)),
            pl.BlockSpec((C, 3), lambda b: (0, 0)),
            pl.BlockSpec((C, C), lambda b: (0, 0)),
            pl.BlockSpec((1, C, 1), lambda b: (0, 0, 0)),
        ],
        out_specs=pl.BlockSpec((None, M, C, N), lambda b: (b, 0, 0, 0)),
        compiler_params=pltpu.CompilerParams(
            dimension_semantics=("parallel",)),
    )(feat_t, xyz_t, ctr_t, wq_f, wq_p, wk_f, wk_p, wv_f, wv_p, wf_s, shift)

    # Back to the PyTorch layout (B, C, N, nsample).
    return jnp.transpose(out_t, (0, 2, 3, 1))


def pct_layer_ref(group_xyz, group_features, group_ctr_xyz, params):
    """Pure-JAX f32 reference (mirrors the PyTorch einsums) for correctness check."""
    wq, wk, wv, wf, bn_scale, bn_shift = params
    rel = group_ctr_xyz - group_xyz
    ip = jnp.concatenate([group_features, rel], axis=1)
    q = jnp.einsum('oc,bcnm->bonm', wq, ip)
    k = jnp.einsum('oc,bcnm->bonm', wk, ip)
    v = jnp.einsum('oc,bcnm->bonm', wv, ip)
    att = jnp.einsum('bcnm,bcjm->bnjm', k, q)
    att = jax.nn.softmax(att, axis=1)
    att = att / (jnp.sum(att, axis=1, keepdims=True) + 1e-9)
    att_feat = jnp.einsum('bnkm,bcnm->bckm', att, v)
    offset = att_feat - group_features
    final = jnp.einsum('oc,bcnm->bonm', wf, offset)
    lbr = jnp.maximum(final * bn_scale[None, :, None, None]
                      + bn_shift[None, :, None, None], 0.0)
    return lbr + group_features


def make_params(key, in_ch, inter_ch):
    """Deterministic synthetic parameter init (shapes from PCT_Layer.__init__)."""
    cin = in_ch + 3
    k1, k2, k3, k4, k5, k6 = jax.random.split(key, 6)
    wq = 0.2 * jax.random.normal(k1, (inter_ch, cin), jnp.float32)
    wk = 0.2 * jax.random.normal(k2, (inter_ch, cin), jnp.float32)
    wv = 0.2 * jax.random.normal(k3, (in_ch, cin), jnp.float32)
    wf = 0.2 * jax.random.normal(k4, (in_ch, in_ch), jnp.float32)
    gamma = jax.random.uniform(k5, (in_ch,), jnp.float32, 0.5, 1.5)
    beta = 0.1 * jax.random.normal(k6, (in_ch,), jnp.float32)
    running_mean = jnp.zeros((in_ch,), jnp.float32)
    running_var = jnp.ones((in_ch,), jnp.float32)
    eps = 1e-5
    bn_scale = gamma / jnp.sqrt(running_var + eps)
    bn_shift = beta - running_mean * bn_scale
    return (wq, wk, wv, wf, bn_scale, bn_shift)


if __name__ == "__main__":
    # N = 128 keeps the lane axis dense (multiple of 128) while staying small.
    B, C, N, NSAMPLE = 2, 4, 128, 8
    INTER = 8

    key = jax.random.PRNGKey(0)
    kx, kf, kc, kp = jax.random.split(key, 4)
    group_xyz = jax.random.normal(kx, (B, 3, N, NSAMPLE), jnp.float32)
    group_features = jax.random.normal(kf, (B, C, N, NSAMPLE), jnp.float32)
    group_ctr_xyz = jax.random.normal(kc, (B, 3, N, NSAMPLE), jnp.float32)
    params = make_params(kp, C, INTER)

    fwd = jax.jit(pct_layer_forward)
    out = jax.block_until_ready(fwd(group_xyz, group_features, group_ctr_xyz, params))

    ref = pct_layer_ref(group_xyz, group_features, group_ctr_xyz, params)
    assert out.shape == (B, C, N, NSAMPLE)
    # bf16 MXU operands + approx reciprocal (per the perf review) loosen agreement with
    # the pure-f32 reference; f32 accumulation keeps the error well inside 2e-2.
    assert bool(jnp.allclose(out, ref, atol=2e-2, rtol=2e-2)), "mismatch vs reference"

    print("KERNEL_OK")
</pallas_src>

<mosaic_0001>
module attributes {stable_mosaic.version = 11 : i64} {
  func.func @_pct_kernel(%arg0: i32, %arg1: memref<1x8x4x128xf32, #tpu.memory_space<vmem>>, %arg2: memref<1x8x3x128xf32, #tpu.memory_space<vmem>>, %arg3: memref<1x8x3x128xf32, #tpu.memory_space<vmem>>, %arg4: memref<8x4xbf16, #tpu.memory_space<vmem>>, %arg5: memref<8x3xbf16, #tpu.memory_space<vmem>>, %arg6: memref<8x4xbf16, #tpu.memory_space<vmem>>, %arg7: memref<8x3xbf16, #tpu.memory_space<vmem>>, %arg8: memref<4x4xbf16, #tpu.memory_space<vmem>>, %arg9: memref<4x3xbf16, #tpu.memory_space<vmem>>, %arg10: memref<4x4xbf16, #tpu.memory_space<vmem>>, %arg11: memref<1x4x1xf32, #tpu.memory_space<vmem>>, %arg12: memref<1x8x4x128xf32, #tpu.memory_space<vmem>>) attributes {dimension_semantics = [#tpu.dimension_semantics<parallel>], iteration_bounds = array<i64: 2>, scalar_prefetch = 0 : i64, scratch_operands = 0 : i64, tpu.core_type = #tpu.core_type<tc>, window_params = [{transform_indices = @transform_0, window_bounds = array<i64: 1, 8, 4, 128>}, {transform_indices = @transform_1, window_bounds = array<i64: 1, 8, 3, 128>}, {transform_indices = @transform_2, window_bounds = array<i64: 1, 8, 3, 128>}, {pipeline_mode = #tpu.pipeline_mode<synchronous>, transform_indices = @transform_3, window_bounds = array<i64: 8, 4>}, {pipeline_mode = #tpu.pipeline_mode<synchronous>, transform_indices = @transform_4, window_bounds = array<i64: 8, 3>}, {pipeline_mode = #tpu.pipeline_mode<synchronous>, transform_indices = @transform_5, window_bounds = array<i64: 8, 4>}, {pipeline_mode = #tpu.pipeline_mode<synchronous>, transform_indices = @transform_6, window_bounds = array<i64: 8, 3>}, {pipeline_mode = #tpu.pipeline_mode<synchronous>, transform_indices = @transform_7, window_bounds = array<i64: 4, 4>}, {pipeline_mode = #tpu.pipeline_mode<synchronous>, transform_indices = @transform_8, window_bounds = array<i64: 4, 3>}, {pipeline_mode = #tpu.pipeline_mode<synchronous>, transform_indices = @transform_9, window_bounds = array<i64: 4, 4>}, {pipeline_mode = #tpu.pipeline_mode<synchronous>, transform_indices = @transform_10, window_bounds = array<i64: 1, 4, 1>}, {transform_indices = @transform_11, window_bounds = array<i64: 1, 8, 4, 128>}]} {
    %c0 = arith.constant 0 : index
    %c0_0 = arith.constant 0 : index
    %c0_1 = arith.constant 0 : index
    %c0_2 = arith.constant 0 : index
    %0 = vector.load %arg1[%c0, %c0_0, %c0_1, %c0_2] : memref<1x8x4x128xf32, #tpu.memory_space<vmem>>, vector<1x8x4x128xf32>
    %1 = vector.shape_cast %0 : vector<1x8x4x128xf32> to vector<8x4x128xf32>
    %c0_3 = arith.constant 0 : index
    %c0_4 = arith.constant 0 : index
    %c0_5 = arith.constant 0 : index
    %c0_6 = arith.constant 0 : index
    %2 = vector.load %arg3[%c0_3, %c0_4, %c0_5, %c0_6] : memref<1x8x3x128xf32, #tpu.memory_space<vmem>>, vector<1x8x3x128xf32>
    %3 = vector.shape_cast %2 : vector<1x8x3x128xf32> to vector<8x3x128xf32>
    %c0_7 = arith.constant 0 : index
    %c0_8 = arith.constant 0 : index
    %c0_9 = arith.constant 0 : index
    %c0_10 = arith.constant 0 : index
    %4 = vector.load %arg2[%c0_7, %c0_8, %c0_9, %c0_10] : memref<1x8x3x128xf32, #tpu.memory_space<vmem>>, vector<1x8x3x128xf32>
    %5 = vector.shape_cast %4 : vector<1x8x3x128xf32> to vector<8x3x128xf32>
    %6 = arith.subf %3, %5 : vector<8x3x128xf32>
    %7 = arith.truncf %1 : vector<8x4x128xf32> to vector<8x4x128xbf16>
    %8 = arith.truncf %6 : vector<8x3x128xf32> to vector<8x3x128xbf16>
    %c0_11 = arith.constant 0 : index
    %c0_12 = arith.constant 0 : index
    %9 = vector.load %arg4[%c0_11, %c0_12] : memref<8x4xbf16, #tpu.memory_space<vmem>>, vector<8x4xbf16>
    %10 = vector.shape_cast %9 : vector<8x4xbf16> to vector<1x8x4xbf16>
    %11 = vector.broadcast %10 : vector<1x8x4xbf16> to vector<8x8x4xbf16>
    %c0_13 = arith.constant 0 : index
    %c0_14 = arith.constant 0 : index
    %12 = vector.load %arg5[%c0_13, %c0_14] : memref<8x3xbf16, #tpu.memory_space<vmem>>, vector<8x3xbf16>
    %13 = vector.shape_cast %12 : vector<8x3xbf16> to vector<1x8x3xbf16>
    %14 = vector.broadcast %13 : vector<1x8x3xbf16> to vector<8x8x3xbf16>
    %c0_15 = arith.constant 0 : index
    %c0_16 = arith.constant 0 : index
    %15 = vector.load %arg6[%c0_15, %c0_16] : memref<8x4xbf16, #tpu.memory_space<vmem>>, vector<8x4xbf16>
    %16 = vector.shape_cast %15 : vector<8x4xbf16> to vector<1x8x4xbf16>
    %17 = vector.broadcast %16 : vector<1x8x4xbf16> to vector<8x8x4xbf16>
    %c0_17 = arith.constant 0 : index
    %c0_18 = arith.constant 0 : index
    %18 = vector.load %arg7[%c0_17, %c0_18] : memref<8x3xbf16, #tpu.memory_space<vmem>>, vector<8x3xbf16>
    %19 = vector.shape_cast %18 : vector<8x3xbf16> to vector<1x8x3xbf16>
    %20 = vector.broadcast %19 : vector<1x8x3xbf16> to vector<8x8x3xbf16>
    %c0_19 = arith.constant 0 : index
    %c0_20 = arith.constant 0 : index
    %21 = vector.load %arg8[%c0_19, %c0_20] : memref<4x4xbf16, #tpu.memory_space<vmem>>, vector<4x4xbf16>
    %22 = vector.shape_cast %21 : vector<4x4xbf16> to vector<1x4x4xbf16>
    %23 = vector.broadcast %22 : vector<1x4x4xbf16> to vector<8x4x4xbf16>
    %c0_21 = arith.constant 0 : index
    %c0_22 = arith.constant 0 : index
    %24 = vector.load %arg9[%c0_21, %c0_22] : memref<4x3xbf16, #tpu.memory_space<vmem>>, vector<4x3xbf16>
    %25 = vector.shape_cast %24 : vector<4x3xbf16> to vector<1x4x3xbf16>
    %26 = vector.broadcast %25 : vector<1x4x3xbf16> to vector<8x4x3xbf16>
    %c0_23 = arith.constant 0 : index
    %c0_24 = arith.constant 0 : index
    %27 = vector.load %arg10[%c0_23, %c0_24] : memref<4x4xbf16, #tpu.memory_space<vmem>>, vector<4x4xbf16>
    %28 = vector.shape_cast %27 : vector<4x4xbf16> to vector<1x4x4xbf16>
    %29 = vector.broadcast %28 : vector<1x4x4xbf16> to vector<8x4x4xbf16>
    "tpu.trace_start"() <{level = 10 : i32, message = "moc,mcn->mon"}> : () -> ()
    %cst = arith.constant dense<0.000000e+00> : vector<8x8x128xf32>
    %30 = tpu.matmul %11, %7, %cst {dimension_numbers = #tpu.dot_dimension_numbers<[2], [1], [1], [2], [0, 0, 0, 1, 1, 2], [0], [0]>} : vector<8x8x4xbf16>, vector<8x4x128xbf16>, vector<8x8x128xf32> -> vector<8x8x128xf32>
    "tpu.trace_stop"() : () -> ()
    "tpu.trace_start"() <{level = 10 : i32, message = "mop,mpn->mon"}> : () -> ()
    %cst_25 = arith.constant dense<0.000000e+00> : vector<8x8x128xf32>
    %31 = tpu.matmul %14, %8, %cst_25 {dimension_numbers = #tpu.dot_dimension_numbers<[2], [1], [1], [2], [0, 0, 0, 1, 1, 2], [0], [0]>} : vector<8x8x3xbf16>, vector<8x3x128xbf16>, vector<8x8x128xf32> -> vector<8x8x128xf32>
    "tpu.trace_stop"() : () -> ()
    %32 = arith.addf %30, %31 : vector<8x8x128xf32>
    "tpu.trace_start"() <{level = 10 : i32, message = "moc,mcn->mon"}> : () -> ()
    %cst_26 = arith.constant dense<0.000000e+00> : vector<8x8x128xf32>
    %33 = tpu.matmul %17, %7, %cst_26 {dimension_numbers = #tpu.dot_dimension_numbers<[2], [1], [1], [2], [0, 0, 0, 1, 1, 2], [0], [0]>} : vector<8x8x4xbf16>, vector<8x4x128xbf16>, vector<8x8x128xf32> -> vector<8x8x128xf32>
    "tpu.trace_stop"() : () -> ()
    "tpu.trace_start"() <{level = 10 : i32, message = "mop,mpn->mon"}> : () -> ()
    %cst_27 = arith.constant dense<0.000000e+00> : vector<8x8x128xf32>
    %34 = tpu.matmul %20, %8, %cst_27 {dimension_numbers = #tpu.dot_dimension_numbers<[2], [1], [1], [2], [0, 0, 0, 1, 1, 2], [0], [0]>} : vector<8x8x3xbf16>, vector<8x3x128xbf16>, vector<8x8x128xf32> -> vector<8x8x128xf32>
    "tpu.trace_stop"() : () -> ()
    %35 = arith.addf %33, %34 : vector<8x8x128xf32>
    "tpu.trace_start"() <{level = 10 : i32, message = "moc,mcn->mon"}> : () -> ()
    %cst_28 = arith.constant dense<0.000000e+00> : vector<8x4x128xf32>
    %36 = tpu.matmul %23, %7, %cst_28 {dimension_numbers = #tpu.dot_dimension_numbers<[2], [1], [1], [2], [0, 0, 0, 1, 1, 2], [0], [0]>} : vector<8x4x4xbf16>, vector<8x4x128xbf16>, vector<8x4x128xf32> -> vector<8x4x128xf32>
    "tpu.trace_stop"() : () -> ()
    "tpu.trace_start"() <{level = 10 : i32, message = "mop,mpn->mon"}> : () -> ()
    %cst_29 = arith.constant dense<0.000000e+00> : vector<8x4x128xf32>
    %37 = tpu.matmul %26, %8, %cst_29 {dimension_numbers = #tpu.dot_dimension_numbers<[2], [1], [1], [2], [0, 0, 0, 1, 1, 2], [0], [0]>} : vector<8x4x3xbf16>, vector<8x3x128xbf16>, vector<8x4x128xf32> -> vector<8x4x128xf32>
    "tpu.trace_stop"() : () -> ()
    %38 = arith.addf %36, %37 : vector<8x4x128xf32>
    %39 = tpu.transpose %35, [0, 2, 1] : vector<8x8x128xf32> -> vector<8x128x8xf32>
    %40 = arith.truncf %39 : vector<8x128x8xf32> to vector<8x128x8xbf16>
    %41 = arith.truncf %32 : vector<8x8x128xf32> to vector<8x8x128xbf16>
    "tpu.trace_start"() <{level = 10 : i32, message = "mno,moj->mnj"}> : () -> ()
    %cst_30 = arith.constant dense<0.000000e+00> : vector<8x128x128xf32>
    %42 = tpu.matmul %40, %41, %cst_30 {dimension_numbers = #tpu.dot_dimension_numbers<[2], [1], [1], [2], [0, 0, 0, 1, 1, 2], [0], [0]>} : vector<8x128x8xbf16>, vector<8x8x128xbf16>, vector<8x128x128xf32> -> vector<8x128x128xf32>
    "tpu.trace_stop"() : () -> ()
    %cst_31 = arith.constant dense<0xFF800000> : vector<8x128xf32>
    %43 = vector.multi_reduction <maximumf>, %42, %cst_31 [1] : vector<8x128x128xf32> to vector<8x128xf32>
    %44 = vector.shape_cast %43 : vector<8x128xf32> to vector<8x1x128xf32>
    %45 = vector.broadcast %44 : vector<8x1x128xf32> to vector<8x128x128xf32>
    %46 = arith.subf %42, %45 : vector<8x128x128xf32>
    %47 = math.exp %46 : vector<8x128x128xf32>
    %cst_32 = arith.constant dense<0.000000e+00> : vector<8x128xf32>
    %48 = vector.multi_reduction <add>, %47, %cst_32 [1] : vector<8x128x128xf32> to vector<8x128xf32>
    %49 = vector.shape_cast %48 : vector<8x128xf32> to vector<8x1x128xf32>
    %cst_33 = arith.constant 1.000000e+00 : f32
    %50 = vector.broadcast %cst_33 : f32 to vector<8x1x128xf32>
    %51 = arith.mulf %49, %50 : vector<8x1x128xf32>
    %52 = tpu.reciprocal %51 {approx = true} : vector<8x1x128xf32> -> vector<8x1x128xf32>
    %53 = vector.broadcast %52 : vector<8x1x128xf32> to vector<8x128x128xf32>
    %54 = arith.mulf %47, %53 : vector<8x128x128xf32>
    %55 = arith.truncf %38 : vector<8x4x128xf32> to vector<8x4x128xbf16>
    %56 = arith.truncf %54 : vector<8x128x128xf32> to vector<8x128x128xbf16>
    "tpu.trace_start"() <{level = 10 : i32, message = "mcn,mnj->mcj"}> : () -> ()
    %cst_34 = arith.constant dense<0.000000e+00> : vector<8x4x128xf32>
    %57 = tpu.matmul %55, %56, %cst_34 {dimension_numbers = #tpu.dot_dimension_numbers<[2], [1], [1], [2], [0, 0, 0, 1, 1, 2], [0], [0]>} : vector<8x4x128xbf16>, vector<8x128x128xbf16>, vector<8x4x128xf32> -> vector<8x4x128xf32>
    "tpu.trace_stop"() : () -> ()
    %58 = arith.subf %57, %1 : vector<8x4x128xf32>
    %59 = arith.truncf %58 : vector<8x4x128xf32> to vector<8x4x128xbf16>
    "tpu.trace_start"() <{level = 10 : i32, message = "moc,mcj->moj"}> : () -> ()
    %cst_35 = arith.constant dense<0.000000e+00> : vector<8x4x128xf32>
    %60 = tpu.matmul %29, %59, %cst_35 {dimension_numbers = #tpu.dot_dimension_numbers<[2], [1], [1], [2], [0, 0, 0, 1, 1, 2], [0], [0]>} : vector<8x4x4xbf16>, vector<8x4x128xbf16>, vector<8x4x128xf32> -> vector<8x4x128xf32>
    "tpu.trace_stop"() : () -> ()
    %c0_36 = arith.constant 0 : index
    %c0_37 = arith.constant 0 : index
    %c0_38 = arith.constant 0 : index
    %61 = vector.load %arg11[%c0_36, %c0_37, %c0_38] : memref<1x4x1xf32, #tpu.memory_space<vmem>>, vector<1x4x1xf32>
    %62 = vector.broadcast %61 : vector<1x4x1xf32> to vector<8x4x128xf32>
    %63 = arith.addf %60, %62 : vector<8x4x128xf32>
    %cst_39 = arith.constant 0.000000e+00 : f32
    %64 = vector.broadcast %cst_39 : f32 to vector<8x4x128xf32>
    %65 = arith.maximumf %63, %64 : vector<8x4x128xf32>
    %66 = arith.addf %65, %1 : vector<8x4x128xf32>
    %c0_40 = arith.constant 0 : index
    %c0_41 = arith.constant 0 : index
    %c0_42 = arith.constant 0 : index
    %c0_43 = arith.constant 0 : index
    %67 = vector.load %arg12[%c0_40, %c0_41, %c0_42, %c0_43] : memref<1x8x4x128xf32, #tpu.memory_space<vmem>>, vector<1x8x4x128xf32>
    %68 = vector.shape_cast %67 : vector<1x8x4x128xf32> to vector<8x4x128xf32>
    %69 = vector.shape_cast %66 : vector<8x4x128xf32> to vector<1x8x4x128xf32>
    tpu.vector_store %arg12[%c0_40, %c0_41, %c0_42, %c0_43], %69 {strides = array<i32>} : memref<1x8x4x128xf32, #tpu.memory_space<vmem>>, vector<1x8x4x128xf32>,
    return
  }
  func.func @transform_0(%arg0: i32) -> (i32, i32, i32, i32) {
    %c0_i32 = arith.constant 0 : i32
    %c0_i32_0 = arith.constant 0 : i32
    %c0_i32_1 = arith.constant 0 : i32
    %c0_i32_2 = arith.constant 0 : i32
    return %arg0, %c0_i32, %c0_i32_0, %c0_i32_1 : i32, i32, i32, i32
  }
  func.func @transform_1(%arg0: i32) -> (i32, i32, i32, i32) {
    %c0_i32 = arith.constant 0 : i32
    %c0_i32_0 = arith.constant 0 : i32
    %c0_i32_1 = arith.constant 0 : i32
    %c0_i32_2 = arith.constant 0 : i32
    return %arg0, %c0_i32, %c0_i32_0, %c0_i32_1 : i32, i32, i32, i32
  }
  func.func @transform_2(%arg0: i32) -> (i32, i32, i32, i32) {
    %c0_i32 = arith.constant 0 : i32
    %c0_i32_0 = arith.constant 0 : i32
    %c0_i32_1 = arith.constant 0 : i32
    %c0_i32_2 = arith.constant 0 : i32
    return %arg0, %c0_i32, %c0_i32_0, %c0_i32_1 : i32, i32, i32, i32
  }
  func.func @transform_3(%arg0: i32) -> (i32, i32) {
    %c0_i32 = arith.constant 0 : i32
    %c0_i32_0 = arith.constant 0 : i32
    %c0_i32_1 = arith.constant 0 : i32
    return %c0_i32, %c0_i32_0 : i32, i32
  }
  func.func @transform_4(%arg0: i32) -> (i32, i32) {
    %c0_i32 = arith.constant 0 : i32
    %c0_i32_0 = arith.constant 0 : i32
    %c0_i32_1 = arith.constant 0 : i32
    return %c0_i32, %c0_i32_0 : i32, i32
  }
  func.func @transform_5(%arg0: i32) -> (i32, i32) {
    %c0_i32 = arith.constant 0 : i32
    %c0_i32_0 = arith.constant 0 : i32
    %c0_i32_1 = arith.constant 0 : i32
    return %c0_i32, %c0_i32_0 : i32, i32
  }
  func.func @transform_6(%arg0: i32) -> (i32, i32) {
    %c0_i32 = arith.constant 0 : i32
    %c0_i32_0 = arith.constant 0 : i32
    %c0_i32_1 = arith.constant 0 : i32
    return %c0_i32, %c0_i32_0 : i32, i32
  }
  func.func @transform_7(%arg0: i32) -> (i32, i32) {
    %c0_i32 = arith.constant 0 : i32
    %c0_i32_0 = arith.constant 0 : i32
    %c0_i32_1 = arith.constant 0 : i32
    return %c0_i32, %c0_i32_0 : i32, i32
  }
  func.func @transform_8(%arg0: i32) -> (i32, i32) {
    %c0_i32 = arith.constant 0 : i32
    %c0_i32_0 = arith.constant 0 : i32
    %c0_i32_1 = arith.constant 0 : i32
    return %c0_i32, %c0_i32_0 : i32, i32
  }
  func.func @transform_9(%arg0: i32) -> (i32, i32) {
    %c0_i32 = arith.constant 0 : i32
    %c0_i32_0 = arith.constant 0 : i32
    %c0_i32_1 = arith.constant 0 : i32
    return %c0_i32, %c0_i32_0 : i32, i32
  }
  func.func @transform_10(%arg0: i32) -> (i32, i32, i32) {
    %c0_i32 = arith.constant 0 : i32
    %c0_i32_0 = arith.constant 0 : i32
    %c0_i32_1 = arith.constant 0 : i32
    %c0_i32_2 = arith.constant 0 : i32
    return %c0_i32, %c0_i32_0, %c0_i32_1 : i32, i32, i32
  }
  func.func @transform_11(%arg0: i32) -> (i32, i32, i32, i32) {
    %c0_i32 = arith.constant 0 : i32
    %c0_i32_0 = arith.constant 0 : i32
    %c0_i32_1 = arith.constant 0 : i32
    %c0_i32_2 = arith.constant 0 : i32
    return %arg0, %c0_i32, %c0_i32_0, %c0_i32_1 : i32, i32, i32, i32
  }
}

</mosaic_0001>

<bundles_post_ra>
// kernel: pct_layer_forward.1
= control target key start
LH: loop header
LB: loop body
LE: loop exit
PB: predicated region body
PF: predicated region fallthrough
CT: control target
= control target key end

     0   :  { %s7253_s17 = smov 0   ;;  %s9455_s0 = inlined_call_operand.vmem [shape: f32[2,8,4,128], index: 0, kind: input, shape index: {}]   ;;  %s9456_s1 = inlined_call_operand.vmem [shape: f32[2,8,3,128], index: 1, kind: input, shape index: {}]   ;;  %s9457_s2 = inlined_call_operand.vmem [shape: f32[2,8,3,128], index: 2, kind: input, shape index: {}]   ;;  %s9458_s3 = inlined_call_operand.vmem [shape: bf16[8,4], index: 3, kind: input, shape index: {}]   ;;  %s9459_s4 = inlined_call_operand.vmem [shape: bf16[8,3], index: 4, kind: input, shape index: {}]   ;;  %s9460_s5 = inlined_call_operand.vmem [shape: bf16[8,4], index: 5, kind: input, shape index: {}]   ;;  %s9461_s6 = inlined_call_operand.vmem [shape: bf16[8,3], index: 6, kind: input, shape index: {}]   ;;  %s9462_s7 = inlined_call_operand.vmem [shape: bf16[4,4], index: 7, kind: input, shape index: {}]   ;;  %s9463_s8 = inlined_call_operand.vmem [shape: bf16[4,3], index: 8, kind: input, shape index: {}]   ;;  %s9464_s9 = inlined_call_operand.vmem [shape: bf16[4,4], index: 9, kind: input, shape index: {}]   ;;  %s9465_s10 = inlined_call_operand.vmem [shape: f32[1,4,1], index: 10, kind: input, shape index: {}]   ;;  %s9466_s11 = inlined_call_operand.vmem [shape: f32[2,8,4,128], index: 11, kind: output, shape index: {}]  }
   0x1 LB: > { %s5517_s18 = sadd.s32 4294967295, %s7187_s17   ;;  %p5521_p0 = scmp.ge.s32.totalorder %s7187_s17, 1  ;;  %s7187_s17 = sphi %s7253_s17, %s21_s17  }
   0x2   : > { %p357_p1 = scmp.lt.s32.totalorder %s7187_s17, 3 }
   0x4   : > { %p358_p2 = pnand %p5521_p0, %p357_p1 }
   0x6   : > { %361 = sbr.rel (%p358_p2) target bundleno = 1425 (0x591), region = 64 }
   0xb   : > { %p407_p3 = scmp.lt.s32.totalorder %s5517_s18, 1  ;;  %v9467_v0 = vmov 0.0   ;;  %vm487_vm0 = vcmask 1040384   ;;  %vm7190_vm1 = vmmov 0   ;;  %vm488_vm2 = vcmask 1041408  }
   0xc   : > { %5912 = vmatprep.subr.bf16.mxu0 %v9467_v0  ;;  %5918 = vmatprep.subr.bf16.mxu1 %v9467_v0  ;;  %v7191_v1 = vmov 65535   ;;  %v477_v26 = vld [vmem:[%s9459_s4] sm:$0xf]  ;;  %vm483_vm3 = vcmask 23552   ;;  %vm835_vm4 = vcmask 31744   ;;  %vm2828_vm5 = vcmask 1043456  }
   0xd   : > { %s9808_s18 = smov (!%p407_p3, %s5517_s18), 1  ;;  %5914 = vmatprep.mubr.msk.bf16.mxu0 %vm7190_vm1, %v9467_v0  ;;  %5920 = vmatprep.mubr.msk.bf16.mxu1 %vm7190_vm1, %v9467_v0  ;;  %v489_v2 = vsel %vm487_vm0, 4294967295, %v7191_v1  ;;  %v476_v55 = vld [vmem:[%s9458_s3] sm:$0xf]  ;;  %vm2803_vm6 = vcmask 64512  }
   0xe   : > { %s7267_s19 = sshll.u32 %s9808_s18, 5  ;;  %v490_v10 = vsel %vm488_vm2, %v489_v2, 0 }
   0xf   : > { %s7273_s22 = scalar_lea.vmem %s9456_s1, %s7267_s19  ;;  %s7279_s25 = scalar_lea.vmem %s9457_s2, %s7267_s19 }
  0x10   : > { %v436_v3 = vld [vmem:[%s7279_s25] sm:$0x7]  ;;  %v437_v5 = vld [vmem:[%s7279_s25 + $0x4] sm:$0x7]  ;;  %v438_v8 = vld [vmem:[%s7279_s25 + $0x8] sm:$0x7]  ;;  %s7341_s30 = scalar_lea.vmem %s9455_s0, %s7267_s19 }
  0x11   : > { %v444_v4 = vld [vmem:[%s7273_s22] sm:$0x7]  ;;  %v445_v7 = vld [vmem:[%s7273_s22 + $0x4] sm:$0x7]  ;;  %v446_v9 = vld [vmem:[%s7273_s22 + $0x8] sm:$0x7] }
  0x12   : > { %v452_v6 = vsub.f32 %v436_v3, %v444_v4  ;;  %v453_v11 = vsub.f32 %v437_v5, %v445_v7  ;;  %v454_v12 = vsub.f32 %v438_v8, %v446_v9  ;;  %v439_v13 = vld [vmem:[%s7279_s25 + $0xc] sm:$0x7]  ;;  %v440_v19 = vld [vmem:[%s7279_s25 + $0x10] sm:$0x7]  ;;  %v441_v23 = vld [vmem:[%s7279_s25 + $0x14] sm:$0x7] }
  0x13   : > { %v447_v14 = vld [vmem:[%s7273_s22 + $0xc] sm:$0x7]  ;;  %v448_v20 = vld [vmem:[%s7273_s22 + $0x10] sm:$0x7]  ;;  %v449_v24 = vld [vmem:[%s7273_s22 + $0x14] sm:$0x7] }
  0x14   : > { %v468_v15 = vpack.c.bf16 %v452_v6, %v452_v6  ;;  %v455_v16 = vsub.f32 %v439_v13, %v447_v14  ;;  %v469_v17 = vpack.c.bf16 %v453_v11, %v453_v11  ;;  %v470_v18 = vpack.c.bf16 %v454_v12, %v454_v12  ;;  %v442_v33 = vld [vmem:[%s7279_s25 + $0x18] sm:$0x7]  ;;  %v443_v35 = vld [vmem:[%s7279_s25 + $0x1c] sm:$0x7]  ;;  %v428_v45 = vld [vmem:[%s7341_s30] sm:$0xf] }
  0x15   : > { %v456_v28 = vsub.f32 %v440_v19, %v448_v20  ;;  %v457_v30 = vsub.f32 %v441_v23, %v449_v24  ;;  %v450_v34 = vld [vmem:[%s7273_s22 + $0x18] sm:$0x7]  ;;  %v451_v36 = vld [vmem:[%s7273_s22 + $0x1c] sm:$0x7]  ;;  %v429_v46 = vld [vmem:[%s7341_s30 + $0x4] sm:$0xf]  ;;  %v460_v47 = vpack.c.bf16 %v428_v45, %v428_v45 }
  0x16   : > { %v7292_v21 = vand.u32 %v490_v10, %v468_v15  ;;  %v471_v22 = vpack.c.bf16 %v455_v16, %v455_v16  ;;  %v7296_v25 = vand.u32 %v490_v10, %v469_v17  ;;  %v7302_v27 = vand.u32 %v490_v10, %v470_v18  ;;  %v430_v51 = vld [vmem:[%s7341_s30 + $0x8] sm:$0xf]  ;;  %v431_v52 = vld [vmem:[%s7341_s30 + $0xc] sm:$0xf]  ;;  %v432_v58 = vld [vmem:[%s7341_s30 + $0x10] sm:$0xf] }
  0x17   : > { %v472_v31 = vpack.c.bf16 %v456_v28, %v456_v28  ;;  %v473_v32 = vpack.c.bf16 %v457_v30, %v457_v30  ;;  %v458_v38 = vsub.f32 %v442_v33, %v450_v34  ;;  %v459_v40 = vsub.f32 %v443_v35, %v451_v36  ;;  %v433_v59 = vld [vmem:[%s7341_s30 + $0x14] sm:$0xf]  ;;  %v434_v1 = vld [vmem:[%s7341_s30 + $0x18] sm:$0xf]  ;;  %v435_v2 = vld [vmem:[%s7341_s30 + $0x1c] sm:$0xf] }
  0x18   : > { %5913 = vmatpush3.bf16.msra.mxu0 %v7292_v21  ;;  %5919 = vmatpush3.bf16.msra.mxu1 %v7296_v25  ;;  %v7306_v29 = vand.u32 %v490_v10, %v471_v22  ;;  %v461_v48 = vpack.c.bf16 %v429_v46, %v429_v46  ;;  %v7360_v49 = vsel %vm488_vm2, %v460_v47, 0  ;;  %v462_v53 = vpack.c.bf16 %v430_v51, %v430_v51  ;;  %v479_v7 = vld [vmem:[%s9461_s6] sm:$0xf] }
  0x19   : > { %5924 = vmatprep.subr.bf16.mxu0 %v9467_v0  ;;  %5930 = vmatprep.subr.bf16.mxu1 %v9467_v0  ;;  %v7323_v37 = vand.u32 %v490_v10, %v472_v31  ;;  %v7325_v39 = vand.u32 %v490_v10, %v473_v32  ;;  %v474_v41 = vpack.c.bf16 %v458_v38, %v458_v38  ;;  %v478_v8 = vld [vmem:[%s9460_s5] sm:$0xf] }
  0x1a   : > { %v475_v42 = vpack.c.bf16 %v459_v40, %v459_v40  ;;  %v7363_v50 = vsel %vm488_vm2, %v461_v48, 0  ;;  %v463_v54 = vpack.c.bf16 %v431_v52, %v431_v52  ;;  %v7381_v56 = vsel %vm488_vm2, %v462_v53, 0  ;;  %v481_v9 = vld [vmem:[%s9463_s8] sm:$0x3] }
  0x1b   : > { %5915 = vmatmul.mubr.msk.bf16.vlgmr.msra.gmra.mxu0 %vm483_vm3, %v477_v26  ;;  %5921 = vmatmul.mubr.msk.bf16.vlgmr.msra.gmra.mxu1 %vm483_vm3, %v477_v26  ;;  %v7343_v43 = vand.u32 %v490_v10, %v474_v41  ;;  %v464_v60 = vpack.c.bf16 %v432_v58, %v432_v58  ;;  %v465_v61 = vpack.c.bf16 %v433_v59, %v433_v59 }
  0x1c   : > { %5925 = vmatpush3.bf16.msra.mxu0 %v7302_v27  ;;  %5931 = vmatpush3.bf16.msra.mxu1 %v7306_v29  ;;  %v7345_v44 = vand.u32 %v490_v10, %v475_v42  ;;  %v7384_v57 = vsel %vm488_vm2, %v463_v54, 0  ;;  %v466_v3 = vpack.c.bf16 %v434_v1, %v434_v1  ;;  %v467_v4 = vpack.c.bf16 %v435_v2, %v435_v2  ;;  %v480_v10 = vld [vmem:[%s9462_s7] sm:$0x3] }
  0x1d   : > { %5926 = vmatprep.mubr.msk.bf16.mxu0 %vm7190_vm1, %v9467_v0  ;;  %5932 = vmatprep.mubr.msk.bf16.mxu1 %vm7190_vm1, %v9467_v0  ;;  %v7399_v62 = vsel %vm488_vm2, %v464_v60, 0  ;;  %v7402_v63 = vsel %vm488_vm2, %v465_v61, 0 }
  0x1e   : > { %5936 = vmatprep.subr.bf16.mxu0 %v9467_v0  ;;  %5942 = vmatprep.subr.bf16.mxu1 %v9467_v0  ;;  %v7417_v5 = vsel %vm488_vm2, %v466_v3, 0  ;;  %v7420_v6 = vsel %vm488_vm2, %v467_v4, 0 }
  0x23   : > { %5927 = vmatmul.mubr.msk.bf16.vlgmr.msra.gmra.mxu0 %vm483_vm3, %v477_v26  ;;  %5933 = vmatmul.mubr.msk.bf16.vlgmr.msra.gmra.mxu1 %vm483_vm3, %v477_v26 }
  0x24   : > { %5937 = vmatpush3.bf16.msra.mxu0 %v7323_v37  ;;  %5943 = vmatpush3.bf16.msra.mxu1 %v7325_v39 }
  0x25   : > { %5938 = vmatprep.mubr.msk.bf16.mxu0 %vm7190_vm1, %v9467_v0  ;;  %5944 = vmatprep.mubr.msk.bf16.mxu1 %vm7190_vm1, %v9467_v0 }
  0x26   : > { %5948 = vmatprep.subr.bf16.mxu0 %v9467_v0  ;;  %5954 = vmatprep.subr.bf16.mxu1 %v9467_v0 }
  0x2b   : > { %5939 = vmatmul.mubr.msk.bf16.vlgmr.msra.gmra.mxu0 %vm483_vm3, %v477_v26  ;;  %5945 = vmatmul.mubr.msk.bf16.vlgmr.msra.gmra.mxu1 %vm483_vm3, %v477_v26 }
  0x2c   : > { %5949 = vmatpush3.bf16.msra.mxu0 %v7343_v43  ;;  %5955 = vmatpush3.bf16.msra.mxu1 %v7345_v44 }
  0x2d   : > { %5950 = vmatprep.mubr.msk.bf16.mxu0 %vm7190_vm1, %v9467_v0  ;;  %5956 = vmatprep.mubr.msk.bf16.mxu1 %vm7190_vm1, %v9467_v0 }
  0x2e   : > { %5960 = vmatprep.subr.bf16.mxu0 %v9467_v0  ;;  %5966 = vmatprep.subr.bf16.mxu1 %v9467_v0 }
  0x33   : > { %5951 = vmatmul.mubr.msk.bf16.vlgmr.msra.gmra.mxu0 %vm483_vm3, %v477_v26  ;;  %5957 = vmatmul.mubr.msk.bf16.vlgmr.msra.gmra.mxu1 %vm483_vm3, %v477_v26 }
  0x34   : > { %5961 = vmatpush3.bf16.msra.mxu0 %v7360_v49  ;;  %5967 = vmatpush3.bf16.msra.mxu1 %v7363_v50 }
  0x35   : > { %5962 = vmatprep.mubr.msk.bf16.mxu0 %vm7190_vm1, %v9467_v0  ;;  %5968 = vmatprep.mubr.msk.bf16.mxu1 %vm7190_vm1, %v9467_v0 }
  0x36   : > { %5972 = vmatprep.subr.bf16.mxu0 %v9467_v0  ;;  %5978 = vmatprep.subr.bf16.mxu1 %v9467_v0 }
  0x3b   : > { %5963 = vmatmul.mubr.msk.bf16.vlgmr.msra.gmra.mxu0 %vm835_vm4, %v476_v55  ;;  %5969 = vmatmul.mubr.msk.bf16.vlgmr.msra.gmra.mxu1 %vm835_vm4, %v476_v55 }
  0x3c   : > { %5973 = vmatpush3.bf16.msra.mxu0 %v7381_v56  ;;  %5979 = vmatpush3.bf16.msra.mxu1 %v7384_v57 }
  0x3d   : > { %5974 = vmatprep.mubr.msk.bf16.mxu0 %vm7190_vm1, %v9467_v0  ;;  %5980 = vmatprep.mubr.msk.bf16.mxu1 %vm7190_vm1, %v9467_v0 }
  0x3e   : > { %5984 = vmatprep.subr.bf16.mxu0 %v9467_v0  ;;  %5990 = vmatprep.subr.bf16.mxu1 %v9467_v0 }
  0x43   : > { %5975 = vmatmul.mubr.msk.bf16.vlgmr.msra.gmra.mxu0 %vm835_vm4, %v476_v55  ;;  %5981 = vmatmul.mubr.msk.bf16.vlgmr.msra.gmra.mxu1 %vm835_vm4, %v476_v55 }
  0x44   : > { %5985 = vmatpush3.bf16.msra.mxu0 %v7399_v62  ;;  %5991 = vmatpush3.bf16.msra.mxu1 %v7402_v63 }
  0x45   : > { %5986 = vmatprep.mubr.msk.bf16.mxu0 %vm7190_vm1, %v9467_v0  ;;  %5992 = vmatprep.mubr.msk.bf16.mxu1 %vm7190_vm1, %v9467_v0 }
  0x46   : > { %5996 = vmatprep.subr.bf16.mxu0 %v9467_v0  ;;  %6002 = vmatprep.subr.bf16.mxu1 %v9467_v0 }
  0x4b   : > { %5987 = vmatmul.mubr.msk.bf16.vlgmr.msra.gmra.mxu0 %vm835_vm4, %v476_v55  ;;  %5993 = vmatmul.mubr.msk.bf16.vlgmr.msra.gmra.mxu1 %vm835_vm4, %v476_v55 }
  0x4c   : > { %5997 = vmatpush3.bf16.msra.mxu0 %v7417_v5  ;;  %6003 = vmatpush3.bf16.msra.mxu1 %v7420_v6 }
  0x4d   : > { %5998 = vmatprep.mubr.msk.bf16.mxu0 %vm7190_vm1, %v9467_v0  ;;  %6004 = vmatprep.mubr.msk.bf16.mxu1 %vm7190_vm1, %v9467_v0 }
  0x4e   : > { %6008 = vmatprep.subr.bf16.mxu0 %v9467_v0  ;;  %6014 = vmatprep.subr.bf16.mxu1 %v9467_v0 }
  0x53   : > { %5999 = vmatmul.mubr.msk.bf16.vlgmr.msra.gmra.mxu0 %vm835_vm4, %v476_v55  ;;  %6005 = vmatmul.mubr.msk.bf16.vlgmr.msra.gmra.mxu1 %vm835_vm4, %v476_v55 }
  0x54   : > { %6009 = vmatpush3.bf16.msra.mxu0 %v7292_v21  ;;  %6015 = vmatpush3.bf16.msra.mxu1 %v7296_v25 }
  0x55   : > { %6010 = vmatprep.mubr.msk.bf16.mxu0 %vm7190_vm1, %v9467_v0  ;;  %6016 = vmatprep.mubr.msk.bf16.mxu1 %vm7190_vm1, %v9467_v0 }
  0x56   : > { %6020 = vmatprep.subr.bf16.mxu0 %v9467_v0  ;;  %6026 = vmatprep.subr.bf16.mxu1 %v9467_v0 }
  0x5b   : > { %6011 = vmatmul.mubr.msk.bf16.vlgmr.msra.gmra.mxu0 %vm483_vm3, %v479_v7  ;;  %6017 = vmatmul.mubr.msk.bf16.vlgmr.msra.gmra.mxu1 %vm483_vm3, %v479_v7 }
  0x5c   : > { %6021 = vmatpush3.bf16.msra.mxu0 %v7302_v27  ;;  %6027 = vmatpush3.bf16.msra.mxu1 %v7306_v29 }
  0x5d   : > { %6022 = vmatprep.mubr.msk.bf16.mxu0 %vm7190_vm1, %v9467_v0  ;;  %6028 = vmatprep.mubr.msk.bf16.mxu1 %vm7190_vm1, %v9467_v0 }
  0x5e   : > { %6032 = vmatprep.subr.bf16.mxu0 %v9467_v0  ;;  %6038 = vmatprep.subr.bf16.mxu1 %v9467_v0 }
  0x63   : > { %6023 = vmatmul.mubr.msk.bf16.vlgmr.msra.gmra.mxu0 %vm483_vm3, %v479_v7  ;;  %6029 = vmatmul.mubr.msk.bf16.vlgmr.msra.gmra.mxu1 %vm483_vm3, %v479_v7 }
  0x64   : > { %6033 = vmatpush3.bf16.msra.mxu0 %v7323_v37  ;;  %6039 = vmatpush3.bf16.msra.mxu1 %v7325_v39 }
  0x65   : > { %6034 = vmatprep.mubr.msk.bf16.mxu0 %vm7190_vm1, %v9467_v0  ;;  %6040 = vmatprep.mubr.msk.bf16.mxu1 %vm7190_vm1, %v9467_v0 }
  0x66   : > { %6044 = vmatprep.subr.bf16.mxu0 %v9467_v0  ;;  %6050 = vmatprep.subr.bf16.mxu1 %v9467_v0 }
  0x6b   : > { %6035 = vmatmul.mubr.msk.bf16.vlgmr.msra.gmra.mxu0 %vm483_vm3, %v479_v7  ;;  %6041 = vmatmul.mubr.msk.bf16.vlgmr.msra.gmra.mxu1 %vm483_vm3, %v479_v7 }
  0x6c   : > { %6045 = vmatpush3.bf16.msra.mxu0 %v7343_v43  ;;  %6051 = vmatpush3.bf16.msra.mxu1 %v7345_v44 }
  0x6d   : > { %6046 = vmatprep.mubr.msk.bf16.mxu0 %vm7190_vm1, %v9467_v0  ;;  %6052 = vmatprep.mubr.msk.bf16.mxu1 %vm7190_vm1, %v9467_v0 }
  0x6e   : > { %6056 = vmatprep.subr.bf16.mxu0 %v9467_v0  ;;  %6062 = vmatprep.subr.bf16.mxu1 %v9467_v0 }
  0x73   : > { %6047 = vmatmul.mubr.msk.bf16.vlgmr.msra.gmra.mxu0 %vm483_vm3, %v479_v7  ;;  %6053 = vmatmul.mubr.msk.bf16.vlgmr.msra.gmra.mxu1 %vm483_vm3, %v479_v7 }
  0x74   : > { %6057 = vmatpush3.bf16.msra.mxu0 %v7360_v49  ;;  %6063 = vmatpush3.bf16.msra.mxu1 %v7363_v50 }
  0x75   : > { %6058 = vmatprep.mubr.msk.bf16.mxu0 %vm7190_vm1, %v9467_v0  ;;  %6064 = vmatprep.mubr.msk.bf16.mxu1 %vm7190_vm1, %v9467_v0 }
  0x76   : > { %6068 = vmatprep.subr.bf16.mxu0 %v9467_v0  ;;  %6074 = vmatprep.subr.bf16.mxu1 %v9467_v0 }
  0x7b   : > { %6059 = vmatmul.mubr.msk.bf16.vlgmr.msra.gmra.mxu0 %vm835_vm4, %v478_v8  ;;  %6065 = vmatmul.mubr.msk.bf16.vlgmr.msra.gmra.mxu1 %vm835_vm4, %v478_v8 }
  0x7c   : > { %6069 = vmatpush3.bf16.msra.mxu0 %v7381_v56  ;;  %6075 = vmatpush3.bf16.msra.mxu1 %v7384_v57 }
  0x7d   : > { %6070 = vmatprep.mubr.msk.bf16.mxu0 %vm7190_vm1, %v9467_v0  ;;  %6076 = vmatprep.mubr.msk.bf16.mxu1 %vm7190_vm1, %v9467_v0 }
  0x7e   : > { %6080 = vmatprep.subr.bf16.mxu0 %v9467_v0  ;;  %6086 = vmatprep.subr.bf16.mxu1 %v9467_v0 }
  0x83   : > { %6071 = vmatmul.mubr.msk.bf16.vlgmr.msra.gmra.mxu0 %vm835_vm4, %v478_v8  ;;  %6077 = vmatmul.mubr.msk.bf16.vlgmr.msra.gmra.mxu1 %vm835_vm4, %v478_v8 }
  0x84   : > { %6081 = vmatpush3.bf16.msra.mxu0 %v7399_v62  ;;  %6087 = vmatpush3.bf16.msra.mxu1 %v7402_v63 }
  0x85   : > { %6082 = vmatprep.mubr.msk.bf16.mxu0 %vm7190_vm1, %v9467_v0  ;;  %6088 = vmatprep.mubr.msk.bf16.mxu1 %vm7190_vm1, %v9467_v0 }
  0x86   : > { %6092 = vmatprep.subr.bf16.mxu0 %v9467_v0  ;;  %6098 = vmatprep.subr.bf16.mxu1 %v9467_v0 }
  0x8b   : > { %6083 = vmatmul.mubr.msk.bf16.vlgmr.msra.gmra.mxu0 %vm835_vm4, %v478_v8  ;;  %6089 = vmatmul.mubr.msk.bf16.vlgmr.msra.gmra.mxu1 %vm835_vm4, %v478_v8 }
  0x8c   : > { %6093 = vmatpush3.bf16.msra.mxu0 %v7417_v5  ;;  %6099 = vmatpush3.bf16.msra.mxu1 %v7420_v6 }
  0x8d   : > { %6094 = vmatprep.mubr.msk.bf16.mxu0 %vm7190_vm1, %v9467_v0  ;;  %6100 = vmatprep.mubr.msk.bf16.mxu1 %vm7190_vm1, %v9467_v0 }
  0x8e   : > { %6104 = vmatprep.subr.bf16.mxu0 %v9467_v0  ;;  %6110 = vmatprep.subr.bf16.mxu1 %v9467_v0 }
  0x93   : > { %6095 = vmatmul.mubr.msk.bf16.vlgmr.msra.gmra.mxu0 %vm835_vm4, %v478_v8  ;;  %6101 = vmatmul.mubr.msk.bf16.vlgmr.msra.gmra.mxu1 %vm835_vm4, %v478_v8 }
  0x94   : > { %6105 = vmatpush3.bf16.msra.mxu0 %v7292_v21  ;;  %6111 = vmatpush3.bf16.msra.mxu1 %v7296_v25 }
  0x95   : > { %6106 = vmatprep.mubr.msk.bf16.mxu0 %vm7190_vm1, %v9467_v0  ;;  %6112 = vmatprep.mubr.msk.bf16.mxu1 %vm7190_vm1, %v9467_v0 }
  0x96   : > { %6116 = vmatprep.subr.bf16.mxu0 %v9467_v0  ;;  %6122 = vmatprep.subr.bf16.mxu1 %v9467_v0 }
  0x9b   : > { %6107 = vmatmul.mubr.msk.bf16.vlgmr.msra.gmra.mxu0 %vm483_vm3, %v481_v9  ;;  %6113 = vmatmul.mubr.msk.bf16.vlgmr.msra.gmra.mxu1 %vm483_vm3, %v481_v9 }
  0x9c   : > { %6117 = vmatpush3.bf16.msra.mxu0 %v7302_v27  ;;  %6123 = vmatpush3.bf16.msra.mxu1 %v7306_v29 }
  0x9d   : > { %6118 = vmatprep.mubr.msk.bf16.mxu0 %vm7190_vm1, %v9467_v0  ;;  %6124 = vmatprep.mubr.msk.bf16.mxu1 %vm7190_vm1, %v9467_v0 }
  0x9e   : > { %6128 = vmatprep.subr.bf16.mxu0 %v9467_v0  ;;  %6134 = vmatprep.subr.bf16.mxu1 %v9467_v0 }
  0xa3   : > { %6119 = vmatmul.mubr.msk.bf16.vlgmr.msra.gmra.mxu0 %vm483_vm3, %v481_v9  ;;  %6125 = vmatmul.mubr.msk.bf16.vlgmr.msra.gmra.mxu1 %vm483_vm3, %v481_v9 }
  0xa4   : > { %6129 = vmatpush3.bf16.msra.mxu0 %v7323_v37  ;;  %6135 = vmatpush3.bf16.msra.mxu1 %v7325_v39 }
  0xa5   : > { %6130 = vmatprep.mubr.msk.bf16.mxu0 %vm7190_vm1, %v9467_v0  ;;  %6136 = vmatprep.mubr.msk.bf16.mxu1 %vm7190_vm1, %v9467_v0 }
  0xa6   : > { %6140 = vmatprep.subr.bf16.mxu0 %v9467_v0  ;;  %6146 = vmatprep.subr.bf16.mxu1 %v9467_v0 }
  0xab   : > { %6131 = vmatmul.mubr.msk.bf16.vlgmr.msra.gmra.mxu0 %vm483_vm3, %v481_v9  ;;  %6137 = vmatmul.mubr.msk.bf16.vlgmr.msra.gmra.mxu1 %vm483_vm3, %v481_v9 }
  0xac   : > { %6141 = vmatpush3.bf16.msra.mxu0 %v7343_v43  ;;  %6147 = vmatpush3.bf16.msra.mxu1 %v7345_v44 }
  0xad   : > { %6142 = vmatprep.mubr.msk.bf16.mxu0 %vm7190_vm1, %v9467_v0  ;;  %6148 = vmatprep.mubr.msk.bf16.mxu1 %vm7190_vm1, %v9467_v0 }
  0xae   : > { %6152 = vmatprep.subr.bf16.mxu0 %v9467_v0  ;;  %6158 = vmatprep.subr.bf16.mxu1 %v9467_v0 }
  0xb3   : > { %6143 = vmatmul.mubr.msk.bf16.vlgmr.msra.gmra.mxu0 %vm483_vm3, %v481_v9  ;;  %6149 = vmatmul.mubr.msk.bf16.vlgmr.msra.gmra.mxu1 %vm483_vm3, %v481_v9 }
  0xb4   : > { %6153 = vmatpush3.bf16.msra.mxu0 %v7360_v49  ;;  %6159 = vmatpush3.bf16.msra.mxu1 %v7363_v50 }
  0xb5   : > { %6154 = vmatprep.mubr.msk.bf16.mxu0 %vm7190_vm1, %v9467_v0  ;;  %6160 = vmatprep.mubr.msk.bf16.mxu1 %vm7190_vm1, %v9467_v0 }
  0xb6   : > { %6164 = vmatprep.subr.bf16.mxu0 %v9467_v0  ;;  %6170 = vmatprep.subr.bf16.mxu1 %v9467_v0 }
  0xbb   : > { %6155 = vmatmul.mubr.msk.bf16.vlgmr.msra.gmra.mxu0 %vm835_vm4, %v480_v10  ;;  %6161 = vmatmul.mubr.msk.bf16.vlgmr.msra.gmra.mxu1 %vm835_vm4, %v480_v10 }
  0xbc   : > { %6165 = vmatpush3.bf16.msra.mxu0 %v7381_v56  ;;  %6171 = vmatpush3.bf16.msra.mxu1 %v7384_v57 }
  0xbd   : > { %6166 = vmatprep.mubr.msk.bf16.mxu0 %vm7190_vm1, %v9467_v0  ;;  %6172 = vmatprep.mubr.msk.bf16.mxu1 %vm7190_vm1, %v9467_v0 }
  0xbe   : > { %6176 = vmatprep.subr.bf16.mxu0 %v9467_v0  ;;  %6182 = vmatprep.subr.bf16.mxu1 %v9467_v0 }
  0xc3   : > { %6167 = vmatmul.mubr.msk.bf16.vlgmr.msra.gmra.mxu0 %vm835_vm4, %v480_v10  ;;  %6173 = vmatmul.mubr.msk.bf16.vlgmr.msra.gmra.mxu1 %vm835_vm4, %v480_v10 }
  0xc4   : > { %6177 = vmatpush3.bf16.msra.mxu0 %v7399_v62  ;;  %6183 = vmatpush3.bf16.msra.mxu1 %v7402_v63 }
  0xc5   : > { %6178 = vmatprep.mubr.msk.bf16.mxu0 %vm7190_vm1, %v9467_v0  ;;  %6184 = vmatprep.mubr.msk.bf16.mxu1 %vm7190_vm1, %v9467_v0 }
  0xc6   : > { %6188 = vmatprep.subr.bf16.mxu0 %v9467_v0  ;;  %6194 = vmatprep.subr.bf16.mxu1 %v9467_v0 }
  0xcb   : > { %6179 = vmatmul.mubr.msk.bf16.vlgmr.msra.gmra.mxu0 %vm835_vm4, %v480_v10  ;;  %6185 = vmatmul.mubr.msk.bf16.vlgmr.msra.gmra.mxu1 %vm835_vm4, %v480_v10 }
  0xcc   : > { %6189 = vmatpush3.bf16.msra.mxu0 %v7417_v5  ;;  %6195 = vmatpush3.bf16.msra.mxu1 %v7420_v6 }
  0xcd   : > { %6190 = vmatprep.mubr.msk.bf16.mxu0 %vm7190_vm1, %v9467_v0  ;;  %6196 = vmatprep.mubr.msk.bf16.mxu1 %vm7190_vm1, %v9467_v0 }
  0xd3   : > { %6191 = vmatmul.mubr.msk.bf16.vlgmr.msra.gmra.mxu0 %vm835_vm4, %v480_v10  ;;  %6197 = vmatmul.mubr.msk.bf16.vlgmr.msra.gmra.mxu1 %vm835_vm4, %v480_v10 }
  0xdb   : > { %v528_v11 = vpop.f32.mrf.mxu0  ;;  %v571_v12 = vpop.f32.mrf.mxu1 }
  0xdd   : > { %v5916_v13 = vpop.f32.mrf.mxu0  ;;  %v5922_v14 = vpop.f32.mrf.mxu1 }
  0xdf   : > { %v531_v15 = vpop.f32.mrf.mxu0  ;;  %v574_v16 = vpop.f32.mrf.mxu1 }
  0xe1   : > { %v5917_v17 = vpop.f32.mrf.mxu0  ;;  %v5923_v18 = vpop.f32.mrf.mxu1 }
  0xe3   : > { %v614_v19 = vpop.f32.mrf.mxu0  ;;  %v657_v20 = vpop.f32.mrf.mxu1 }
  0xe5   : > { %v5928_v21 = vpop.f32.mrf.mxu0  ;;  %v5934_v22 = vpop.f32.mrf.mxu1 }
  0xe7   : > { %v617_v23 = vpop.f32.mrf.mxu0  ;;  %v660_v24 = vpop.f32.mrf.mxu1 }
  0xe9   : > { %v5929_v25 = vpop.f32.mrf.mxu0  ;;  %v5935_v26 = vpop.f32.mrf.mxu1 }
  0xeb   : > { %v700_v27 = vpop.f32.mrf.mxu0  ;;  %v743_v28 = vpop.f32.mrf.mxu1 }
  0xed   : > { %v5940_v29 = vpop.f32.mrf.mxu0  ;;  %v5946_v30 = vpop.f32.mrf.mxu1 }
  0xef   : > { %v703_v31 = vpop.f32.mrf.mxu0  ;;  %v746_v32 = vpop.f32.mrf.mxu1 }
  0xf1   : > { %v5941_v33 = vpop.f32.mrf.mxu0  ;;  %v5947_v34 = vpop.f32.mrf.mxu1 }
  0xf3   : > { %v786_v35 = vpop.f32.mrf.mxu0  ;;  %v829_v36 = vpop.f32.mrf.mxu1 }
  0xf5   : > { %v5952_v37 = vpop.f32.mrf.mxu0  ;;  %v5958_v38 = vpop.f32.mrf.mxu1 }
  0xf7   : > { %v789_v39 = vpop.f32.mrf.mxu0  ;;  %v832_v40 = vpop.f32.mrf.mxu1 }
  0xf9   : > { %v5953_v41 = vpop.f32.mrf.mxu0  ;;  %v5959_v42 = vpop.f32.mrf.mxu1 }
  0xfb   : > { %v876_v43 = vpop.f32.mrf.mxu0  ;;  %v919_v45 = vpop.f32.mrf.mxu1 }
  0xfc   : > { %v877_v44 = vadd.f32 %v876_v43, %v528_v11  ;;  %v920_v46 = vadd.f32 %v919_v45, %v571_v12 }
  0xfd   : > { %v5964_v47 = vpop.f32.mrf.mxu0  ;;  %v5970_v49 = vpop.f32.mrf.mxu1 }
  0xfe   : > { %v2795_v48 = vpack.c.bf16 %v877_v44, %v877_v44  ;;  %v2796_v50 = vpack.c.bf16 %v920_v46, %v920_v46 }
  0xff   : > { %v879_v51 = vpop.f32.mrf.mxu0  ;;  %v922_v53 = vpop.f32.mrf.mxu1 }
 0x100   : > { %v2830_v52 = vsel %vm2828_vm5, %v2795_v48, 0  ;;  %6552 = vmatprep.subr.msk.bf16.mxu0 %vm2828_vm5, %v2795_v48  ;;  %v2954_v54 = vsel %vm2828_vm5, %v2796_v50, 0  ;;  %6553 = vmatprep.subr.msk.bf16.mxu1 %vm2828_vm5, %v2796_v50 }
 0x101   : > { %v5965_v55 = vpop.f32.mrf.mxu0  ;;  %6201 = vmatpush3.bf16.msra.mxu0 %v2830_v52  ;;  %v5971_v56 = vpop.f32.mrf.mxu1  ;;  %6219 = vmatpush3.bf16.msra.mxu1 %v2954_v54 }
 0x103   : > { %v962_v57 = vpop.f32.mrf.mxu0  ;;  %v1005_v59 = vpop.f32.mrf.mxu1 }
 0x104   : > { %v963_v58 = vadd.f32 %v962_v57, %v614_v19  ;;  %v1006_v60 = vadd.f32 %v1005_v59, %v657_v20 }
 0x105   : > { %v5976_v61 = vpop.f32.mrf.mxu0  ;;  %v5982_v63 = vpop.f32.mrf.mxu1 }
 0x106   : > { %v7608_v62 = vpack.c.bf16 %v963_v58, %v963_v58  ;;  %v7610_v1 = vpack.c.bf16 %v1006_v60, %v1006_v60 }
 0x107   : > { %v965_v2 = vpop.f32.mrf.mxu0  ;;  %v1008_v3 = vpop.f32.mrf.mxu1 }
 0x108   : > { %6554 = vmatprep.subr.msk.bf16.mxu0 %vm2828_vm5, %v7608_v62  ;;  %6555 = vmatprep.subr.msk.bf16.mxu1 %vm2828_vm5, %v7610_v1 }
 0x109   : > { %v5977_v4 = vpop.f32.mrf.mxu0  ;;  %v5983_v5 = vpop.f32.mrf.mxu1 }
 0x10b   : > { %v1048_v6 = vpop.f32.mrf.mxu0  ;;  %v1091_v8 = vpop.f32.mrf.mxu1 }
 0x10c   : > { %v7616_v7 = vadd.f32 %v1048_v6, %v700_v27  ;;  %v7618_v9 = vadd.f32 %v1091_v8, %v743_v28 }
 0x10d   : > { %v5988_v10 = vpop.f32.mrf.mxu0  ;;  %v5994_v11 = vpop.f32.mrf.mxu1 }
 0x10f   : > { %v1051_v12 = vpop.f32.mrf.mxu0  ;;  %v1094_v13 = vpop.f32.mrf.mxu1 }
 0x111   : > { %v5989_v14 = vpop.f32.mrf.mxu0  ;;  %v5995_v15 = vpop.f32.mrf.mxu1 }
 0x113   : > { %v1134_v16 = vpop.f32.mrf.mxu0  ;;  %v1177_v18 = vpop.f32.mrf.mxu1 }
 0x114   : > { %v7620_v17 = vadd.f32 %v1134_v16, %v786_v35  ;;  %v7622_v19 = vadd.f32 %v1177_v18, %v829_v36 }
 0x115   : > { %v6000_v20 = vpop.f32.mrf.mxu0  ;;  %v6006_v21 = vpop.f32.mrf.mxu1 }
 0x117   : > { %v1137_v22 = vpop.f32.mrf.mxu0  ;;  %v1180_v23 = vpop.f32.mrf.mxu1 }
 0x119   : > { %v6001_v24 = vpop.f32.mrf.mxu0  ;;  %v6007_v25 = vpop.f32.mrf.mxu1 }
 0x11b   : > { %v1220_v26 = vpop.f32.mrf.mxu0  ;;  %v1260_v27 = vpop.f32.mrf.mxu1 }
 0x11d   : > { %v6012_v28 = vpop.f32.mrf.mxu0  ;;  %v6018_v29 = vpop.f32.mrf.mxu1 }
 0x11f   : > { %v1223_v30 = vpop.f32.mrf.mxu0  ;;  %v1263_v31 = vpop.f32.mrf.mxu1 }
 0x121   : > { %v6013_v32 = vpop.f32.mrf.mxu0  ;;  %v6019_v33 = vpop.f32.mrf.mxu1 }
 0x123   : > { %v1300_v34 = vpop.f32.mrf.mxu0  ;;  %v1340_v35 = vpop.f32.mrf.mxu1 }
 0x125   : > { %v6024_v37 = vpop.f32.mrf.mxu0  ;;  %v6030_v38 = vpop.f32.mrf.mxu1 }
 0x127   : > { %v1303_v36 = vpop.f32.mrf.mxu0  ;;  %v1343_v39 = vpop.f32.mrf.mxu1 }
 0x129   : > { %v6025_v40 = vpop.f32.mrf.mxu0  ;;  %v6031_v41 = vpop.f32.mrf.mxu1 }
 0x12b   : > { %v1380_v42 = vpop.f32.mrf.mxu0  ;;  %v1420_v43 = vpop.f32.mrf.mxu1 }
 0x12d   : > { %v6036_v44 = vpop.f32.mrf.mxu0  ;;  %v6042_v45 = vpop.f32.mrf.mxu1 }
 0x12f   : > { %v1383_v46 = vpop.f32.mrf.mxu0  ;;  %v1423_v47 = vpop.f32.mrf.mxu1 }
 0x131   : > { %v6037_v48 = vpop.f32.mrf.mxu0  ;;  %v6043_v49 = vpop.f32.mrf.mxu1 }
 0x133   : > { %v1460_v50 = vpop.f32.mrf.mxu0  ;;  %v1500_v51 = vpop.f32.mrf.mxu1 }
 0x135   : > { %v6048_v52 = vpop.f32.mrf.mxu0  ;;  %v6054_v53 = vpop.f32.mrf.mxu1 }
 0x137   : > { %v1463_v54 = vpop.f32.mrf.mxu0  ;;  %v1503_v55 = vpop.f32.mrf.mxu1 }
 0x139   : > { %v6049_v56 = vpop.f32.mrf.mxu0  ;;  %v6055_v57 = vpop.f32.mrf.mxu1 }
 0x13b   : > { %v1543_v58 = vpop.f32.mrf.mxu0  ;;  %v1583_v60 = vpop.f32.mrf.mxu1 }
 0x13c   : > { %v1544_v59 = vadd.f32 %v1543_v58, %v1220_v26  ;;  %v1584_v61 = vadd.f32 %v1583_v60, %v1260_v27 }
 0x13d   : > { %v6060_v63 = vpop.f32.mrf.mxu0  ;;  %v6066_v2 = vpop.f32.mrf.mxu1 }
 0x13e   : > { %v6572_v4 = vpack.i.bf16 %v1584_v61, %v1544_v59 }
 0x13f   : > { %v1546_v3 = vpop.f32.mrf.mxu0  ;;  %v1586_v5 = vpop.f32.mrf.mxu1 }
 0x140   : > { %6573 = vxpose.xlu0.b32.start.end [1/1] (short) %v6572_v4, 128 }
 0x141   : > { %v6061_v6 = vpop.f32.mrf.mxu0  ;;  %v6067_v8 = vpop.f32.mrf.mxu1 }
 0x142   : > { %v3078_v6 = vsel %vm2828_vm5, %v7608_v62, 0  ;;  %v3202_v8 = vsel %vm2828_vm5, %v7610_v1, 0 }
 0x143   : > { %v1623_v10 = vpop.f32.mrf.mxu0  ;;  %v1663_v12 = vpop.f32.mrf.mxu1 }
 0x144   : > { %v1624_v11 = vadd.f32 %v1623_v10, %v1300_v34  ;;  %v1664_v13 = vadd.f32 %v1663_v12, %v1340_v35  ;;  %v7636_v12 = vpack.c.bf16 %v7616_v7, %v7616_v7 }
 0x145   : > { %v6072_v14 = vpop.f32.mrf.mxu0  ;;  %v6078_v15 = vpop.f32.mrf.mxu1 }
 0x146   : > { %v6654_v18 = vpack.i.bf16 %v1664_v13, %v1624_v11  ;;  %v7640_v13 = vpack.c.bf16 %v7618_v9, %v7618_v9 }
 0x147   : > { %v1626_v16 = vpop.f32.mrf.mxu0  ;;  %v1666_v20 = vpop.f32.mrf.mxu1 }
 0x149   : > { %v6073_v21 = vpop.f32.mrf.mxu0  ;;  %v6079_v22 = vpop.f32.mrf.mxu1 }
 0x14b   : > { %v1703_v23 = vpop.f32.mrf.mxu0  ;;  %v1743_v25 = vpop.f32.mrf.mxu1 }
 0x14c   : > { %v1704_v24 = vadd.f32 %v1703_v23, %v1380_v42  ;;  %v1744_v26 = vadd.f32 %v1743_v25, %v1420_v43 }
 0x14d   : > { %v6084_v27 = vpop.f32.mrf.mxu0  ;;  %v6090_v28 = vpop.f32.mrf.mxu1 }
 0x14e   : > { %v6736_v30 = vpack.i.bf16 %v1744_v26, %v1704_v24 }
 0x14f   : > { %v1706_v29 = vpop.f32.mrf.mxu0  ;;  %v1746_v31 = vpop.f32.mrf.mxu1 }
 0x150   : > { %6737 = vxpose.xlu1.b32.start.end [1/1] (short) %v6736_v30, 128 }
 0x151   : > { %v6085_v32 = vpop.f32.mrf.mxu0  ;;  %v6091_v33 = vpop.f32.mrf.mxu1 }
 0x153   : > { %v1783_v34 = vpop.f32.mrf.mxu0  ;;  %v1823_v37 = vpop.f32.mrf.mxu1 }
 0x154   : > { %v1784_v35 = vadd.f32 %v1783_v34, %v1460_v50  ;;  %v1824_v38 = vadd.f32 %v1823_v37, %v1500_v51 }
 0x155   : > { %v6096_v36 = vpop.f32.mrf.mxu0  ;;  %v6102_v39 = vpop.f32.mrf.mxu1 }
 0x156   : > { %v6818_v40 = vpack.i.bf16 %v1824_v38, %v1784_v35 }
 0x157   : > { %v1786_v41 = vpop.f32.mrf.mxu0  ;;  %v1826_v44 = vpop.f32.mrf.mxu1 }
 0x159   : > { %v6097_v42 = vpop.f32.mrf.mxu0  ;;  %v6103_v45 = vpop.f32.mrf.mxu1 }
 0x15b   : > { %v7626_v51 = vpop.f32.mrf.mxu0  ;;  %v7628_v55 = vpop.f32.mrf.mxu1 }
 0x15d   : > { %v6108_v61 = vpop.f32.mrf.mxu0  ;;  %v6114_v63 = vpop.f32.mrf.mxu1 }
 0x15f   : > { %v1869_v4 = vpop.f32.mrf.mxu0  ;;  %v1909_v5 = vpop.f32.mrf.mxu1 }
 0x161   : > { %v6109_v14 = vpop.f32.mrf.mxu0  ;;  %v6115_v15 = vpop.f32.mrf.mxu1 }
 0x163   : > { %v7648_v62 = vpop.f32.mrf.mxu0  ;;  %v7650_v1 = vpop.f32.mrf.mxu1 }
 0x165   : > { %v6120_v24 = vpop.f32.mrf.mxu0  ;;  %v6126_v25 = vpop.f32.mrf.mxu1 }
 0x167   : > { %v1949_v30 = vpop.f32.mrf.mxu0  ;;  %v1989_v31 = vpop.f32.mrf.mxu1 }
 0x169   : > { %v6121_v37 = vpop.f32.mrf.mxu0  ;;  %v6127_v38 = vpop.f32.mrf.mxu1 }
 0x16b   : > { %v7658_v36 = vpop.f32.mrf.mxu0  ;;  %v7660_v39 = vpop.f32.mrf.mxu1 }
 0x17d   : > { %6655 = vxpose.xlu0.b32.start.end [1/1] (short) %v6654_v18, 128 }
 0x18d   : > { %6819 = vxpose.xlu1.b32.start.end [1/1] (short) %v6818_v40, 128 }
 0x1bc   : > { %v6574_v43 = vpop.trf.xlu0 }
 0x1bd   : > { %v6578_v46 = vunpack.i.h.bf16 %v6574_v43  ;;  %v6575_v47 = vunpack.i.l.bf16 %v6574_v43 }
 0x1c0   : > { %v6579_v48 = vpop.trf.xlu0 }
 0x1c1   : > { %v6583_v49 = vunpack.i.h.bf16 %v6579_v48  ;;  %v6580_v52 = vunpack.i.l.bf16 %v6579_v48  ;;  %v6132_v48 = vpop.f32.mrf.mxu0 }
 0x1c3   : > { %v2731_v53 = vpack.c.bf16 %v6580_v52, %v6575_v47  ;;  %v2739_v50 = vpack.c.bf16 %v6583_v49, %v6578_v46  ;;  %v6138_v49 = vpop.f32.mrf.mxu1 }
 0x1c4   : > { %v6584_v54 = vpop.trf.xlu0 }
 0x1c5   : > { %6202 = vmatprep.mubr.msk.bf16.mxu0 %vm2803_vm6, %v2731_v53  ;;  %6220 = vmatprep.mubr.msk.bf16.mxu1 %vm2803_vm6, %v2739_v50  ;;  %v6588_v56 = vunpack.i.h.bf16 %v6584_v54  ;;  %v6585_v57 = vunpack.i.l.bf16 %v6584_v54 }
 0x1c8   : > { %v6589_v58 = vpop.trf.xlu0 }
 0x1c9   : > { %v6593_v59 = vunpack.i.h.bf16 %v6589_v58  ;;  %v6590_v60 = vunpack.i.l.bf16 %v6589_v58 }
 0x1cb   : > { %v2732_v2 = vpack.c.bf16 %v6590_v60, %v6585_v57  ;;  %v2740_v3 = vpack.c.bf16 %v6593_v59, %v6588_v56  ;;  %v2029_v56 = vpop.f32.mrf.mxu0  ;;  %v2069_v57 = vpop.f32.mrf.mxu1 }
 0x1cc   : > { %v6594_v10 = vpop.trf.xlu0  ;;  %v6738_v11 = vpop.trf.xlu1 }
 0x1cd   : > { %6203 = vmatmul.mubr.msk.bf16.vlgmr.msra.gmra.mxu0 %vm2803_vm6, %v2732_v2  ;;  %6221 = vmatmul.mubr.msk.bf16.vlgmr.msra.gmra.mxu1 %vm2803_vm6, %v2740_v3  ;;  %v6598_v7 = vunpack.i.h.bf16 %v6594_v10  ;;  %v6595_v9 = vunpack.i.l.bf16 %v6594_v10  ;;  %v6742_v18 = vunpack.i.h.bf16 %v6738_v11  ;;  %v6739_v20 = vunpack.i.l.bf16 %v6738_v11  ;;  %v6133_v63 = vpop.f32.mrf.mxu0  ;;  %v6139_v2 = vpop.f32.mrf.mxu1 }
 0x1ce   : > { %6237 = vmatpush3.bf16.msra.mxu0 %v3078_v6  ;;  %6255 = vmatpush3.bf16.msra.mxu1 %v3202_v8 }
 0x1cf   : > { %6556 = vmatprep.subr.msk.bf16.mxu0 %vm2828_vm5, %v7636_v12  ;;  %6557 = vmatprep.subr.msk.bf16.mxu1 %vm2828_vm5, %v7640_v13  ;;  %v7668_v3 = vpop.f32.mrf.mxu0  ;;  %v7670_v4 = vpop.f32.mrf.mxu1 }
 0x1d0   : > { %v6599_v16 = vpop.trf.xlu0  ;;  %v6743_v21 = vpop.trf.xlu1 }
 0x1d1   : > { %v6603_v22 = vunpack.i.h.bf16 %v6599_v16  ;;  %v6600_v23 = vunpack.i.l.bf16 %v6599_v16  ;;  %v6747_v26 = vunpack.i.h.bf16 %v6743_v21  ;;  %v6744_v27 = vunpack.i.l.bf16 %v6743_v21  ;;  %v6150_v16 = vpop.f32.mrf.mxu1 }
 0x1d3   : > { %v2733_v28 = vpack.c.bf16 %v6600_v23, %v6595_v9  ;;  %v2741_v29 = vpack.c.bf16 %v6603_v22, %v6598_v7  ;;  %v7652_v34 = vpack.c.bf16 %v6744_v27, %v6739_v20  ;;  %v7654_v35 = vpack.c.bf16 %v6747_v26, %v6742_v18  ;;  %v6144_v9 = vpop.f32.mrf.mxu0  ;;  %v2149_v24 = vpop.f32.mrf.mxu1 }
 0x1d4   : > { %v6604_v32 = vpop.trf.xlu0  ;;  %v6748_v33 = vpop.trf.xlu1 }
 0x1d5   : > { %6206 = vmatprep.mubr.msk.bf16.mxu0 %vm2803_vm6, %v2733_v28  ;;  %6224 = vmatprep.mubr.msk.bf16.mxu1 %vm2803_vm6, %v2741_v29  ;;  %v6608_v40 = vunpack.i.h.bf16 %v6604_v32  ;;  %v6605_v41 = vunpack.i.l.bf16 %v6604_v32  ;;  %v6752_v42 = vunpack.i.h.bf16 %v6748_v33  ;;  %v6749_v45 = vunpack.i.l.bf16 %v6748_v33  ;;  %v2109_v23 = vpop.f32.mrf.mxu0  ;;  %v6151_v30 = vpop.f32.mrf.mxu1 }
 0x1d7   : > { %v6145_v29 = vpop.f32.mrf.mxu0  ;;  %v2229_v37 = vpop.f32.mrf.mxu1 }
 0x1d8   : > { %v6609_v44 = vpop.trf.xlu0  ;;  %v6753_v43 = vpop.trf.xlu1 }
 0x1d9   : > { %v6613_v46 = vunpack.i.h.bf16 %v6609_v44  ;;  %v6610_v47 = vunpack.i.l.bf16 %v6609_v44  ;;  %v6757_v52 = vunpack.i.h.bf16 %v6753_v43  ;;  %v6754_v53 = vunpack.i.l.bf16 %v6753_v43  ;;  %v2189_v33 = vpop.f32.mrf.mxu0  ;;  %v6162_v48 = vpop.f32.mrf.mxu1 }
 0x1db   : > { %v2734_v50 = vpack.c.bf16 %v6610_v47, %v6605_v41  ;;  %v2742_v54 = vpack.c.bf16 %v6613_v46, %v6608_v40  ;;  %v7662_v59 = vpack.c.bf16 %v6754_v53, %v6749_v45  ;;  %v7664_v60 = vpack.c.bf16 %v6757_v52, %v6752_v42  ;;  %v6156_v47 = vpop.f32.mrf.mxu0  ;;  %v2232_v56 = vpop.f32.mrf.mxu1 }
 0x1dc   : > { %v6614_v58 = vpop.trf.xlu0  ;;  %v6758_v61 = vpop.trf.xlu1  ;;  %v7679_v42 = vadd.f32 %v2189_v33, %v7626_v51  ;;  %v7682_v45 = vadd.f32 %v2229_v37, %v7628_v55 }
 0x1dd   : > { %6207 = vmatmul.mubr.msk.bf16.gmra.mxu0 %vm2803_vm6, %v2734_v50  ;;  %6225 = vmatmul.mubr.msk.bf16.gmra.mxu1 %vm2803_vm6, %v2742_v54  ;;  %v6618_v5 = vunpack.i.h.bf16 %v6614_v58  ;;  %v6615_v6 = vunpack.i.l.bf16 %v6614_v58  ;;  %v6762_v10 = vunpack.i.h.bf16 %v6758_v61  ;;  %v6759_v11 = vunpack.i.l.bf16 %v6758_v61  ;;  %v2192_v54 = vpop.f32.mrf.mxu0  ;;  %v6163_v63 = vpop.f32.mrf.mxu1 }
 0x1de   : > { %9573 = vst [vmem:[#allocation2_spill] sm:$0xff] %v7679_v42  ;;  %9574 = vst [vmem:[#allocation3_spill] sm:$0xff] %v7682_v45 }
 0x1df   : > { %v6157_v55 = vpop.f32.mrf.mxu0 }
 0x1e0   : > { %v6619_v8 = vpop.trf.xlu0  ;;  %v6763_v14 = vpop.trf.xlu1 }
 0x1e1   : > { %v6623_v15 = vunpack.i.h.bf16 %v6619_v8  ;;  %v6620_v7 = vunpack.i.l.bf16 %v6619_v8  ;;  %v6767_v18 = vunpack.i.h.bf16 %v6763_v14  ;;  %v6764_v20 = vunpack.i.l.bf16 %v6763_v14  ;;  %v2309_v8 = vpop.f32.mrf.mxu1 }
 0x1e2   : > { %v7694_v9 = vadd.f32 %v2309_v8, %v7650_v1 }
 0x1e3   : > { %v2735_v21 = vpack.c.bf16 %v6620_v7, %v6615_v6  ;;  %v2743_v22 = vpack.c.bf16 %v6623_v15, %v6618_v5  ;;  %v7672_v27 = vpack.c.bf16 %v6764_v20, %v6759_v11  ;;  %v7674_v28 = vpack.c.bf16 %v6767_v18, %v6762_v10  ;;  %v2269_v6 = vpop.f32.mrf.mxu0 }
 0x1e4   : > { %v6624_v25 = vpop.trf.xlu0  ;;  %v6768_v26 = vpop.trf.xlu1  ;;  %v7691_v7 = vadd.f32 %v2269_v6, %v7648_v62  ;;  %9576 = vst [vmem:[#allocation5_spill] sm:$0xff] %v7694_v9 }
 0x1e5   : > { %6210 = vmatprep.mubr.msk.bf16.mxu0 %vm2803_vm6, %v2735_v21  ;;  %6228 = vmatprep.mubr.msk.bf16.mxu1 %vm2803_vm6, %v2743_v22  ;;  %v6628_v31 = vunpack.i.h.bf16 %v6624_v25  ;;  %v6625_v32 = vunpack.i.l.bf16 %v6624_v25  ;;  %v6772_v40 = vunpack.i.h.bf16 %v6768_v26  ;;  %v6769_v41 = vunpack.i.l.bf16 %v6768_v26  ;;  %v6168_v20 = vpop.f32.mrf.mxu0  ;;  %v6174_v21 = vpop.f32.mrf.mxu1 }
 0x1e6   : > { %9575 = vst [vmem:[#allocation4_spill] sm:$0xff] %v7691_v7 }
 0x1e7   : > { %v2272_v26 = vpop.f32.mrf.mxu0  ;;  %v2312_v29 = vpop.f32.mrf.mxu1 }
 0x1e8   : > { %v6629_v38 = vpop.trf.xlu0  ;;  %v6773_v44 = vpop.trf.xlu1 }
 0x1e9   : > { %v6633_v43 = vunpack.i.h.bf16 %v6629_v38  ;;  %v6630_v46 = vunpack.i.l.bf16 %v6629_v38  ;;  %v6777_v49 = vunpack.i.h.bf16 %v6773_v44  ;;  %v6774_v52 = vunpack.i.l.bf16 %v6773_v44  ;;  %v6169_v62 = vpop.f32.mrf.mxu0  ;;  %v6175_v1 = vpop.f32.mrf.mxu1 }
 0x1eb   : > { %v2736_v53 = vpack.c.bf16 %v6630_v46, %v6625_v32  ;;  %v2744_v50 = vpack.c.bf16 %v6633_v43, %v6628_v31  ;;  %v7684_v58 = vpack.c.bf16 %v6774_v52, %v6769_v41  ;;  %v7686_v61 = vpack.c.bf16 %v6777_v49, %v6772_v40  ;;  %v2349_v40 = vpop.f32.mrf.mxu0  ;;  %v2389_v41 = vpop.f32.mrf.mxu1 }
 0x1ec   : > { %v6634_v57 = vpop.trf.xlu0  ;;  %v6778_v51 = vpop.trf.xlu1  ;;  %v7703_v48 = vadd.f32 %v2349_v40, %v7658_v36  ;;  %v7706_v49 = vadd.f32 %v2389_v41, %v7660_v39 }
 0x1ed   : > { %6211 = vmatmul.mubr.msk.bf16.gmra.mxu0 %vm2803_vm6, %v2736_v53  ;;  %6229 = vmatmul.mubr.msk.bf16.gmra.mxu1 %vm2803_vm6, %v2744_v50  ;;  %v6638_v2 = vunpack.i.h.bf16 %v6634_v57  ;;  %v6635_v5 = vunpack.i.l.bf16 %v6634_v57  ;;  %v6782_v11 = vunpack.i.h.bf16 %v6778_v51  ;;  %v6779_v14 = vunpack.i.l.bf16 %v6778_v51  ;;  %v6180_v50 = vpop.f32.mrf.mxu0  ;;  %v6186_v54 = vpop.f32.mrf.mxu1 }
 0x1ee   : > { %9577 = vst [vmem:[#allocation6_spill] sm:$0xff] %v7703_v48  ;;  %9578 = vst [vmem:[#allocation7_spill] sm:$0xff] %v7706_v49 }
 0x1ef   : > { %v2352_v63 = vpop.f32.mrf.mxu0 }
 0x1f0   : > { %v6639_v10 = vpop.trf.xlu0  ;;  %v6783_v15 = vpop.trf.xlu1 }
 0x1f1   : > { %v6643_v16 = vunpack.i.h.bf16 %v6639_v10  ;;  %v6640_v18 = vunpack.i.l.bf16 %v6639_v10  ;;  %v6787_v22 = vunpack.i.h.bf16 %v6783_v15  ;;  %v6784_v23 = vunpack.i.l.bf16 %v6783_v15  ;;  %v6181_v39 = vpop.f32.mrf.mxu0 }
 0x1f2   : > { %v3450_v39 = vsel %vm2828_vm5, %v7640_v13, 0 }
 0x1f3   : > { %v2737_v24 = vpack.c.bf16 %v6640_v18, %v6635_v5  ;;  %v2745_v25 = vpack.c.bf16 %v6643_v16, %v6638_v2  ;;  %v7696_v32 = vpack.c.bf16 %v6784_v23, %v6779_v14  ;;  %v7698_v33 = vpack.c.bf16 %v6787_v22, %v6782_v11  ;;  %v2392_v2 = vpop.f32.mrf.mxu1  ;;  %v2429_v15 = vpop.f32.mrf.mxu0 }
 0x1f4   : > { %v6644_v30 = vpop.trf.xlu0  ;;  %v6788_v31 = vpop.trf.xlu1  ;;  %v7715_v23 = vadd.f32 %v2429_v15, %v7668_v3 }
 0x1f5   : > { %6214 = vmatprep.mubr.msk.bf16.mxu0 %vm2803_vm6, %v2737_v24  ;;  %6232 = vmatprep.mubr.msk.bf16.mxu1 %vm2803_vm6, %v2745_v25  ;;  %v6648_v37 = vunpack.i.h.bf16 %v6644_v30  ;;  %v6645_v38 = vunpack.i.l.bf16 %v6644_v30  ;;  %v6792_v43 = vunpack.i.h.bf16 %v6788_v31  ;;  %v6789_v46 = vunpack.i.l.bf16 %v6788_v31  ;;  %v6187_v10 = vpop.f32.mrf.mxu1  ;;  %v6192_v29 = vpop.f32.mrf.mxu0 }
 0x1f6   : > { %9579 = vst [vmem:[#allocation8_spill] sm:$0xff] %v7715_v23 }
 0x1f7   : > { %v2469_v16 = vpop.f32.mrf.mxu1 }
 0x1f8   : > { %v6649_v44 = vpop.trf.xlu0  ;;  %v6793_v47 = vpop.trf.xlu1  ;;  %v7718_v24 = vadd.f32 %v2469_v16, %v7670_v4  ;;  %v7736_v16 = vpack.c.bf16 %v7620_v17, %v7620_v17 }
 0x1f9   : > { %v6653_v52 = vunpack.i.h.bf16 %v6649_v44  ;;  %v6650_v53 = vunpack.i.l.bf16 %v6649_v44  ;;  %v6797_v56 = vunpack.i.h.bf16 %v6793_v47  ;;  %v6794_v57 = vunpack.i.l.bf16 %v6793_v47  ;;  %v6198_v30 = vpop.f32.mrf.mxu1 }
 0x1fa   : > { %9580 = vst [vmem:[#allocation9_spill] sm:$0xff] %v7718_v24 }
 0x1fb   : > { %v2738_v51 = vpack.c.bf16 %v6650_v53, %v6645_v38  ;;  %v2746_v55 = vpack.c.bf16 %v6653_v52, %v6648_v37  ;;  %v7708_v6 = vpack.c.bf16 %v6794_v57, %v6789_v46  ;;  %v7710_v8 = vpack.c.bf16 %v6797_v56, %v6792_v43  ;;  %v2432_v38 = vpop.f32.mrf.mxu0  ;;  %v2472_v40 = vpop.f32.mrf.mxu1 }
 0x1fc   : > { %v6656_v5 = vpop.trf.xlu0  ;;  %v6798_v36 = vpop.trf.xlu1 }
 0x1fd   : > { %6215 = vmatmul.mubr.msk.bf16.gmra.mxu0 %vm2803_vm6, %v2738_v51  ;;  %6233 = vmatmul.mubr.msk.bf16.gmra.mxu1 %vm2803_vm6, %v2746_v55  ;;  %v6660_v11 = vunpack.i.h.bf16 %v6656_v5  ;;  %v6657_v14 = vunpack.i.l.bf16 %v6656_v5  ;;  %v6802_v20 = vunpack.i.h.bf16 %v6798_v36  ;;  %v6799_v21 = vunpack.i.l.bf16 %v6798_v36  ;;  %v6193_v3 = vpop.f32.mrf.mxu0  ;;  %v6199_v4 = vpop.f32.mrf.mxu1 }
 0x1fe   : > { %v3326_v36 = vsel %vm2828_vm5, %v7636_v12, 0 }
 0x200   : > { %v6661_v18 = vpop.trf.xlu0  ;;  %v6803_v22 = vpop.trf.xlu1 }
 0x201   : > { %v6665_v25 = vunpack.i.h.bf16 %v6661_v18  ;;  %v6662_v26 = vunpack.i.l.bf16 %v6661_v18  ;;  %v6807_v31 = vunpack.i.h.bf16 %v6803_v22  ;;  %v6804_v62 = vunpack.i.l.bf16 %v6803_v22 }
 0x202   : > { %v7740_v18 = vpack.c.bf16 %v7622_v19, %v7622_v19 }
 0x203   : > { %v2747_v1 = vpack.c.bf16 %v6662_v26, %v6657_v14  ;;  %v2755_v37 = vpack.c.bf16 %v6665_v25, %v6660_v11  ;;  %v7720_v43 = vpack.c.bf16 %v6804_v62, %v6799_v21  ;;  %v7722_v46 = vpack.c.bf16 %v6807_v31, %v6802_v20 }
 0x204   : > { %v6666_v41 = vpop.trf.xlu0  ;;  %v6808_v44 = vpop.trf.xlu1 }
 0x205   : > { %6238 = vmatprep.mubr.msk.bf16.mxu0 %vm2803_vm6, %v2747_v1  ;;  %6256 = vmatprep.mubr.msk.bf16.mxu1 %vm2803_vm6, %v2755_v37  ;;  %v6670_v47 = vunpack.i.h.bf16 %v6666_v41  ;;  %v6667_v52 = vunpack.i.l.bf16 %v6666_v41  ;;  %v6812_v50 = vunpack.i.h.bf16 %v6808_v44  ;;  %v6809_v54 = vunpack.i.l.bf16 %v6808_v44 }
 0x208   : > { %v6671_v53 = vpop.trf.xlu0  ;;  %v6813_v56 = vpop.trf.xlu1 }
 0x209   : > { %v6675_v57 = vunpack.i.h.bf16 %v6671_v53  ;;  %v6672_v51 = vunpack.i.l.bf16 %v6671_v53  ;;  %v6817_v55 = vunpack.i.h.bf16 %v6813_v56  ;;  %v6814_v63 = vunpack.i.l.bf16 %v6813_v56 }
 0x20b   : > { %v2748_v2 = vpack.c.bf16 %v6672_v51, %v6667_v52  ;;  %v2756_v5 = vpack.c.bf16 %v6675_v57, %v6670_v47  ;;  %v7730_v11 = vpack.c.bf16 %v6814_v63, %v6809_v54  ;;  %v7732_v14 = vpack.c.bf16 %v6817_v55, %v6812_v50 }
 0x20c   : > { %v6676_v10 = vpop.trf.xlu0  ;;  %v6820_v15 = vpop.trf.xlu1 }
 0x20d   : > { %6239 = vmatmul.mubr.msk.bf16.vlgmr.msra.gmra.mxu0 %vm2803_vm6, %v2748_v2  ;;  %6257 = vmatmul.mubr.msk.bf16.vlgmr.msra.gmra.mxu1 %vm2803_vm6, %v2756_v5  ;;  %v6680_v12 = vunpack.i.h.bf16 %v6676_v10  ;;  %v6677_v13 = vunpack.i.l.bf16 %v6676_v10  ;;  %v6824_v20 = vunpack.i.h.bf16 %v6820_v15  ;;  %v6821_v21 = vunpack.i.l.bf16 %v6820_v15 }
 0x20e   : > { %6273 = vmatpush3.bf16.msra.mxu0 %v3326_v36  ;;  %6291 = vmatpush3.bf16.msra.mxu1 %v3450_v39 }
 0x20f   : > { %6558 = vmatprep.subr.msk.bf16.mxu0 %vm2828_vm5, %v7736_v16  ;;  %6559 = vmatprep.subr.msk.bf16.mxu1 %vm2828_vm5, %v7740_v18 }
 0x210   : > { %v6681_v17 = vpop.trf.xlu0  ;;  %v6825_v22 = vpop.trf.xlu1 }
 0x211   : > { %v6685_v19 = vunpack.i.h.bf16 %v6681_v17  ;;  %v6682_v25 = vunpack.i.l.bf16 %v6681_v17  ;;  %v6829_v26 = vunpack.i.h.bf16 %v6825_v22  ;;  %v6826_v29 = vunpack.i.l.bf16 %v6825_v22 }
 0x213   : > { %v2749_v30 = vpack.c.bf16 %v6682_v25, %v6677_v13  ;;  %v2757_v31 = vpack.c.bf16 %v6685_v19, %v6680_v12  ;;  %v7748_v37 = vpack.c.bf16 %v6826_v29, %v6821_v21  ;;  %v7750_v38 = vpack.c.bf16 %v6829_v26, %v6824_v20 }
 0x214   : > { %v6686_v62 = vpop.trf.xlu0  ;;  %v6830_v1 = vpop.trf.xlu1 }
 0x215   : > { %6242 = vmatprep.mubr.msk.bf16.mxu0 %vm2803_vm6, %v2749_v30  ;;  %6260 = vmatprep.mubr.msk.bf16.mxu1 %vm2803_vm6, %v2757_v31  ;;  %v6690_v40 = vunpack.i.h.bf16 %v6686_v62  ;;  %v6687_v41 = vunpack.i.l.bf16 %v6686_v62  ;;  %v6834_v3 = vunpack.i.h.bf16 %v6830_v1  ;;  %v6831_v4 = vunpack.i.l.bf16 %v6830_v1 }
 0x218   : > { %v6691_v44 = vpop.trf.xlu0  ;;  %v6835_v47 = vpop.trf.xlu1 }
 0x219   : > { %v6695_v52 = vunpack.i.h.bf16 %v6691_v44  ;;  %v6692_v53 = vunpack.i.l.bf16 %v6691_v44  ;;  %v6839_v50 = vunpack.i.h.bf16 %v6835_v47  ;;  %v6836_v54 = vunpack.i.l.bf16 %v6835_v47 }
 0x21b   : > { %v2750_v56 = vpack.c.bf16 %v6692_v53, %v6687_v41  ;;  %v2758_v57 = vpack.c.bf16 %v6695_v52, %v6690_v40  ;;  %v7754_v55 = vpack.c.bf16 %v6836_v54, %v6831_v4  ;;  %v7756_v63 = vpack.c.bf16 %v6839_v50, %v6834_v3 }
 0x21c   : > { %v6696_v51 = vpop.trf.xlu0  ;;  %v6840_v2 = vpop.trf.xlu1 }
 0x21d   : > { %6243 = vmatmul.mubr.msk.bf16.gmra.mxu0 %vm2803_vm6, %v2750_v56  ;;  %6261 = vmatmul.mubr.msk.bf16.gmra.mxu1 %vm2803_vm6, %v2758_v57  ;;  %v6700_v5 = vunpack.i.h.bf16 %v6696_v51  ;;  %v6697_v36 = vunpack.i.l.bf16 %v6696_v51  ;;  %v6844_v10 = vunpack.i.h.bf16 %v6840_v2  ;;  %v6841_v15 = vunpack.i.l.bf16 %v6840_v2 }
 0x220   : > { %v6701_v39 = vpop.trf.xlu0  ;;  %v6845_v12 = vpop.trf.xlu1 }
 0x221   : > { %v6705_v13 = vunpack.i.h.bf16 %v6701_v39  ;;  %v6702_v17 = vunpack.i.l.bf16 %v6701_v39  ;;  %v6849_v20 = vunpack.i.h.bf16 %v6845_v12  ;;  %v6846_v21 = vunpack.i.l.bf16 %v6845_v12 }
 0x223   : > { %v2751_v22 = vpack.c.bf16 %v6702_v17, %v6697_v36  ;;  %v2759_v19 = vpack.c.bf16 %v6705_v13, %v6700_v5  ;;  %v7760_v29 = vpack.c.bf16 %v6846_v21, %v6841_v15  ;;  %v7762_v30 = vpack.c.bf16 %v6849_v20, %v6844_v10 }
 0x224   : > { %v6706_v25 = vpop.trf.xlu0  ;;  %v6850_v26 = vpop.trf.xlu1 }
 0x225   : > { %6246 = vmatprep.mubr.msk.bf16.mxu0 %vm2803_vm6, %v2751_v22  ;;  %6264 = vmatprep.mubr.msk.bf16.mxu1 %vm2803_vm6, %v2759_v19  ;;  %v6710_v31 = vunpack.i.h.bf16 %v6706_v25  ;;  %v6707_v62 = vunpack.i.l.bf16 %v6706_v25  ;;  %v6854_v40 = vunpack.i.h.bf16 %v6850_v26  ;;  %v6851_v41 = vunpack.i.l.bf16 %v6850_v26 }
 0x228   : > { %v6711_v1 = vpop.trf.xlu0  ;;  %v6855_v44 = vpop.trf.xlu1 }
 0x229   : > { %v6715_v3 = vunpack.i.h.bf16 %v6711_v1  ;;  %v6712_v4 = vunpack.i.l.bf16 %v6711_v1  ;;  %v6859_v47 = vunpack.i.h.bf16 %v6855_v44  ;;  %v6856_v52 = vunpack.i.l.bf16 %v6855_v44 }
 0x22b   : > { %v2752_v53 = vpack.c.bf16 %v6712_v4, %v6707_v62  ;;  %v2760_v50 = vpack.c.bf16 %v6715_v3, %v6710_v31  ;;  %v7766_v56 = vpack.c.bf16 %v6856_v52, %v6851_v41  ;;  %v7768_v57 = vpack.c.bf16 %v6859_v47, %v6854_v40 }
 0x22c   : > { %v6716_v54 = vpop.trf.xlu0  ;;  %v7770_v51 = vpop.trf.xlu1  ;;  %v3574_v3 = vsel %vm2828_vm5, %v7736_v16, 0  ;;  %v3698_v4 = vsel %vm2828_vm5, %v7740_v18, 0 }
 0x22d   : > { %6247 = vmatmul.mubr.msk.bf16.gmra.mxu0 %vm2803_vm6, %v2752_v53  ;;  %6265 = vmatmul.mubr.msk.bf16.gmra.mxu1 %vm2803_vm6, %v2760_v50  ;;  %v6720_v2 = vunpack.i.h.bf16 %v6716_v54  ;;  %v6717_v5 = vunpack.i.l.bf16 %v6716_v54 }
 0x230   : > { %v6721_v36 = vpop.trf.xlu0  ;;  %v6865_v39 = vpop.trf.xlu1 }
 0x231   : > { %v6725_v10 = vunpack.i.h.bf16 %v6721_v36  ;;  %v6722_v15 = vunpack.i.l.bf16 %v6721_v36 }
 0x233   : > { %v2753_v12 = vpack.c.bf16 %v6722_v15, %v6717_v5  ;;  %v2761_v13 = vpack.c.bf16 %v6725_v10, %v6720_v2 }
 0x234   : > { %v6726_v17 = vpop.trf.xlu0  ;;  %v7774_v20 = vpop.trf.xlu1 }
 0x235   : > { %6250 = vmatprep.mubr.msk.bf16.mxu0 %vm2803_vm6, %v2753_v12  ;;  %6268 = vmatprep.mubr.msk.bf16.mxu1 %vm2803_vm6, %v2761_v13  ;;  %v6730_v21 = vunpack.i.h.bf16 %v6726_v17  ;;  %v6727_v22 = vunpack.i.l.bf16 %v6726_v17 }
 0x238   : > { %v6731_v19 = vpop.trf.xlu0  ;;  %v6875_v25 = vpop.trf.xlu1 }
 0x239   : > { %v6735_v26 = vunpack.i.h.bf16 %v6731_v19  ;;  %v6732_v31 = vunpack.i.l.bf16 %v6731_v19 }
 0x23b   : > { %v2754_v62 = vpack.c.bf16 %v6732_v31, %v6727_v22  ;;  %v2762_v1 = vpack.c.bf16 %v6735_v26, %v6730_v21 }
 0x23c   : > { %v6880_v40 = vpop.trf.xlu1 }
 0x23d   : > { %6251 = vmatmul.mubr.msk.bf16.gmra.mxu0 %vm2803_vm6, %v2754_v62  ;;  %6269 = vmatmul.mubr.msk.bf16.gmra.mxu1 %vm2803_vm6, %v2762_v1 }
 0x23e   : > { %6274 = vmatprep.mubr.msk.bf16.mxu0 %vm2803_vm6, %v7652_v34  ;;  %6292 = vmatprep.mubr.msk.bf16.mxu1 %vm2803_vm6, %v7654_v35  ;;  %v6864_v35 = vunpack.i.h.bf16 %v7770_v51 }
 0x240   : > { %v6885_v41 = vpop.trf.xlu1 }
 0x244   : > { %v6890_v44 = vpop.trf.xlu1 }
 0x245   : > { %6275 = vmatmul.mubr.msk.bf16.vlgmr.msra.gmra.mxu0 %vm2803_vm6, %v7662_v59  ;;  %6293 = vmatmul.mubr.msk.bf16.vlgmr.msra.gmra.mxu1 %vm2803_vm6, %v7664_v60  ;;  %v6861_v59 = vunpack.i.l.bf16 %v7770_v51  ;;  %v6869_v60 = vunpack.i.h.bf16 %v6865_v39 }
 0x246   : > { %6309 = vmatpush3.bf16.msra.mxu0 %v3574_v3  ;;  %6327 = vmatpush3.bf16.msra.mxu1 %v3698_v4 }
 0x247   : > { %6278 = vmatprep.mubr.msk.bf16.mxu0 %vm2803_vm6, %v7672_v27  ;;  %6296 = vmatprep.mubr.msk.bf16.mxu1 %vm2803_vm6, %v7674_v28  ;;  %v6866_v27 = vunpack.i.l.bf16 %v6865_v39 }
 0x248   : > { %v6895_v34 = vpop.trf.xlu1  ;;  %6344 = vmatprep.subr.bf16.mxu0 %v9467_v0  ;;  %6364 = vmatprep.subr.bf16.mxu1 %v9467_v0 }
 0x249   : > { %v2783_v28 = vpack.c.bf16 %v6866_v27, %v6861_v59 }
 0x24d   : > { %6279 = vmatmul.mubr.msk.bf16.gmra.mxu0 %vm2803_vm6, %v7684_v58  ;;  %6297 = vmatmul.mubr.msk.bf16.gmra.mxu1 %vm2803_vm6, %v7686_v61  ;;  %v2791_v58 = vpack.c.bf16 %v6869_v60, %v6864_v35  ;;  %v6874_v61 = vunpack.i.h.bf16 %v7774_v20 }
 0x24e   : > { %6282 = vmatprep.mubr.msk.bf16.mxu0 %vm2803_vm6, %v7696_v32  ;;  %6300 = vmatprep.mubr.msk.bf16.mxu1 %vm2803_vm6, %v7698_v33  ;;  %v6871_v32 = vunpack.i.l.bf16 %v7774_v20  ;;  %v6879_v33 = vunpack.i.h.bf16 %v6875_v25 }
 0x250   : > { %v2792_v16 = vpack.c.bf16 %v6879_v33, %v6874_v61 }
 0x255   : > { %6283 = vmatmul.mubr.msk.bf16.gmra.mxu0 %vm2803_vm6, %v7708_v6  ;;  %6301 = vmatmul.mubr.msk.bf16.gmra.mxu1 %vm2803_vm6, %v7710_v8  ;;  %v6876_v6 = vunpack.i.l.bf16 %v6875_v25  ;;  %v6884_v8 = vunpack.i.h.bf16 %v6880_v40 }
 0x256   : > { %6286 = vmatprep.mubr.msk.bf16.mxu0 %vm2803_vm6, %v7720_v43  ;;  %6304 = vmatprep.mubr.msk.bf16.mxu1 %vm2803_vm6, %v7722_v46  ;;  %v6881_v43 = vunpack.i.l.bf16 %v6880_v40  ;;  %v6889_v46 = vunpack.i.h.bf16 %v6885_v41 }
 0x25d   : > { %6287 = vmatmul.mubr.msk.bf16.gmra.mxu0 %vm2803_vm6, %v7730_v11  ;;  %6305 = vmatmul.mubr.msk.bf16.gmra.mxu1 %vm2803_vm6, %v7732_v14  ;;  %v6886_v11 = vunpack.i.l.bf16 %v6885_v41  ;;  %v2784_v14 = vpack.c.bf16 %v6876_v6, %v6871_v32 }
 0x25e   : > { %6310 = vmatprep.mubr.msk.bf16.mxu0 %vm2803_vm6, %v7748_v37  ;;  %6328 = vmatprep.mubr.msk.bf16.mxu1 %vm2803_vm6, %v7750_v38  ;;  %v2793_v37 = vpack.c.bf16 %v6889_v46, %v6884_v8  ;;  %v6894_v38 = vunpack.i.h.bf16 %v6890_v44 }
 0x25f   : > { %v2785_v18 = vpack.c.bf16 %v6886_v11, %v6881_v43 }
 0x265   : > { %6311 = vmatmul.mubr.msk.bf16.vlgmr.msra.gmra.mxu0 %vm2803_vm6, %v7754_v55  ;;  %6329 = vmatmul.mubr.msk.bf16.vlgmr.msra.gmra.mxu1 %vm2803_vm6, %v7756_v63  ;;  %v6891_v55 = vunpack.i.l.bf16 %v6890_v44  ;;  %v6899_v63 = vunpack.i.h.bf16 %v6895_v34 }
 0x266   : > { %6314 = vmatprep.mubr.msk.bf16.mxu0 %vm2803_vm6, %v7760_v29  ;;  %6332 = vmatprep.mubr.msk.bf16.mxu1 %vm2803_vm6, %v7762_v30  ;;  %v6896_v29 = vunpack.i.l.bf16 %v6895_v34 }
 0x267   : > { %v2794_v47 = vpack.c.bf16 %v6899_v63, %v6894_v38 }
 0x268   : > { %v2786_v30 = vpack.c.bf16 %v6896_v29, %v6891_v55 }
 0x26d   : > { %6315 = vmatmul.mubr.msk.bf16.gmra.mxu0 %vm2803_vm6, %v7766_v56  ;;  %6333 = vmatmul.mubr.msk.bf16.gmra.mxu1 %vm2803_vm6, %v7768_v57 }
 0x26e   : > { %6318 = vmatprep.mubr.msk.bf16.mxu0 %vm2803_vm6, %v2783_v28  ;;  %6336 = vmatprep.mubr.msk.bf16.mxu1 %vm2803_vm6, %v2791_v58 }
 0x275   : > { %6319 = vmatmul.mubr.msk.bf16.gmra.mxu0 %vm2803_vm6, %v2784_v14  ;;  %6337 = vmatmul.mubr.msk.bf16.gmra.mxu1 %vm2803_vm6, %v2792_v16 }
 0x276   : > { %6322 = vmatprep.mubr.msk.bf16.mxu0 %vm2803_vm6, %v2785_v18  ;;  %6340 = vmatprep.mubr.msk.bf16.mxu1 %vm2803_vm6, %v2793_v37 }
 0x27d   : > { %6323 = vmatmul.mubr.msk.bf16.gmra.mxu0 %vm2803_vm6, %v2786_v30  ;;  %6341 = vmatmul.mubr.msk.bf16.gmra.mxu1 %vm2803_vm6, %v2794_v47 }
 0x27e   : > { %6360 = vmatprep.mubr.msk.bf16.mxu0 %vm7190_vm1, %v9467_v0  ;;  %6380 = vmatprep.mubr.msk.bf16.mxu1 %vm7190_vm1, %v9467_v0 }
 0x28d   : > { %v7850_v52 = vpop.f32.mrf.mxu0  ;;  %v7852_v53 = vpop.f32.mrf.mxu1 }
 0x28f   : > { %v7854_v50 = vpop.f32.mrf.mxu0  ;;  %v7856_v54 = vpop.f32.mrf.mxu1 }
 0x291   : > { %v7858_v56 = vpop.f32.mrf.mxu0  ;;  %v7860_v57 = vpop.f32.mrf.mxu1 }
 0x293   : > { %v7862_v51 = vpop.f32.mrf.mxu0  ;;  %v7864_v2 = vpop.f32.mrf.mxu1 }
 0x294   : > { %v3797_v39 = vmax.f32 %v7854_v50, %v7862_v51  ;;  %v3818_v10 = vmax.f32 %v7856_v54, %v7864_v2 }
 0x296   : > { %v3798_v13 = vmax.f32 %v3797_v39, %v7850_v52  ;;  %v3819_v17 = vmax.f32 %v3818_v10, %v7852_v53 }
 0x298   : > { %v3799_v22 = vmax.f32 %v3798_v13, %v7858_v56  ;;  %v3820_v19 = vmax.f32 %v3819_v17, %v7860_v57 }
 0x29d   : > { %v7866_v5 = vpop.f32.mrf.mxu0  ;;  %v7868_v36 = vpop.f32.mrf.mxu1 }
 0x29f   : > { %v7874_v15 = vpop.f32.mrf.mxu0  ;;  %v7876_v12 = vpop.f32.mrf.mxu1 }
 0x2a0   : > { %v3800_v31 = vmax.f32 %v3799_v22, %v7874_v15  ;;  %v3821_v62 = vmax.f32 %v3820_v19, %v7876_v12 }
 0x2a1   : > { %v7880_v20 = vpop.f32.mrf.mxu0  ;;  %v7882_v21 = vpop.f32.mrf.mxu1 }
 0x2a3   : > { %v7886_v25 = vpop.f32.mrf.mxu0  ;;  %v7888_v26 = vpop.f32.mrf.mxu1 }
 0x2a4   : > { %v3801_v1 = vmax.f32 %v3800_v31, %v7886_v25  ;;  %v3822_v40 = vmax.f32 %v3821_v62, %v7888_v26 }
 0x2a6   : > { %v3802_v34 = vmax.f32 %v3801_v1, %v7866_v5  ;;  %v3823_v35 = vmax.f32 %v3822_v40, %v7868_v36 }
 0x2a8   : > { %v3803_v27 = vmax.f32 %v3802_v34, %v7880_v20  ;;  %v3824_v28 = vmax.f32 %v3823_v35, %v7882_v21 }
 0x2ad   : > { %v7894_v41 = vpop.f32.mrf.mxu0  ;;  %v7896_v44 = vpop.f32.mrf.mxu1 }
 0x2af   : > { %v7898_v3 = vpop.f32.mrf.mxu0  ;;  %v7900_v4 = vpop.f32.mrf.mxu1 }
 0x2b0   : > { %v3804_v32 = vmax.f32 %v3803_v27, %v7898_v3  ;;  %v3825_v33 = vmax.f32 %v3824_v28, %v7900_v4 }
 0x2b1   : > { %v7904_v59 = vpop.f32.mrf.mxu0  ;;  %v7906_v60 = vpop.f32.mrf.mxu1 }
 0x2b3   : > { %v7910_v58 = vpop.f32.mrf.mxu0  ;;  %v7912_v61 = vpop.f32.mrf.mxu1 }
 0x2b4   : > { %v3805_v6 = vmax.f32 %v3804_v32, %v7910_v58  ;;  %v3826_v8 = vmax.f32 %v3825_v33, %v7912_v61 }
 0x2b6   : > { %v3806_v43 = vmax.f32 %v3805_v6, %v7894_v41  ;;  %v3827_v46 = vmax.f32 %v3826_v8, %v7896_v44 }
 0x2b8   : > { %v3807_v37 = vmax.f32 %v3806_v43, %v7904_v59  ;;  %v3828_v38 = vmax.f32 %v3827_v46, %v7906_v60 }
 0x2bd   : > { %v7920_v11 = vpop.f32.mrf.mxu0  ;;  %v7922_v14 = vpop.f32.mrf.mxu1 }
 0x2bf   : > { %v7924_v16 = vpop.f32.mrf.mxu0  ;;  %v7926_v18 = vpop.f32.mrf.mxu1 }
 0x2c0   : > { %v3808_v29 = vmax.f32 %v3807_v37, %v7924_v16  ;;  %v3829_v30 = vmax.f32 %v3828_v38, %v7926_v18 }
 0x2c1   : > { %v7930_v55 = vpop.f32.mrf.mxu0  ;;  %v7932_v63 = vpop.f32.mrf.mxu1 }
 0x2c3   : > { %v7936_v47 = vpop.f32.mrf.mxu0  ;;  %v7938_v39 = vpop.f32.mrf.mxu1 }
 0x2c4   : > { %v3809_v10 = vmax.f32 %v3808_v29, %v7936_v47  ;;  %v3830_v13 = vmax.f32 %v3829_v30, %v7938_v39 }
 0x2c6   : > { %v3810_v17 = vmax.f32 %v3809_v10, %v7920_v11  ;;  %v3831_v22 = vmax.f32 %v3830_v13, %v7922_v14 }
 0x2c8   : > { %v3811_v19 = vmax.f32 %v3810_v17, %v7930_v55  ;;  %v3832_v31 = vmax.f32 %v3831_v22, %v7932_v63 }
 0x2ca   : > { %v3812_v62 = vrot.slane %v3811_v19, 4  ;;  %v3833_v40 = vrot.slane %v3832_v31, 4 }
 0x2cc   : > { %v3813_v1 = vmax.f32 %v3811_v19, %v3812_v62  ;;  %v3834_v27 = vmax.f32 %v3832_v31, %v3833_v40 }
 0x2cd   : > { %v7946_v28 = vpop.f32.mrf.mxu0  ;;  %v7948_v32 = vpop.f32.mrf.mxu1 }
 0x2ce   : > { %v3814_v34 = vrot.slane %v3813_v1, 2  ;;  %v3835_v8 = vrot.slane %v3834_v27, 2 }
 0x2cf   : > { %v7952_v43 = vpop.f32.mrf.mxu0  ;;  %v7954_v46 = vpop.f32.mrf.mxu1 }
 0x2d0   : > { %v3815_v35 = vmax.f32 %v3813_v1, %v3814_v34  ;;  %v3836_v30 = vmax.f32 %v3834_v27, %v3835_v8 }
 0x2d1   : > { %v7964_v13 = vpop.f32.mrf.mxu0  ;;  %v7966_v17 = vpop.f32.mrf.mxu1 }
 0x2d2   : > { %v3816_v33 = vrot.slane %v3815_v35, 1  ;;  %v3837_v62 = vrot.slane %v3836_v30, 1 }
 0x2d3   : > { %v7972_v1 = vpop.f32.mrf.mxu0 }
 0x2d4   : > { %v7950_v6 = vmax.f32 %v3815_v35, %v3816_v33  ;;  %v7982_v27 = vmax.f32 %v3836_v30, %v3837_v62 }
 0x2d6   : > { %v3965_v37 = vsub.f32 %v7854_v50, %v7950_v6  ;;  %v3966_v38 = vsub.f32 %v7862_v51, %v7950_v6  ;;  %v3967_v29 = vsub.f32 %v7850_v52, %v7950_v6  ;;  %v3968_v10 = vsub.f32 %v7858_v56, %v7950_v6  ;;  %v7974_v56 = vpop.f32.mrf.mxu1 }
 0x2d7   : > { %v3969_v31 = vsub.f32 %v7874_v15, %v7950_v6  ;;  %v3970_v51 = vsub.f32 %v7886_v25, %v7950_v6  ;;  %v3971_v40 = vsub.f32 %v7866_v5, %v7950_v6  ;;  %v3972_v25 = vsub.f32 %v7880_v20, %v7950_v6 }
 0x2d8   : > { %v4093_v22 = vmul.f32 1.442695, %v3965_v37  ;;  %v4095_v19 = vmul.f32 1.442695, %v3966_v38  ;;  %v4097_v50 = vmul.f32 1.442695, %v3967_v29  ;;  %v3973_v8 = vsub.f32 %v7898_v3, %v7950_v6 }
 0x2d9   : > { %v4099_v52 = vmul.f32 1.442695, %v3968_v10  ;;  %v4101_v34 = vmul.f32 1.442695, %v3969_v31  ;;  %v4103_v33 = vmul.f32 1.442695, %v3970_v51  ;;  %v3974_v37 = vsub.f32 %v7910_v58, %v7950_v6 }
 0x2da   : > { %6901 = vpow2.f32 %v4093_v22  ;;  %v4105_v5 = vmul.f32 1.442695, %v3971_v40  ;;  %v3981_v30 = vsub.f32 %v7856_v54, %v7982_v27  ;;  %v3839_v20 = vmax.f32 %v7952_v43, %v7972_v1 }
 0x2db   : > { %6903 = vpow2.f32 %v4095_v19  ;;  %v4107_v10 = vmul.f32 1.442695, %v3972_v25  ;;  %v3982_v3 = vsub.f32 %v7864_v2, %v7982_v27  ;;  %v3860_v58 = vmax.f32 %v7954_v46, %v7974_v56 }
 0x2dc   : > { %6905 = vpow2.f32 %v4097_v50  ;;  %v3975_v22 = vsub.f32 %v7894_v41, %v7950_v6  ;;  %v3976_v19 = vsub.f32 %v7904_v59, %v7950_v6  ;;  %v4109_v31 = vmul.f32 1.442695, %v3973_v8 }
 0x2dd   : > { %v7978_v35 = vpop.f32.mrf.mxu0  ;;  %v7980_v15 = vpop.f32.mrf.mxu1  ;;  %6907 = vpow2.f32 %v4099_v52  ;;  %v3983_v54 = vsub.f32 %v7852_v53, %v7982_v27  ;;  %v3977_v50 = vsub.f32 %v7924_v16, %v7950_v6  ;;  %v3978_v62 = vsub.f32 %v7936_v47, %v7950_v6 }
 0x2de   : > { %6909 = vpow2.f32 %v4101_v34  ;;  %v4111_v2 = vmul.f32 1.442695, %v3974_v37  ;;  %v3979_v41 = vsub.f32 %v7920_v11, %v7950_v6  ;;  %v3980_v59 = vsub.f32 %v7930_v55, %v7950_v6 }
 0x2df   : > { %v7990_v38 = vpop.f32.mrf.mxu0  ;;  %v7992_v29 = vpop.f32.mrf.mxu1  ;;  %6911 = vpow2.f32 %v4103_v33  ;;  %v3984_v53 = vsub.f32 %v7860_v57, %v7982_v27  ;;  %v4125_v40 = vmul.f32 1.442695, %v3981_v30  ;;  %v4127_v47 = vmul.f32 1.442695, %v3982_v3 }
 0x2e0   : > { %6913 = vpow2.f32 %v4105_v5  ;;  %v3840_v34 = vmax.f32 %v3839_v20, %v7946_v28  ;;  %v3861_v25 = vmax.f32 %v3860_v58, %v7948_v32  ;;  %v4113_v8 = vmul.f32 1.442695, %v3975_v22 }
 0x2e1   : > { %v8012_v51 = vpop.f32.mrf.mxu0  ;;  %v8014_v52 = vpop.f32.mrf.mxu1  ;;  %6915 = vpow2.f32 %v4107_v10  ;;  %v3985_v11 = vsub.f32 %v7876_v12, %v7982_v27  ;;  %v4129_v55 = vmul.f32 1.442695, %v3983_v54  ;;  %v4115_v10 = vmul.f32 1.442695, %v3976_v19 }
 0x2e2   : > { %6917 = vpow2.f32 %v4109_v31  ;;  %v3841_v6 = vmax.f32 %v3840_v34, %v7964_v13  ;;  %v3862_v37 = vmax.f32 %v3861_v25, %v7966_v17  ;;  %v3986_v3 = vsub.f32 %v7888_v26, %v7982_v27 }
 0x2e3   : > { %6919 = vpow2.f32 %v4111_v2  ;;  %v8034_v5 = vpop.f32.mrf.mxu0  ;;  %v8036_v30 = vpop.f32.mrf.mxu1  ;;  %v4131_v12 = vmul.f32 1.442695, %v3984_v53  ;;  %v4117_v19 = vmul.f32 1.442695, %v3977_v50  ;;  %v3987_v26 = vsub.f32 %v7868_v36, %v7982_v27 }
 0x2e4   : > { %6921 = vpow2.f32 %v4125_v40  ;;  %v3842_v22 = vmax.f32 %v3841_v6, %v7990_v38  ;;  %v3863_v31 = vmax.f32 %v3862_v37, %v7992_v29  ;;  %v4133_v40 = vmul.f32 1.442695, %v3985_v11 }
 0x2e5   : > { %6923 = vpow2.f32 %v4127_v47  ;;  %v3988_v50 = vsub.f32 %v7882_v21, %v7982_v27  ;;  %v4135_v36 = vmul.f32 1.442695, %v3986_v3  ;;  %v3989_v21 = vsub.f32 %v7900_v4, %v7982_v27 }
 0x2e6   : > { %6925 = vpow2.f32 %v4113_v8  ;;  %v3843_v47 = vmax.f32 %v3842_v22, %v8034_v5  ;;  %v3864_v25 = vmax.f32 %v3863_v31, %v8036_v30  ;;  %v4119_v8 = vmul.f32 1.442695, %v3978_v62 }
 0x2e7   : > { %v8022_v16 = vpop.eup %6901  ;;  %6927 = vpow2.f32 %v4129_v55  ;;  %v4137_v3 = vmul.f32 1.442695, %v3987_v26  ;;  %v3996_v7 = vsub.f32 %v7932_v63, %v7982_v27 }
 0x2e8   : > { %9581 = vst [vmem:[#allocation10_spill] sm:$0xff] %v8022_v16  ;;  %v8026_v33 = vpop.eup %6903  ;;  %6929 = vpow2.f32 %v4115_v10  ;;  %v3844_v55 = vmax.f32 %v3843_v47, %v7978_v35  ;;  %v4121_v10 = vmul.f32 1.442695, %v3979_v41  ;;  %v3990_v41 = vsub.f32 %v7912_v61, %v7982_v27 }
 0x2e9   : > { %9582 = vst [vmem:[#allocation11_spill] sm:$0xff] %v8026_v33  ;;  %v4349_v57 = vadd.f32 %v8026_v33, %v8022_v16  ;;  %v8038_v20 = vpop.eup %6905  ;;  %6931 = vpow2.f32 %v4131_v12  ;;  %v3991_v61 = vsub.f32 %v7896_v44, %v7982_v27  ;;  %v3993_v44 = vsub.f32 %v7926_v18, %v7982_v27 }
 0x2ea   : > { %9583 = vst [vmem:[#allocation12_spill] sm:$0xff] %v8038_v20  ;;  %v8049_v34 = vpop.eup %6907  ;;  %6933 = vpow2.f32 %v4117_v19  ;;  %v3845_v47 = vmax.f32 %v3844_v55, %v8012_v51  ;;  %v4139_v19 = vmul.f32 1.442695, %v3988_v50  ;;  %v4141_v50 = vmul.f32 1.442695, %v3989_v21 }
 0x2eb   : > { %v4350_v58 = vadd.f32 %v8038_v20, %v4349_v57  ;;  %9584 = vst [vmem:[#allocation13_spill] sm:$0xff] %v8049_v34  ;;  %v8060_v37 = vpop.eup %6909  ;;  %6935 = vpow2.f32 %v4133_v40  ;;  %v4149_v9 = vmul.f32 1.442695, %v3993_v44 }
 0x2ec   : > { %9585 = vst [vmem:[#allocation14_spill] sm:$0xff] %v8060_v37  ;;  %v8071_v0 = vpop.eup %6911  ;;  %6937 = vpow2.f32 %v4119_v8 }
 0x2ed   : > { %v8045_v54 = vpop.f32.mrf.mxu0  ;;  %v8047_v2 = vpop.f32.mrf.mxu1  ;;  %v4351_v53 = vadd.f32 %v8049_v34, %v4350_v58  ;;  %v3865_v58 = vmax.f32 %v3864_v25, %v7980_v15  ;;  %9586 = vst [vmem:[#allocation15_spill] sm:$0xff] %v8071_v0  ;;  %6939 = vpow2.f32 %v4135_v36 }
 0x2ee   : > { %v8076_v12 = vpop.eup %6913  ;;  %6941 = vpow2.f32 %v4121_v10 }
 0x2ef   : > { %v8056_v57 = vpop.f32.mrf.mxu0  ;;  %v8058_v6 = vpop.f32.mrf.mxu1  ;;  %v4352_v11 = vadd.f32 %v8060_v37, %v4351_v53  ;;  %9587 = vst [vmem:[#allocation16_spill] sm:$0xff] %v8076_v12  ;;  %v4123_v53 = vmul.f32 1.442695, %v3980_v59  ;;  %v3866_v25 = vmax.f32 %v3865_v58, %v8014_v52  ;;  %6943 = vpow2.f32 %v4137_v3 }
 0x2f0   : > { %v8087_v26 = vpop.eup %6915  ;;  %v3846_v59 = vmax.f32 %v3845_v47, %v8056_v57 }
 0x2f1   : > { %v8067_v22 = vpop.f32.mrf.mxu0  ;;  %v8069_v31 = vpop.f32.mrf.mxu1  ;;  %v4353_v62 = vadd.f32 %v8071_v0, %v4352_v11  ;;  %9588 = vst [vmem:[#allocation17_spill] sm:$0xff] %v8087_v26  ;;  %v3867_v40 = vmax.f32 %v3866_v25, %v8058_v6  ;;  %6945 = vpow2.f32 %v4123_v53  ;;  %v3992_v25 = vsub.f32 %v7906_v60, %v7982_v27 }
 0x2f2   : > { %v8091_v8 = vpop.eup %6917  ;;  %6947 = vpow2.f32 %v4139_v19  ;;  %v4145_v53 = vmul.f32 1.442695, %v3991_v61  ;;  %v3994_v60 = vsub.f32 %v7938_v39, %v7982_v27  ;;  %v3995_v39 = vsub.f32 %v7922_v14, %v7982_v27 }
 0x2f3   : > { %v4354_v24 = vadd.f32 %v8076_v12, %v4353_v62  ;;  %v8083_v11 = vpop.f32.mrf.mxu0  ;;  %v8085_v4 = vpop.f32.mrf.mxu1  ;;  %9589 = vst [vmem:[#allocation18_spill] sm:$0xff] %v8091_v8  ;;  %6949 = vpow2.f32 %v4141_v50 }
 0x2f4   : > { %v8096_v36 = vpop.eup %6919  ;;  %v3847_v58 = vmax.f32 %v3846_v59, %v8083_v11  ;;  %v3868_v10 = vmax.f32 %v3867_v40, %v8085_v4  ;;  %v4151_v44 = vmul.f32 1.442695, %v3994_v60 }
 0x2f5   : > { %v4355_v55 = vadd.f32 %v8087_v26, %v4354_v24  ;;  %9590 = vst [vmem:[#allocation19_spill] sm:$0xff] %v8096_v36  ;;  %v8100_v62 = vpop.eup %6921  ;;  %v4143_v24 = vmul.f32 1.442695, %v3990_v41 }
 0x2f6   : > { %9591 = vst [vmem:[#allocation20_spill] sm:$0xff] %v8100_v62  ;;  %v8105_v23 = vpop.eup %6923  ;;  %v3848_v41 = vmax.f32 %v3847_v58, %v8045_v54  ;;  %v3869_v19 = vmax.f32 %v3868_v10, %v8047_v2 }
 0x2f7   : > { %v4356_v47 = vadd.f32 %v8091_v8, %v4355_v55  ;;  %9592 = vst [vmem:[#allocation21_spill] sm:$0xff] %v8105_v23  ;;  %v8109_v21 = vpop.eup %6925  ;;  %v4370_v59 = vadd.f32 %v8105_v23, %v8100_v62  ;;  %6951 = vpow2.f32 %v4143_v24 }
 0x2f8   : > { %9593 = vst [vmem:[#allocation22_spill] sm:$0xff] %v8109_v21  ;;  %v8114_v40 = vpop.eup %6927  ;;  %6953 = vpow2.f32 %v4145_v53  ;;  %v3849_v23 = vmax.f32 %v3848_v41, %v8067_v22  ;;  %v3870_v14 = vmax.f32 %v3869_v19, %v8069_v31 }
 0x2f9   : > { %v4357_v3 = vadd.f32 %v8096_v36, %v4356_v47  ;;  %9594 = vst [vmem:[#allocation23_spill] sm:$0xff] %v8114_v40  ;;  %v8120_v55 = vpop.eup %6929  ;;  %v4147_v47 = vmul.f32 1.442695, %v3992_v25  ;;  %v4371_v61 = vadd.f32 %v8114_v40, %v4370_v59 }
 0x2fa   : > { %9595 = vst [vmem:[#allocation24_spill] sm:$0xff] %v8120_v55  ;;  %v8128_v48 = vpop.eup %6931 }
 0x2fb   : > { %v4358_v18 = vadd.f32 %v8109_v21, %v4357_v3  ;;  %9596 = vst [vmem:[#allocation25_spill] sm:$0xff] %v8128_v48  ;;  %v8132_v58 = vpop.eup %6933  ;;  %v4372_v24 = vadd.f32 %v8128_v48, %v4371_v61  ;;  %6955 = vpow2.f32 %v4147_v47 }
 0x2fc   : > { %v8140_v59 = vpop.eup %6935  ;;  %6957 = vpow2.f32 %v4149_v9 }
 0x2fd   : > { %v8124_v50 = vpop.f32.mrf.mxu0  ;;  %v8126_v49 = vpop.f32.mrf.mxu1  ;;  %v4359_v10 = vadd.f32 %v8120_v55, %v4358_v18  ;;  %9597 = vst [vmem:[#allocation26_spill] sm:$0xff] %v8140_v59  ;;  %v4373_v18 = vadd.f32 %v8140_v59, %v4372_v24  ;;  %6959 = vpow2.f32 %v4151_v44 }
 0x2fe   : > { %v8146_v62 = vpop.eup %6937 }
 0x2ff   : > { %v8136_v25 = vpop.f32.mrf.mxu0  ;;  %v8138_v3 = vpop.f32.mrf.mxu1  ;;  %v4360_v53 = vadd.f32 %v8132_v58, %v4359_v10  ;;  %v4153_v10 = vmul.f32 1.442695, %v3995_v39 }
 0x300   : > { %v8154_v16 = vpop.eup %6939  ;;  %v3850_v63 = vmax.f32 %v3849_v23, %v8136_v25  ;;  %v3871_v27 = vmax.f32 %v3870_v14, %v8138_v3 }
 0x301   : > { %v8150_v61 = vpop.f32.mrf.mxu0  ;;  %v8152_v33 = vpop.f32.mrf.mxu1  ;;  %9598 = vst [vmem:[#allocation27_spill] sm:$0xff] %v8154_v16  ;;  %v4361_v19 = vadd.f32 %v8146_v62, %v4360_v53  ;;  %v4374_v60 = vadd.f32 %v8154_v16, %v4373_v18  ;;  %v4155_v53 = vmul.f32 1.442695, %v3996_v7  ;;  %6961 = vpow2.f32 %v4153_v10 }
 0x302   : > { %v8158_v41 = vpop.eup %6941 }
 0x303   : > { %v8162_v47 = vpop.f32.mrf.mxu0  ;;  %v8164_v24 = vpop.f32.mrf.mxu1  ;;  %v4362_v14 = vadd.f32 %v8158_v41, %v4361_v19  ;;  %6963 = vpow2.f32 %v4155_v53 }
 0x304   : > { %v8166_v48 = vpop.eup %6943  ;;  %v3851_v40 = vmax.f32 %v3850_v63, %v8162_v47  ;;  %v3872_v23 = vmax.f32 %v3871_v27, %v8164_v24 }
 0x305   : > { %9599 = vst [vmem:[#allocation28_spill] sm:$0xff] %v8166_v48  ;;  %v8170_v34 = vpop.eup %6945  ;;  %v4375_v9 = vadd.f32 %v8166_v48, %v4374_v60  ;;  %v8174_v39 = vpop.f32.mrf.mxu0 }
 0x306   : > { %9600 = vst [vmem:[#allocation29_spill] sm:$0xff] %v8174_v39  ;;  %v8176_v18 = vpop.f32.mrf.mxu1  ;;  %v8178_v20 = vpop.eup %6947  ;;  %v3852_v45 = vmax.f32 %v3851_v40, %v8124_v50  ;;  %v3873_v63 = vmax.f32 %v3872_v23, %v8126_v49  ;;  %v4363_v27 = vadd.f32 %v8170_v34, %v4362_v14 }
 0x307   : > { %9601 = vst [vmem:[#allocation30_spill] sm:$0xff] %v8176_v18  ;;  %9602 = vst [vmem:[#allocation31_spill] sm:$0xff] %v8178_v20  ;;  %v4376_v42 = vadd.f32 %v8178_v20, %v4375_v9  ;;  %v8184_v19 = vpop.f32.mrf.mxu0  ;;  %v8188_v44 = vpop.eup %6949 }
 0x308   : > { %9603 = vst [vmem:[#allocation32_spill] sm:$0xff] %v8184_v19  ;;  %v8186_v7 = vpop.f32.mrf.mxu1  ;;  %9605 = vst [vmem:[#allocation34_spill] sm:$0xff] %v8188_v44  ;;  %v3853_v60 = vmax.f32 %v3852_v45, %v8150_v61  ;;  %v3874_v16 = vmax.f32 %v3873_v63, %v8152_v33  ;;  %v4364_v59 = vrot.slane %v4363_v27, 4  ;;  %v8197_v10 = vpop.eup %6951 }
 0x309   : > { %9604 = vst [vmem:[#allocation33_spill] sm:$0xff] %v8186_v7  ;;  %v4377_v40 = vadd.f32 %v8188_v44, %v4376_v42  ;;  %v8193_v23 = vpop.f32.mrf.mxu0  ;;  %9608 = vst [vmem:[#allocation37_spill] sm:$0xff] %v8197_v10  ;;  %v8204_v63 = vpop.eup %6953 }
 0x30a   : > { %9606 = vst [vmem:[#allocation35_spill] sm:$0xff] %v8193_v23  ;;  %v8195_v14 = vpop.f32.mrf.mxu1  ;;  %v3854_v9 = vrot.slane %v3853_v60, 4  ;;  %v3875_v0 = vrot.slane %v3874_v16, 4  ;;  %v4365_v37 = vadd.f32 %v4364_v59, %v4363_v27  ;;  %9611 = vst [vmem:[#allocation40_spill] sm:$0xff] %v8204_v63 }
 0x30b   : > { %9607 = vst [vmem:[#allocation36_spill] sm:$0xff] %v8195_v14  ;;  %v4378_v20 = vadd.f32 %v8197_v10, %v4377_v40  ;;  %v8200_v48 = vpop.f32.mrf.mxu0  ;;  %v8215_v40 = vpop.eup %6955 }
 0x30c   : > { %9609 = vst [vmem:[#allocation38_spill] sm:$0xff] %v8200_v48  ;;  %v8202_v45 = vpop.f32.mrf.mxu1  ;;  %v3855_v53 = vmax.f32 %v3853_v60, %v3854_v9  ;;  %v3876_v26 = vmax.f32 %v3874_v16, %v3875_v0  ;;  %v3881_v42 = vmax.f32 %v8184_v19, %v8200_v48  ;;  %v4366_v44 = vrot.slane %v4365_v37, 2  ;;  %9612 = vst [vmem:[#allocation41_spill] sm:$0xff] %v8215_v40 }
 0x30d   : > { %9610 = vst [vmem:[#allocation39_spill] sm:$0xff] %v8202_v45  ;;  %v3902_v12 = vmax.f32 %v8186_v7, %v8202_v45  ;;  %v4379_v36 = vadd.f32 %v8204_v63, %v4378_v20  ;;  %v8211_v59 = vpop.f32.mrf.mxu0  ;;  %v8224_v20 = vpop.eup %6957 }
 0x30e   : > { %v8213_v27 = vpop.f32.mrf.mxu1  ;;  %v3856_v10 = vrot.slane %v3855_v53, 2  ;;  %v3877_v8 = vrot.slane %v3876_v26, 2  ;;  %v3882_v60 = vmax.f32 %v3881_v42, %v8174_v39  ;;  %v4367_v16 = vadd.f32 %v4366_v44, %v4365_v37  ;;  %9615 = vst [vmem:[#allocation44_spill] sm:$0xff] %v8224_v20 }
 0x30f   : > { %v3903_v0 = vmax.f32 %v3902_v12, %v8176_v18  ;;  %v4380_v9 = vadd.f32 %v8215_v40, %v4379_v36  ;;  %v8220_v48 = vpop.f32.mrf.mxu0  ;;  %v8233_v12 = vpop.eup %6959 }
 0x310   : > { %9613 = vst [vmem:[#allocation42_spill] sm:$0xff] %v8220_v48  ;;  %v8222_v45 = vpop.f32.mrf.mxu1  ;;  %v3857_v7 = vmax.f32 %v3855_v53, %v3856_v10  ;;  %v3878_v19 = vmax.f32 %v3876_v26, %v3877_v8  ;;  %v3883_v63 = vmax.f32 %v3882_v60, %v8193_v23  ;;  %v4368_v21 = vrot.slane %v4367_v16, 1  ;;  %9616 = vst [vmem:[#allocation45_spill] sm:$0xff] %v8233_v12 }
 0x311   : > { %9614 = vst [vmem:[#allocation43_spill] sm:$0xff] %v8222_v45  ;;  %v3904_v55 = vmax.f32 %v3903_v0, %v8195_v14  ;;  %v4381_v42 = vadd.f32 %v8224_v20, %v4380_v9  ;;  %v8229_v39 = vpop.f32.mrf.mxu0  ;;  %v8246_v0 = vpop.eup %6961 }
 0x312   : > { %v8231_v37 = vpop.f32.mrf.mxu1  ;;  %v3858_v36 = vrot.slane %v3857_v7, 1  ;;  %v3879_v44 = vrot.slane %v3878_v19, 1  ;;  %v8236_v18 = vmax.f32 %v3883_v63, %v8220_v48  ;;  %v4369_v8 = vadd.f32 %v4368_v21, %v4367_v16  ;;  %9617 = vst [vmem:[#allocation46_spill] sm:$0xff] %v8246_v0 }
 0x313   : > { %v8239_v26 = vmax.f32 %v3904_v55, %v8222_v45  ;;  %v4382_v10 = vadd.f32 %v8233_v12, %v4381_v42  ;;  %v8242_v53 = vpop.f32.mrf.mxu0  ;;  %v8255_v55 = vpop.eup %6963 }
 0x314   : > { %v8244_v60 = vpop.f32.mrf.mxu1  ;;  %v3859_v9 = vmax.f32 %v3857_v7, %v3858_v36  ;;  %v8249_v23 = vmax.f32 %v3878_v19, %v3879_v44  ;;  %9620 = vst [vmem:[#allocation49_spill] sm:$0xff] %v8255_v55  ;;  %6965 = vrcp.f32 %v4369_v8 }
 0x315   : > { %v4383_v14 = vadd.f32 %v8246_v0, %v4382_v10  ;;  %v8251_v40 = vpop.f32.mrf.mxu0 }
 0x316   : > { %9618 = vst [vmem:[#allocation47_spill] sm:$0xff] %v8251_v40  ;;  %v8253_v63 = vpop.f32.mrf.mxu1  ;;  %v3997_v21 = vsub.f32 %v7952_v43, %v3859_v9  ;;  %v3998_v16 = vsub.f32 %v7972_v1, %v3859_v9  ;;  %v3999_v36 = vsub.f32 %v7946_v28, %v3859_v9  ;;  %v4000_v44 = vsub.f32 %v7964_v13, %v3859_v9 }
 0x317   : > { %9619 = vst [vmem:[#allocation48_spill] sm:$0xff] %v8253_v63  ;;  %v4384_v19 = vadd.f32 %v8255_v55, %v4383_v14  ;;  %v8266_v10 = vpop.f32.mrf.mxu0  ;;  %v4001_v43 = vsub.f32 %v7990_v38, %v3859_v9  ;;  %v4002_v1 = vsub.f32 %v8034_v5, %v3859_v9  ;;  %v4003_v42 = vsub.f32 %v7978_v35, %v3859_v9 }
 0x318   : > { %v8268_v45 = vpop.f32.mrf.mxu1  ;;  %v4004_v48 = vsub.f32 %v8012_v51, %v3859_v9  ;;  %v4005_v8 = vsub.f32 %v8056_v57, %v3859_v9  ;;  %v4006_v14 = vsub.f32 %v8083_v11, %v3859_v9  ;;  %v4007_v28 = vsub.f32 %v8045_v54, %v3859_v9 }
 0x319   : > { %9621 = vst [vmem:[#allocation50_spill] sm:$0xff] %v8268_v45  ;;  %v4385_v7 = vrot.slane %v4384_v19, 4  ;;  %v8277_v13 = vpop.f32.mrf.mxu0  ;;  %v4008_v20 = vsub.f32 %v8067_v22, %v3859_v9  ;;  %v4009_v38 = vsub.f32 %v8136_v25, %v3859_v9  ;;  %v4157_v5 = vmul.f32 1.442695, %v3997_v21 }
 0x31a   : > { %9622 = vst [vmem:[#allocation51_spill] sm:$0xff] %v8277_v13  ;;  %v8279_v12 = vpop.f32.mrf.mxu1  ;;  %v4159_v63 = vmul.f32 1.442695, %v3998_v16  ;;  %v4010_v51 = vsub.f32 %v8162_v47, %v3859_v9  ;;  %v4161_v40 = vmul.f32 1.442695, %v3999_v36  ;;  %v4011_v54 = vsub.f32 %v8124_v50, %v3859_v9 }
 0x31b   : > { %9623 = vst [vmem:[#allocation52_spill] sm:$0xff] %v8279_v12  ;;  %v4386_v35 = vadd.f32 %v4385_v7, %v4384_v19  ;;  %v4163_v55 = vmul.f32 1.442695, %v4000_v44  ;;  %v8284_v57 = vpop.f32.mrf.mxu0  ;;  %v4012_v13 = vsub.f32 %v8150_v61, %v3859_v9  ;;  %6967 = vpow2.f32 %v4157_v5 }
 0x31c   : > { %v8286_v11 = vpop.f32.mrf.mxu1  ;;  %v4165_v12 = vmul.f32 1.442695, %v4001_v43  ;;  %6969 = vpow2.f32 %v4159_v63  ;;  %v4167_v25 = vmul.f32 1.442695, %v4002_v1  ;;  %v4169_v21 = vmul.f32 1.442695, %v4003_v42 }
 0x31d   : > { %9624 = vst [vmem:[#allocation53_spill] sm:$0xff] %v8286_v11  ;;  %v4387_v22 = vrot.slane %v4386_v35, 2  ;;  %v8290_v16 = vpop.f32.mrf.mxu0  ;;  %6971 = vpow2.f32 %v4161_v40  ;;  %v4171_v47 = vmul.f32 1.442695, %v4004_v48  ;;  %v4173_v19 = vmul.f32 1.442695, %v4005_v8 }
 0x31e   : > { %v8292_v7 = vpop.f32.mrf.mxu1  ;;  %v4175_v36 = vmul.f32 1.442695, %v4006_v14  ;;  %6973 = vpow2.f32 %v4163_v55  ;;  %v4177_v0 = vmul.f32 1.442695, %v4007_v28  ;;  %v4179_v50 = vmul.f32 1.442695, %v4008_v20 }
 0x31f   : > { %v4388_v44 = vadd.f32 %v4387_v22, %v4386_v35  ;;  %v8294_v11 = vpop.f32.mrf.mxu0  ;;  %6975 = vpow2.f32 %v4165_v12  ;;  %v4181_v9 = vmul.f32 1.442695, %v4009_v38  ;;  %v4183_v63 = vmul.f32 1.442695, %v4010_v51 }
 0x320   : > { %v8296_v61 = vpop.f32.mrf.mxu1  ;;  %v4185_v42 = vmul.f32 1.442695, %v4011_v54  ;;  %6977 = vpow2.f32 %v4167_v25  ;;  %v8298_v1 = vmul.f32 1.442695, %v4012_v13  ;;  %v4013_v48 = vsub.f32 %v7954_v46, %v8249_v23 }
 0x321   : > { %v4389_v43 = vrot.slane %v4388_v44, 1  ;;  %v8302_v40 = vpop.f32.mrf.mxu0  ;;  %6979 = vpow2.f32 %v4169_v21  ;;  %v4014_v20 = vsub.f32 %v7974_v56, %v8249_v23  ;;  %v4015_v12 = vsub.f32 %v7948_v32, %v8249_v23  ;;  %v8320_v5 = vpop.eup %6965 }
 0x322   : > { %v8304_v55 = vpop.f32.mrf.mxu1  ;;  %v4016_v8 = vsub.f32 %v7966_v17, %v8249_v23  ;;  %6981 = vpow2.f32 %v4171_v47  ;;  %v4017_v28 = vsub.f32 %v7992_v29, %v8249_v23  ;;  %v4018_v46 = vsub.f32 %v8036_v30, %v8249_v23 }
 0x323   : > { %v4390_v14 = vadd.f32 %v4389_v43, %v4388_v44  ;;  %v8316_v13 = vpop.f32.mrf.mxu0  ;;  %6983 = vpow2.f32 %v4173_v19  ;;  %v4019_v32 = vsub.f32 %v7980_v15, %v8249_v23  ;;  %v4020_v17 = vsub.f32 %v8014_v52, %v8249_v23 }
 0x324   : > { %v8318_v38 = vpop.f32.mrf.mxu1  ;;  %v4021_v56 = vsub.f32 %v8058_v6, %v8249_v23  ;;  %v4022_v29 = vsub.f32 %v8085_v4, %v8249_v23  ;;  %v4023_v30 = vsub.f32 %v8047_v2, %v8249_v23  ;;  %v4024_v35 = vsub.f32 %v8069_v31, %v8249_v23 }
 0x325   : > { %6985 = vrcp.f32 %v4390_v14  ;;  %v8334_v51 = vpop.f32.mrf.mxu0  ;;  %v4025_v15 = vsub.f32 %v8138_v3, %v8249_v23  ;;  %v4026_v52 = vsub.f32 %v8164_v24, %v8249_v23  ;;  %v4027_v6 = vsub.f32 %v8126_v49, %v8249_v23 }
 0x326   : > { %9625 = vst [vmem:[#allocation54_spill] sm:$0xff] %v8334_v51  ;;  %v8336_v54 = vpop.f32.mrf.mxu1  ;;  %6987 = vpow2.f32 %v4175_v36  ;;  %v4028_v2 = vsub.f32 %v8152_v33, %v8249_v23  ;;  %v4189_v4 = vmul.f32 1.442695, %v4013_v48  ;;  %v4191_v31 = vmul.f32 1.442695, %v4014_v20 }
 0x327   : > { %9626 = vst [vmem:[#allocation55_spill] sm:$0xff] %v8336_v54  ;;  %6989 = vpow2.f32 %v4177_v0  ;;  %v8346_v22 = vpop.f32.mrf.mxu0  ;;  %v4193_v21 = vmul.f32 1.442695, %v4015_v12  ;;  %v4195_v47 = vmul.f32 1.442695, %v4016_v8 }
 0x328   : > { %9627 = vst [vmem:[#allocation56_spill] sm:$0xff] %v8346_v22  ;;  %v8348_v25 = vpop.f32.mrf.mxu1  ;;  %6991 = vpow2.f32 %v4179_v50  ;;  %v4197_v3 = vmul.f32 1.442695, %v4017_v28  ;;  %v8350_v19 = vpop.eup %6967  ;;  %v4199_v24 = vmul.f32 1.442695, %v4018_v46  ;;  %v9636_v28 = vmax.f32 %v8236_v18, %v8242_v53 }
 0x329   : > { %9628 = vst [vmem:[#allocation57_spill] sm:$0xff] %v8348_v25  ;;  %9629 = vst [vmem:[#allocation58_spill] sm:$0xff] %v8350_v19  ;;  %6993 = vpow2.f32 %v4181_v9  ;;  %v4201_v36 = vmul.f32 1.442695, %v4019_v32  ;;  %v8352_v49 = vmul.f32 1.442695, %v4020_v17  ;;  %v8354_v0 = vpop.f32.mrf.mxu0  ;;  %v8358_v23 = vpop.eup %6969  ;;  %v9637_v32 = vmax.f32 %v8239_v26, %v8244_v60 }
 0x32a   : > { %9630 = vst [vmem:[#allocation59_spill] sm:$0xff] %v8354_v0  ;;  %v8356_v33 = vpop.f32.mrf.mxu1  ;;  %9632 = vst [vmem:[#allocation61_spill] sm:$0xff] %v8358_v23  ;;  %6995 = vpow2.f32 %v4183_v63  ;;  %v8360_v44 = vmul.f32 1.442695, %v4021_v56  ;;  %v8362_v50 = vmul.f32 1.442695, %v4022_v29  ;;  %v8366_v48 = vpop.eup %6971  ;;  %v4391_v9 = vadd.f32 %v8358_v23, %v8350_v19 }
 0x32b   : > { %9631 = vst [vmem:[#allocation60_spill] sm:$0xff] %v8356_v33  ;;  %v8364_v43 = vmul.f32 1.442695, %v4023_v30  ;;  %9633 = vst [vmem:[#allocation62_spill] sm:$0xff] %v8366_v48  ;;  %v8370_v20 = vmul.f32 1.442695, %v4024_v35  ;;  %v8376_v14 = vpop.f32.mrf.mxu0  ;;  %v8378_v63 = vpop.eup %6973  ;;  %6997 = vpow2.f32 %v4185_v42  ;;  %v3886_v46 = vmax.f32 %v9636_v28, %v8211_v59 }
 0x32c   : > { %v8372_v12 = vmul.f32 1.442695, %v4025_v15  ;;  %v8374_v8 = vmul.f32 1.442695, %v4026_v52  ;;  %9634 = vst [vmem:[#allocation63_spill] sm:$0xff] %v8376_v14  ;;  %9635 = vst [vmem:[#allocation64_spill] sm:$0xff] %v8378_v63  ;;  %v3907_v17 = vmax.f32 %v9637_v32, %v8213_v27  ;;  %v4539_v56 = vmul.f32 %v8320_v5, %v8158_v41  ;;  %v8390_v29 = vpop.f32.mrf.mxu1  ;;  %v8392_v30 = vpop.eup %6975 }
 0x32d   : > { %9638 = vst [vmem:[#allocation65_spill] sm:$0xff] %v8390_v29  ;;  %9639 = vst [vmem:[#allocation66_spill] sm:$0xff] %v8392_v30  ;;  %v4392_v35 = vadd.f32 %v8366_v48, %v4391_v9  ;;  %6999 = vpow2.f32 %v4189_v4  ;;  %v4540_v42 = vmul.f32 %v8320_v5, %v8170_v34  ;;  %v4537_v18 = vmul.f32 %v8320_v5, %v8132_v58  ;;  %v8399_v15 = vpop.eup %6977  ;;  %v8411_v58 = vpop.f32.mrf.mxu0  ;;  %v9652_v48 = vld [vmem:[#allocation48_spill] sm:$0xff] }
 0x32e   : > { %9640 = vst [vmem:[#allocation67_spill] sm:$0xff] %v8399_v15  ;;  %7001 = vpow2.f32 %v4191_v31  ;;  %v3887_v26 = vmax.f32 %v3886_v46, %v8229_v39  ;;  %v3908_v41 = vmax.f32 %v3907_v17, %v8231_v37  ;;  %v4538_v52 = vmul.f32 %v8320_v5, %v8146_v62  ;;  %v8405_v28 = vpop.eup %6979  ;;  %9642 = vst [vmem:[#allocation69_spill] sm:$0xff] %v8411_v58  ;;  %v8419_v17 = vpop.f32.mrf.mxu1 }
 0x32f   : > { %9641 = vst [vmem:[#allocation68_spill] sm:$0xff] %v8405_v28  ;;  %7003 = vpow2.f32 %v8298_v1  ;;  %v4393_v4 = vadd.f32 %v8378_v63, %v4392_v35  ;;  %v8409_v34 = vmul.f32 1.442695, %v4027_v6  ;;  %v4668_v9 = vpack.c.bf16 %v4540_v42, %v4539_v56  ;;  %v8413_v32 = vpop.eup %6981  ;;  %9644 = vst [vmem:[#allocation71_spill] sm:$0xff] %v8419_v17 }
 0x330   : > { %9643 = vst [vmem:[#allocation70_spill] sm:$0xff] %v8413_v32  ;;  %7005 = vpow2.f32 %v4193_v21  ;;  %v8415_v31 = vmul.f32 1.442695, %v4028_v2  ;;  %v3888_v46 = vmax.f32 %v3887_v26, %v8266_v10  ;;  %v3909_v62 = vmax.f32 %v3908_v41, %v8268_v45  ;;  %v8421_v23 = vpop.eup %6983  ;;  %v9645_v21 = vld [vmem:[#allocation53_spill] sm:$0xff] }
 0x331   : > { %v4394_v1 = vadd.f32 %v8392_v30, %v4393_v4  ;;  %7007 = vpow2.f32 %v4195_v47  ;;  %6345 = vmatpush3.bf16.msra.mxu0 %v4668_v9  ;;  %v4667_v6 = vpack.c.bf16 %v4538_v52, %v4537_v18  ;;  %v3923_v56 = vmax.f32 %v8346_v22, %v8376_v14  ;;  %v9648_v18 = vld [vmem:[#allocation46_spill] sm:$0xff]  ;;  %v9649_v4 = vld [vmem:[#allocation49_spill] sm:$0xff]  ;;  %v8440_v9 = vpop.f32.mrf.mxu0 }
 0x332   : > { %v8426_v35 = vpop.eup %6985  ;;  %7009 = vpow2.f32 %v4197_v3  ;;  %v3889_v2 = vmax.f32 %v3888_v46, %v8284_v57  ;;  %v3910_v42 = vmax.f32 %v3909_v62, %v9645_v21  ;;  %v9646_v26 = vmov 0.0   ;;  %9650 = vst [vmem:[#allocation46_spill] sm:$0xff] %v8440_v9  ;;  %v9651_v62 = vld [vmem:[#allocation47_spill] sm:$0xff]  ;;  %v9656_v22 = vld [vmem:[#allocation45_spill] sm:$0xff] }
 0x333   : > { %6346 = vmatprep.subr.bf16.mxu0 %v9646_v26  ;;  %v3944_v41 = vmax.f32 %v8348_v25, %v8390_v29  ;;  %v8433_v19 = vpop.eup %6987  ;;  %v4395_v47 = vadd.f32 %v8399_v15, %v4394_v1  ;;  %7011 = vpow2.f32 %v4199_v24  ;;  %v4555_v52 = vmul.f32 %v8426_v35, %v9648_v18  ;;  %v9653_v29 = vld [vmem:[#allocation22_spill] sm:$0xff]  ;;  %v8448_v1 = vpop.f32.mrf.mxu1 }
 0x334   : > { %9647 = vst [vmem:[#allocation72_spill] sm:$0xff] %v8433_v19  ;;  %v4556_v3 = vmul.f32 %v8426_v35, %v9649_v4  ;;  %v8442_v46 = vpop.eup %6989  ;;  %7013 = vpow2.f32 %v4201_v36  ;;  %v3890_v63 = vmax.f32 %v3889_v2, %v9651_v62  ;;  %v3911_v30 = vmax.f32 %v3910_v42, %v9652_v48  ;;  %9654 = vst [vmem:[#allocation49_spill] sm:$0xff] %v8448_v1  ;;  %v9655_v4 = vld [vmem:[#allocation44_spill] sm:$0xff]  ;;  %v9657_v42 = vld [vmem:[#allocation51_spill] sm:$0xff] }
 0x335   : > { %v4535_v25 = vmul.f32 %v8320_v5, %v9653_v29  ;;  %v8450_v24 = vpop.eup %6991  ;;  %v4396_v18 = vadd.f32 %v8405_v28, %v4395_v47  ;;  %6347 = vmatpush3.bf16.msra.mxu0 %v4667_v6  ;;  %v4553_v14 = vmul.f32 %v8426_v35, %v9655_v4  ;;  %v4554_v36 = vmul.f32 %v8426_v35, %v9656_v22  ;;  %v9658_v48 = vld [vmem:[#allocation52_spill] sm:$0xff] }
 0x336   : > { %v4676_v15 = vpack.c.bf16 %v4556_v3, %v4555_v52  ;;  %v8457_v2 = vpop.eup %6993  ;;  %7015 = vpow2.f32 %v8352_v49  ;;  %v3891_v29 = vmax.f32 %v3890_v63, %v9657_v42  ;;  %v3912_v21 = vmax.f32 %v3911_v30, %v9658_v48  ;;  %6348 = vmatprep.subr.bf16.mxu0 %v9646_v26  ;;  %v9659_v52 = vld [vmem:[#allocation24_spill] sm:$0xff]  ;;  %v8471_v3 = vpop.f32.mrf.mxu0 }
 0x337   : > { %v3924_v45 = vmax.f32 %v3923_v56, %v8334_v51  ;;  %v8464_v47 = vpop.eup %6995  ;;  %v4397_v6 = vadd.f32 %v8413_v32, %v4396_v18  ;;  %7017 = vpow2.f32 %v8360_v44  ;;  %v3945_v22 = vmax.f32 %v3944_v41, %v8336_v54  ;;  %9660 = vst [vmem:[#allocation47_spill] sm:$0xff] %v8471_v3  ;;  %v9661_v56 = vld [vmem:[#allocation40_spill] sm:$0xff]  ;;  %v8479_v44 = vpop.f32.mrf.mxu1  ;;  %v9663_v54 = vld [vmem:[#allocation41_spill] sm:$0xff] }
 0x338   : > { %6365 = vmatpush3.bf16.msra.mxu1 %v4676_v15  ;;  %v4536_v49 = vmul.f32 %v8320_v5, %v9659_v52  ;;  %7019 = vpow2.f32 %v8362_v50  ;;  %v3892_v63 = vmax.f32 %v3891_v29, %v8294_v11  ;;  %v3913_v30 = vmax.f32 %v3912_v21, %v8296_v61  ;;  %9662 = vst [vmem:[#allocation22_spill] sm:$0xff] %v8479_v44  ;;  %v8481_v15 = vpop.eup %6997 }
 0x339   : > { %6366 = vmatprep.subr.bf16.mxu1 %v9646_v26  ;;  %v4551_v18 = vmul.f32 %v8426_v35, %v9661_v56  ;;  %v4398_v41 = vadd.f32 %v8421_v23, %v4397_v6  ;;  %v4675_v4 = vpack.c.bf16 %v4554_v36, %v4553_v14  ;;  %v4552_v50 = vmul.f32 %v8426_v35, %v9663_v54  ;;  %v8497_v14 = vpop.f32.mrf.mxu0 }
 0x33a   : > { %v4666_v52 = vpack.c.bf16 %v4536_v49, %v4535_v25  ;;  %v8486_v32 = vpop.eup %6999  ;;  %7021 = vpow2.f32 %v8364_v43  ;;  %v3893_v21 = vmax.f32 %v3892_v63, %v8316_v13  ;;  %v3914_v29 = vmax.f32 %v3913_v30, %v8318_v38  ;;  %9666 = vst [vmem:[#allocation51_spill] sm:$0xff] %v8497_v14  ;;  %v9669_v30 = vld [vmem:[#allocation18_spill] sm:$0xff] }
 0x33b   : > { %9664 = vst [vmem:[#allocation44_spill] sm:$0xff] %v8486_v32  ;;  %v3925_v56 = vmax.f32 %v3924_v45, %v8354_v0  ;;  %v8492_v28 = vpop.eup %7001  ;;  %v4399_v51 = vadd.f32 %v8433_v19, %v4398_v41  ;;  %7023 = vpow2.f32 %v8370_v20  ;;  %v4674_v25 = vpack.c.bf16 %v4552_v50, %v4551_v18  ;;  %v8508_v20 = vpop.f32.mrf.mxu1 }
 0x33c   : > { %9665 = vst [vmem:[#allocation45_spill] sm:$0xff] %v8492_v28  ;;  %6367 = vmatpush3.bf16.msra.mxu1 %v4675_v4  ;;  %6349 = vmatpush3.bf16.msra.mxu0 %v4666_v52  ;;  %v3946_v54 = vmax.f32 %v3945_v22, %v8356_v33  ;;  %v8499_v43 = vpop.eup %7003  ;;  %7025 = vpow2.f32 %v8372_v12  ;;  %v4412_v45 = vadd.f32 %v8492_v28, %v8486_v32  ;;  %9667 = vst [vmem:[#allocation52_spill] sm:$0xff] %v8508_v20 }
 0x33d   : > { %v3894_v36 = vmax.f32 %v3893_v21, %v8290_v16  ;;  %v3915_v6 = vmax.f32 %v3914_v29, %v8292_v7  ;;  %6368 = vmatprep.subr.bf16.mxu1 %v9646_v26  ;;  %6350 = vmatprep.subr.bf16.mxu0 %v9646_v26  ;;  %v8510_v22 = vpop.eup %7005  ;;  %v4400_v49 = vadd.f32 %v8442_v46, %v4399_v51  ;;  %v9671_v21 = vld [vmem:[#allocation19_spill] sm:$0xff]  ;;  %7027 = vpow2.f32 %v8374_v8 }
 0x33e   : > { %9668 = vst [vmem:[#allocation24_spill] sm:$0xff] %v8510_v22  ;;  %v3926_v63 = vmax.f32 %v3925_v56, %v8440_v9  ;;  %v3947_v12 = vmax.f32 %v3946_v54, %v8448_v1  ;;  %v4533_v18 = vmul.f32 %v8320_v5, %v9669_v30  ;;  %v8517_v41 = vpop.eup %7007  ;;  %v4413_v4 = vadd.f32 %v8510_v22, %v4412_v45  ;;  %v9673_v56 = vld [vmem:[#allocation34_spill] sm:$0xff]  ;;  %v9674_v30 = vld [vmem:[#allocation37_spill] sm:$0xff]  ;;  %v8532_v22 = vpop.f32.mrf.mxu0 }
 0x33f   : > { %9670 = vst [vmem:[#allocation40_spill] sm:$0xff] %v8517_v41  ;;  %v3895_v52 = vmax.f32 %v3894_v36, %v8302_v40  ;;  %v3916_v50 = vmax.f32 %v3915_v6, %v8304_v55  ;;  %v4534_v29 = vmul.f32 %v8320_v5, %v9671_v21  ;;  %v8524_v28 = vpop.eup %7009  ;;  %v4401_v51 = vadd.f32 %v8450_v24, %v4400_v49 }
 0x340   : > { %9672 = vst [vmem:[#allocation41_spill] sm:$0xff] %v8524_v28  ;;  %6369 = vmatpush3.bf16.msra.mxu1 %v4674_v25  ;;  %v4549_v54 = vmul.f32 %v8426_v35, %v9673_v56  ;;  %v4550_v32 = vmul.f32 %v8426_v35, %v9674_v30  ;;  %v3927_v45 = vmax.f32 %v3926_v63, %v8497_v14  ;;  %v8534_v36 = vpop.eup %7011  ;;  %v8538_v25 = vpop.f32.mrf.mxu1  ;;  %7029 = vpow2.f32 %v8409_v34 }
 0x341   : > { %9675 = vst [vmem:[#allocation18_spill] sm:$0xff] %v8534_v36  ;;  %v4414_v6 = vadd.f32 %v8517_v41, %v4413_v4  ;;  %v3896_v21 = vrot.slane %v3895_v52, 4  ;;  %v3917_v1 = vrot.slane %v3916_v50, 4  ;;  %6370 = vmatprep.subr.bf16.mxu1 %v9646_v26  ;;  %v4665_v49 = vpack.c.bf16 %v4534_v29, %v4533_v18  ;;  %9676 = vst [vmem:[#allocation19_spill] sm:$0xff] %v8538_v25  ;;  %v8540_v33 = vpop.eup %7013  ;;  %v9678_v41 = vld [vmem:[#allocation16_spill] sm:$0xff] }
 0x342   : > { %9677 = vst [vmem:[#allocation34_spill] sm:$0xff] %v8540_v33  ;;  %v4402_v56 = vadd.f32 %v8457_v2, %v4401_v51  ;;  %v4673_v30 = vpack.c.bf16 %v4550_v32, %v4549_v54  ;;  %v3928_v63 = vmax.f32 %v3927_v45, %v8411_v58  ;;  %v3948_v14 = vmax.f32 %v3947_v12, %v8508_v20  ;;  %v9680_v12 = vld [vmem:[#allocation17_spill] sm:$0xff]  ;;  %v9683_v45 = vld [vmem:[#allocation28_spill] sm:$0xff]  ;;  %v9688_v58 = vld [vmem:[#allocation14_spill] sm:$0xff] }
 0x343   : > { %v4415_v9 = vadd.f32 %v8524_v28, %v4414_v6  ;;  %v3897_v0 = vmax.f32 %v3895_v52, %v3896_v21  ;;  %v3918_v4 = vmax.f32 %v3916_v50, %v3917_v1  ;;  %6351 = vmatpush3.bf16.msra.mxu0 %v4665_v49  ;;  %v4531_v19 = vmul.f32 %v8320_v5, %v9678_v41  ;;  %v8548_v18 = vpop.eup %7015  ;;  %v8556_v52 = vpop.f32.mrf.mxu0 }
 0x344   : > { %9679 = vst [vmem:[#allocation37_spill] sm:$0xff] %v8548_v18  ;;  %v4403_v29 = vadd.f32 %v8464_v47, %v4402_v56  ;;  %6371 = vmatpush3.bf16.msra.mxu1 %v4673_v30  ;;  %v3949_v32 = vmax.f32 %v3948_v14, %v8419_v17  ;;  %6352 = vmatprep.subr.bf16.mxu0 %v9646_v26  ;;  %9681 = vst [vmem:[#allocation16_spill] sm:$0xff] %v8556_v52  ;;  %v8558_v1 = vpop.eup %7017  ;;  %v8564_v6 = vpop.f32.mrf.mxu1  ;;  %v9686_v56 = vld [vmem:[#allocation31_spill] sm:$0xff]  ;;  %7031 = vpow2.f32 %v8415_v31 }
 0x345   : > { %v4532_v51 = vmul.f32 %v8320_v5, %v9680_v12  ;;  %9682 = vst [vmem:[#allocation17_spill] sm:$0xff] %v8558_v1  ;;  %v4416_v41 = vadd.f32 %v8534_v36, %v4415_v9  ;;  %v3898_v50 = vrot.slane %v3897_v0, 2  ;;  %v3919_v54 = vrot.slane %v3918_v4, 2  ;;  %6372 = vmatprep.subr.bf16.mxu1 %v9646_v26  ;;  %9684 = vst [vmem:[#allocation28_spill] sm:$0xff] %v8564_v6  ;;  %v8566_v14 = vpop.eup %7019  ;;  %v8580_v34 = vpop.f32.mrf.mxu0 }
 0x346   : > { %v4547_v8 = vmul.f32 %v8426_v35, %v9683_v45  ;;  %9685 = vst [vmem:[#allocation73_spill] sm:$0xff] %v8566_v14  ;;  %v4404_v21 = vadd.f32 %v8481_v15, %v4403_v29  ;;  %v4548_v30 = vmul.f32 %v8426_v35, %v9686_v56  ;;  %v3929_v28 = vmax.f32 %v3928_v63, %v8471_v3 }
 0x347   : > { %v4664_v49 = vpack.c.bf16 %v4532_v51, %v4531_v19  ;;  %v4417_v9 = vadd.f32 %v8540_v33, %v4416_v41  ;;  %v3899_v12 = vmax.f32 %v3897_v0, %v3898_v50  ;;  %v3920_v36 = vmax.f32 %v3918_v4, %v3919_v54  ;;  %v8574_v17 = vpop.eup %7021  ;;  %v8587_v4 = vpop.f32.mrf.mxu1  ;;  %v9691_v54 = vld [vmem:[#allocation26_spill] sm:$0xff] }
 0x348   : > { %9687 = vst [vmem:[#allocation31_spill] sm:$0xff] %v8574_v17  ;;  %v4405_v45 = vadd.f32 %v8499_v43, %v4404_v21  ;;  %v4672_v20 = vpack.c.bf16 %v4548_v30, %v4547_v8  ;;  %v3950_v29 = vmax.f32 %v3949_v32, %v8479_v44  ;;  %v4529_v19 = vmul.f32 %v8320_v5, %v9688_v58  ;;  %v8582_v51 = vpop.eup %7023  ;;  %v9690_v32 = vld [vmem:[#allocation15_spill] sm:$0xff]  ;;  %v9693_v44 = vld [vmem:[#allocation2_spill] sm:$0xff] }
 0x349   : > { %6353 = vmatpush3.bf16.msra.mxu0 %v4664_v49  ;;  %9689 = vst [vmem:[#allocation14_spill] sm:$0xff] %v8582_v51  ;;  %v4418_v0 = vadd.f32 %v8548_v18, %v4417_v9  ;;  %v3900_v63 = vrot.slane %v3899_v12, 1  ;;  %v8589_v41 = vpop.eup %7025  ;;  %v4530_v58 = vmul.f32 %v8320_v5, %v9690_v32  ;;  %v4545_v8 = vmul.f32 %v8426_v35, %v9691_v54  ;;  %v9692_v21 = vld [vmem:[#allocation27_spill] sm:$0xff]  ;;  %v8607_v54 = vpop.f32.mrf.mxu0 }
 0x34a   : > { %6354 = vmatprep.subr.bf16.mxu0 %v9646_v26  ;;  %v4406_v50 = vrot.slane %v4405_v45, 4  ;;  %6373 = vmatpush3.bf16.msra.mxu1 %v4672_v20  ;;  %v4546_v31 = vmul.f32 %v8426_v35, %v9692_v21  ;;  %v3921_v30 = vrot.slane %v3920_v36, 1  ;;  %v8601_v9 = vmax.f32 %v3929_v28, %v8556_v52 }
 0x34b   : > { %v4419_v49 = vadd.f32 %v8558_v1, %v4418_v0  ;;  %v8598_v56 = vmax.f32 %v3899_v12, %v3900_v63  ;;  %6374 = vmatprep.subr.bf16.mxu1 %v9646_v26  ;;  %v8605_v18 = vmax.f32 %v3950_v29, %v8564_v6  ;;  %v4663_v32 = vpack.c.bf16 %v4530_v58, %v4529_v19  ;;  %v8612_v0 = vpop.f32.mrf.mxu1  ;;  %v9695_v63 = vld [vmem:[#allocation3_spill] sm:$0xff]  ;;  %v9697_v29 = vld [vmem:[#allocation38_spill] sm:$0xff] }
 0x34c   : > { %v4407_v20 = vadd.f32 %v4406_v50, %v4405_v45  ;;  %v4671_v33 = vpack.c.bf16 %v4546_v31, %v4545_v8  ;;  %9694 = vst [vmem:[#allocation15_spill] sm:$0xff] %v8612_v0  ;;  %v9696_v45 = vld [vmem:[#allocation32_spill] sm:$0xff]  ;;  %v9698_v8 = vld [vmem:[#allocation29_spill] sm:$0xff] }
 0x34d   : > { %v4420_v12 = vadd.f32 %v8566_v14, %v4419_v49  ;;  %v4029_v50 = vsub.f32 %v9696_v45, %v8598_v56  ;;  %v4030_v19 = vsub.f32 %v9697_v29, %v8598_v56  ;;  %6355 = vmatpush3.bf16.msra.mxu0 %v4663_v32  ;;  %v4031_v31 = vsub.f32 %v9698_v8, %v8598_v56  ;;  %v9699_v45 = vld [vmem:[#allocation35_spill] sm:$0xff]  ;;  %v9700_v29 = vld [vmem:[#allocation42_spill] sm:$0xff] }
 0x34e   : > { %v4408_v52 = vrot.slane %v4407_v20, 2  ;;  %6375 = vmatpush3.bf16.msra.mxu1 %v4671_v33  ;;  %v8623_v49 = vmax.f32 %v3920_v36, %v3921_v30  ;;  %6356 = vmatprep.subr.bf16.mxu0 %v9646_v26  ;;  %v4032_v6 = vsub.f32 %v9699_v45, %v8598_v56  ;;  %v4033_v32 = vsub.f32 %v9700_v29, %v8598_v56 }
 0x34f   : > { %v4421_v58 = vadd.f32 %v8574_v17, %v4420_v12  ;;  %6376 = vmatprep.subr.bf16.mxu1 %v9646_v26  ;;  %v8635_v12 = vpop.eup %7027  ;;  %v4034_v30 = vsub.f32 %v8242_v53, %v8598_v56  ;;  %v4037_v45 = vsub.f32 %v8266_v10, %v8598_v56  ;;  %v4221_v29 = vmul.f32 1.442695, %v4029_v50 }
 0x350   : > { %v4409_v28 = vadd.f32 %v4408_v52, %v4407_v20  ;;  %v4035_v52 = vsub.f32 %v8211_v59, %v8598_v56  ;;  %v4036_v20 = vsub.f32 %v8229_v39, %v8598_v56  ;;  %v4223_v33 = vmul.f32 1.442695, %v4030_v19  ;;  %v8646_v21 = vpop.eup %7029 }
 0x351   : > { %v4422_v36 = vadd.f32 %v8582_v51, %v4421_v58  ;;  %v4038_v58 = vsub.f32 %v8284_v57, %v8598_v56  ;;  %v4039_v53 = vsub.f32 %v9651_v62, %v8598_v56  ;;  %v4225_v59 = vmul.f32 1.442695, %v4031_v31  ;;  %v8660_v57 = vpop.eup %7031 }
 0x352   : > { %v4410_v8 = vrot.slane %v4409_v28, 1  ;;  %v4040_v39 = vsub.f32 %v9657_v42, %v8598_v56  ;;  %v4041_v10 = vsub.f32 %v8294_v11, %v8598_v56  ;;  %7033 = vpow2.f32 %v4221_v29 }
 0x353   : > { %v4423_v3 = vadd.f32 %v8589_v41, %v4422_v36  ;;  %v4042_v19 = vsub.f32 %v8316_v13, %v8598_v56  ;;  %7035 = vpow2.f32 %v4223_v33  ;;  %v4227_v36 = vmul.f32 1.442695, %v4032_v6 }
 0x354   : > { %v4411_v51 = vadd.f32 %v4410_v8, %v4409_v28  ;;  %v4043_v62 = vsub.f32 %v8290_v16, %v8598_v56  ;;  %v4044_v28 = vsub.f32 %v8302_v40, %v8598_v56  ;;  %v4229_v42 = vmul.f32 1.442695, %v4033_v32  ;;  %v9701_v32 = vld [vmem:[#allocation33_spill] sm:$0xff] }
 0x355   : > { %v4424_v50 = vadd.f32 %v8635_v12, %v4423_v3  ;;  %v4231_v31 = vmul.f32 1.442695, %v4034_v30  ;;  %7037 = vpow2.f32 %v4225_v59  ;;  %v4233_v8 = vmul.f32 1.442695, %v4035_v52  ;;  %v9705_v59 = vld [vmem:[#allocation43_spill] sm:$0xff] }
 0x356   : > { %v4235_v3 = vmul.f32 1.442695, %v4036_v20  ;;  %7039 = vrcp.f32 %v4411_v51  ;;  %v4237_v29 = vmul.f32 1.442695, %v4037_v45  ;;  %v4239_v13 = vmul.f32 1.442695, %v4038_v58 }
 0x357   : > { %v4425_v11 = vadd.f32 %v8646_v21, %v4424_v50  ;;  %v4241_v33 = vmul.f32 1.442695, %v4039_v53  ;;  %7041 = vpow2.f32 %v4227_v36  ;;  %v4243_v14 = vmul.f32 1.442695, %v4040_v39  ;;  %v9702_v51 = vld [vmem:[#allocation39_spill] sm:$0xff]  ;;  %v9703_v20 = vld [vmem:[#allocation30_spill] sm:$0xff]  ;;  %v8684_v36 = vpop.f32.mrf.mxu0 }
 0x358   : > { %v4245_v1 = vmul.f32 1.442695, %v4041_v10  ;;  %7043 = vpow2.f32 %v4229_v42  ;;  %v4247_v16 = vmul.f32 1.442695, %v4042_v19  ;;  %v4249_v17 = vmul.f32 1.442695, %v4043_v62 }
 0x359   : > { %v4426_v6 = vadd.f32 %v8660_v57, %v4425_v11  ;;  %v8668_v40 = vmul.f32 1.442695, %v4044_v28  ;;  %7045 = vpow2.f32 %v4231_v31  ;;  %v4045_v30 = vsub.f32 %v9701_v32, %v8623_v49  ;;  %v9704_v58 = vld [vmem:[#allocation36_spill] sm:$0xff]  ;;  %v9706_v28 = vld [vmem:[#allocation50_spill] sm:$0xff]  ;;  %v9707_v31 = vld [vmem:[#allocation53_spill] sm:$0xff] }
 0x35a   : > { %v4046_v52 = vsub.f32 %v9702_v51, %v8623_v49  ;;  %7047 = vpow2.f32 %v4233_v8  ;;  %v4047_v45 = vsub.f32 %v9703_v20, %v8623_v49  ;;  %v4048_v53 = vsub.f32 %v9704_v58, %v8623_v49  ;;  %v8692_v8 = vpop.f32.mrf.mxu1  ;;  %v8708_v58 = vpop.f32.mrf.mxu0 }
 0x35b   : > { %v4427_v56 = vrot.slane %v4426_v6, 4  ;;  %v4049_v39 = vsub.f32 %v9705_v59, %v8623_v49  ;;  %7049 = vpow2.f32 %v4235_v3  ;;  %v4050_v50 = vsub.f32 %v8244_v60, %v8623_v49  ;;  %v9708_v60 = vld [vmem:[#allocation48_spill] sm:$0xff] }
 0x35c   : > { %v4051_v19 = vsub.f32 %v8213_v27, %v8623_v49  ;;  %7051 = vpow2.f32 %v4237_v29  ;;  %v4052_v62 = vsub.f32 %v8231_v37, %v8623_v49  ;;  %v4053_v42 = vsub.f32 %v9706_v28, %v8623_v49 }
 0x35d   : > { %v4428_v10 = vadd.f32 %v4427_v56, %v4426_v6  ;;  %v4054_v11 = vsub.f32 %v9707_v31, %v8623_v49  ;;  %7053 = vpow2.f32 %v4239_v13  ;;  %v4055_v6 = vsub.f32 %v9708_v60, %v8623_v49  ;;  %v8712_v60 = vpop.f32.mrf.mxu1 }
 0x35e   : > { %7055 = vpow2.f32 %v4241_v33  ;;  %v4253_v20 = vmul.f32 1.442695, %v4045_v30  ;;  %v4255_v59 = vmul.f32 1.442695, %v4046_v52  ;;  %v4257_v28 = vmul.f32 1.442695, %v4047_v45 }
 0x35f   : > { %v4429_v3 = vrot.slane %v4428_v10, 2  ;;  %v8704_v32 = vpop.eup %7033  ;;  %7057 = vpow2.f32 %v4243_v14  ;;  %v4259_v31 = vmul.f32 1.442695, %v4048_v53  ;;  %v4261_v14 = vmul.f32 1.442695, %v4049_v39 }
 0x360   : > { %9709 = vst [vmem:[#allocation26_spill] sm:$0xff] %v8704_v32  ;;  %v8710_v33 = vpop.eup %7035  ;;  %7059 = vpow2.f32 %v4245_v1  ;;  %v4263_v30 = vmul.f32 1.442695, %v4050_v50  ;;  %v8718_v13 = vmul.f32 1.442695, %v4051_v19  ;;  %v9714_v19 = vmax.f32 %v8605_v18, %v8612_v0 }
 0x361   : > { %v4430_v51 = vadd.f32 %v4429_v3, %v4428_v10  ;;  %9710 = vst [vmem:[#allocation27_spill] sm:$0xff] %v8710_v33  ;;  %7061 = vpow2.f32 %v4247_v16  ;;  %v4433_v10 = vadd.f32 %v8710_v33, %v8704_v32  ;;  %v8720_v56 = vmul.f32 1.442695, %v4052_v62  ;;  %v8727_v16 = vpop.f32.mrf.mxu0 }
 0x362   : > { %v8716_v3 = vpop.eup %7037  ;;  %7063 = vpow2.f32 %v4249_v17  ;;  %v8725_v53 = vmul.f32 1.442695, %v4053_v42  ;;  %v8731_v39 = vmul.f32 1.442695, %v4054_v11  ;;  %v9713_v17 = vmax.f32 %v8601_v9, %v8607_v54 }
 0x363   : > { %v4431_v29 = vrot.slane %v4430_v51, 1  ;;  %9711 = vst [vmem:[#allocation2_spill] sm:$0xff] %v8716_v3  ;;  %v8722_v1 = vpop.eup %7039  ;;  %v4434_v45 = vadd.f32 %v8716_v3, %v4433_v10  ;;  %7065 = vpow2.f32 %v4253_v20  ;;  %v3953_v62 = vmax.f32 %v9714_v19, %v8538_v25  ;;  %v9715_v20 = vld [vmem:[#allocation12_spill] sm:$0xff]  ;;  %v9718_v19 = vld [vmem:[#allocation25_spill] sm:$0xff] }
 0x364   : > { %v8729_v37 = vpop.eup %7041  ;;  %7067 = vpow2.f32 %v4255_v59  ;;  %v3932_v50 = vmax.f32 %v9713_v17, %v8532_v22  ;;  %v4527_v11 = vmul.f32 %v8320_v5, %v9715_v20  ;;  %v9716_v59 = vld [vmem:[#allocation13_spill] sm:$0xff]  ;;  %v9717_v17 = vld [vmem:[#allocation23_spill] sm:$0xff]  ;;  %v4544_v27 = vmul.f32 %v8426_v35, %v9718_v19  ;;  %v9719_v19 = vld [vmem:[#allocation10_spill] sm:$0xff] }
 0x365   : > { %v4432_v52 = vadd.f32 %v4431_v29, %v4430_v51  ;;  %9712 = vst [vmem:[#allocation3_spill] sm:$0xff] %v8729_v37  ;;  %v8741_v29 = vpop.f32.mrf.mxu1  ;;  %v8743_v42 = vpop.eup %7043  ;;  %v4435_v51 = vadd.f32 %v8729_v37, %v4434_v45  ;;  %v4528_v10 = vmul.f32 %v8320_v5, %v9716_v59  ;;  %v4543_v18 = vmul.f32 %v8426_v35, %v9717_v17 }
 0x366   : > { %v8750_v9 = vpop.eup %7045  ;;  %v3933_v33 = vmax.f32 %v3932_v50, %v8580_v34  ;;  %v8760_v32 = vmul.f32 1.442695, %v4055_v6  ;;  %v3954_v59 = vmax.f32 %v3953_v62, %v8587_v4  ;;  %v8763_v37 = vpop.f32.mrf.mxu0  ;;  %v4525_v50 = vmul.f32 %v8320_v5, %v9719_v19 }
 0x367   : > { %7069 = vrcp.f32 %v4432_v52  ;;  %v8757_v52 = vpop.eup %7047  ;;  %v4436_v45 = vadd.f32 %v8743_v42, %v4435_v51  ;;  %v4662_v20 = vpack.c.bf16 %v4528_v10, %v4527_v11  ;;  %v4670_v17 = vpack.c.bf16 %v4544_v27, %v4543_v18  ;;  %v8770_v25 = vpop.f32.mrf.mxu1  ;;  %v9720_v51 = vld [vmem:[#allocation11_spill] sm:$0xff]  ;;  %v9722_v10 = vld [vmem:[#allocation21_spill] sm:$0xff] }
 0x368   : > { %7071 = vpow2.f32 %v4257_v28  ;;  %v8765_v28 = vpop.eup %7049  ;;  %v3934_v3 = vmax.f32 %v3933_v33, %v8708_v58  ;;  %v3955_v62 = vmax.f32 %v3954_v59, %v8712_v60  ;;  %v9721_v33 = vld [vmem:[#allocation20_spill] sm:$0xff] }
 0x369   : > { %7073 = vpow2.f32 %v4259_v31  ;;  %v8772_v0 = vpop.eup %7051  ;;  %v4437_v6 = vadd.f32 %v8750_v9, %v4436_v45  ;;  %6357 = vmatpush3.bf16.msra.mxu0 %v4662_v20  ;;  %v4526_v31 = vmul.f32 %v8320_v5, %v9720_v51  ;;  %6377 = vmatpush3.bf16.msra.mxu1 %v4670_v17  ;;  %v4541_v11 = vmul.f32 %v8426_v35, %v9721_v33 }
 0x36a   : > { %7075 = vpow2.f32 %v8668_v40  ;;  %v8779_v27 = vpop.eup %7053  ;;  %6358 = vmatprep.subr.bf16.mxu0 %v9646_v26  ;;  %v4542_v40 = vmul.f32 %v8426_v35, %v9722_v10  ;;  %v3935_v18 = vmax.f32 %v3934_v3, %v8763_v37  ;;  %v9723_v5 = vsub.f32 %v9658_v48, %v8623_v49  ;;  %6378 = vmatprep.subr.bf16.mxu1 %v9646_v26 }
 0x36b   : > { %7077 = vpow2.f32 %v4261_v14  ;;  %v8787_v45 = vpop.eup %7055  ;;  %v4438_v20 = vadd.f32 %v8757_v52, %v4437_v6  ;;  %v4661_v14 = vpack.c.bf16 %v4526_v31, %v4525_v50  ;;  %v3956_v17 = vmax.f32 %v3955_v62, %v8770_v25 }
 0x36c   : > { %v4275_v59 = vmul.f32 1.442695, %v9723_v5  ;;  %v8795_v19 = vpop.eup %7057  ;;  %7079 = vpow2.f32 %v4263_v30  ;;  %v4669_v51 = vpack.c.bf16 %v4542_v40, %v4541_v11  ;;  %v3936_v35 = vmax.f32 %v3935_v18, %v8684_v36 }
 0x36d   : > { %v4571_v3 = vmul.f32 %v8722_v1, %v8481_v15  ;;  %v8800_v33 = vpop.eup %7059  ;;  %v4439_v6 = vadd.f32 %v8765_v28, %v4438_v20  ;;  %v9724_v48 = vsub.f32 %v8296_v61, %v8623_v49  ;;  %6359 = vmatpush3.bf16.msra.mxu0 %v4661_v14  ;;  %v3957_v50 = vmax.f32 %v3956_v17, %v8692_v8 }
 0x36e   : > { %v4572_v30 = vmul.f32 %v8722_v1, %v8499_v43  ;;  %v8811_v62 = vpop.eup %7061  ;;  %7081 = vpow2.f32 %v8718_v13  ;;  %6379 = vmatpush3.bf16.msra.mxu1 %v4669_v51  ;;  %v3937_v15 = vmax.f32 %v3936_v35, %v8727_v16  ;;  %6384 = vmatprep.subr.bf16.mxu0 %v9646_v26  ;;  %v4569_v61 = vmul.f32 %v8722_v1, %v8457_v2 }
 0x36f   : > { %v8806_v10 = vmul.f32 1.442695, %v9724_v48  ;;  %v4570_v31 = vmul.f32 %v8722_v1, %v8464_v47  ;;  %v8820_v11 = vpop.eup %7063  ;;  %v4440_v40 = vadd.f32 %v8772_v0, %v4439_v6  ;;  %7083 = vpow2.f32 %v8720_v56  ;;  %6404 = vmatprep.subr.bf16.mxu1 %v9646_v26 }
 0x370   : > { %v3958_v43 = vmax.f32 %v3957_v50, %v8741_v29  ;;  %v4684_v13 = vpack.c.bf16 %v4572_v30, %v4571_v3  ;;  %v8826_v18 = vpop.eup %7065  ;;  %7085 = vpow2.f32 %v8725_v53  ;;  %v9726_v2 = vsub.f32 %v8318_v38, %v8623_v49 }
 0x371   : > { %9725 = vst [vmem:[#allocation32_spill] sm:$0xff] %v8826_v18  ;;  %v9727_v47 = vsub.f32 %v8292_v7, %v8623_v49  ;;  %v3938_v56 = vrot.slane %v3937_v15, 4  ;;  %v9728_v14 = vpack.c.bf16 %v9693_v44, %v9693_v44  ;;  %v8842_v17 = vpop.eup %7067  ;;  %v4441_v51 = vadd.f32 %v8779_v27, %v4440_v40 }
 0x372   : > { %v8832_v20 = vmul.f32 1.442695, %v9726_v2  ;;  %9729 = vst [vmem:[#allocation38_spill] sm:$0xff] %v8842_v17  ;;  %7087 = vpow2.f32 %v8731_v39  ;;  %v3959_v53 = vrot.slane %v3958_v43, 4  ;;  %v9730_v38 = vpack.c.bf16 %v9695_v63, %v9695_v63 }
 0x373   : > { %v8837_v5 = vmul.f32 1.442695, %v9727_v47  ;;  %6361 = vmatmul.mubr.bf16.vlgmr.msra.gmra.mxu0 %v9728_v14  ;;  %v4683_v7 = vpack.c.bf16 %v4570_v31, %v4569_v61  ;;  %7089 = vpow2.f32 %v8760_v32  ;;  %v4454_v44 = vadd.f32 %v8842_v17, %v8826_v18  ;;  %v9752_v18 = vld [vmem:[#allocation47_spill] sm:$0xff] }
 0x374   : > { %6381 = vmatmul.mubr.bf16.vlgmr.msra.gmra.mxu1 %v9730_v38  ;;  %6385 = vmatpush3.bf16.msra.mxu0 %v4684_v13  ;;  %v8849_v35 = vpop.eup %7069  ;;  %v3939_v3 = vmax.f32 %v3937_v15, %v3938_v56  ;;  %v4567_v39 = vmul.f32 %v8722_v1, %v8442_v46  ;;  %v4442_v6 = vadd.f32 %v8787_v45, %v4441_v51  ;;  %7091 = vpow2.f32 %v4275_v59  ;;  %v9734_v51 = vld [vmem:[#allocation31_spill] sm:$0xff] }
 0x375   : > { %6386 = vmatprep.subr.bf16.mxu0 %v9646_v26  ;;  %6400 = vmatprep.mubr.msk.bf16.mxu0 %vm7190_vm1, %v9646_v26  ;;  %v8859_v63 = vpop.eup %7071  ;;  %v3960_v48 = vmax.f32 %v3958_v43, %v3959_v53  ;;  %v4587_v32 = vmul.f32 %v8849_v35, %v8646_v21  ;;  %v4568_v50 = vmul.f32 %v8722_v1, %v8450_v24  ;;  %7093 = vpow2.f32 %v8806_v10 }
 0x376   : > { %9731 = vst [vmem:[#allocation29_spill] sm:$0xff] %v8859_v63  ;;  %6420 = vmatprep.mubr.msk.bf16.mxu1 %vm7190_vm1, %v9646_v26  ;;  %v4455_v46 = vadd.f32 %v8859_v63, %v4454_v44  ;;  %v3940_v30 = vrot.slane %v3939_v3, 2  ;;  %v4588_v15 = vmul.f32 %v8849_v35, %v8660_v57  ;;  %v8871_v61 = vpop.eup %7073  ;;  %v4443_v31 = vadd.f32 %v8795_v19, %v4442_v6 }
 0x377   : > { %9732 = vst [vmem:[#allocation35_spill] sm:$0xff] %v8871_v61  ;;  %v3961_v40 = vrot.slane %v3960_v48, 2  ;;  %v4585_v21 = vmul.f32 %v8849_v35, %v8589_v41  ;;  %v4586_v24 = vmul.f32 %v8849_v35, %v8635_v12  ;;  %v8878_v43 = vpop.eup %7075  ;;  %v4565_v57 = vmul.f32 %v8722_v1, %v8421_v23 }
 0x378   : > { %6387 = vmatpush3.bf16.msra.mxu0 %v4683_v7  ;;  %v4456_v59 = vadd.f32 %v8871_v61, %v4455_v46  ;;  %v3941_v13 = vmax.f32 %v3939_v3, %v3940_v30  ;;  %v4692_v2 = vpack.c.bf16 %v4588_v15, %v4587_v32  ;;  %v8884_v47 = vpop.eup %7077  ;;  %v4444_v56 = vadd.f32 %v8800_v33, %v4443_v31  ;;  %v9735_v7 = vld [vmem:[#allocation72_spill] sm:$0xff]  ;;  %v9736_v3 = vld [vmem:[#allocation17_spill] sm:$0xff]  ;;  %v9739_v15 = vld [vmem:[#allocation14_spill] sm:$0xff] }
 0x379   : > { %6388 = vmatprep.subr.bf16.mxu0 %v9646_v26  ;;  %9733 = vst [vmem:[#allocation42_spill] sm:$0xff] %v8884_v47  ;;  %v3962_v14 = vmax.f32 %v3960_v48, %v3961_v40  ;;  %v4682_v41 = vpack.c.bf16 %v4568_v50, %v4567_v39  ;;  %v4583_v12 = vmul.f32 %v8849_v35, %v9734_v51  ;;  %v8896_v23 = vpop.eup %7079  ;;  %v9738_v48 = vld [vmem:[#allocation73_spill] sm:$0xff]  ;;  %7095 = vpow2.f32 %v8832_v20 }
 0x37a   : > { %v4457_v53 = vadd.f32 %v8884_v47, %v4456_v59  ;;  %v3942_v38 = vrot.slane %v3941_v13, 1  ;;  %6405 = vmatpush3.bf16.msra.mxu1 %v4692_v2  ;;  %v4566_v44 = vmul.f32 %v8722_v1, %v9735_v7  ;;  %v8894_v6 = vmul.f32 %v8849_v35, %v9736_v3  ;;  %9737 = vst [vmem:[#allocation33_spill] sm:$0xff] %v8896_v23  ;;  %v9743_v7 = vld [vmem:[#allocation63_spill] sm:$0xff] }
 0x37b   : > { %v4445_v32 = vadd.f32 %v8811_v62, %v4444_v56  ;;  %6406 = vmatprep.subr.bf16.mxu1 %v9646_v26  ;;  %v4691_v39 = vpack.c.bf16 %v4586_v24, %v4585_v21  ;;  %v4582_v50 = vmul.f32 %v8849_v35, %v9738_v48  ;;  %v4584_v31 = vmul.f32 %v8849_v35, %v9739_v15  ;;  %v8909_v59 = vpop.eup %7081 }
 0x37c   : > { %6389 = vmatpush3.bf16.msra.mxu0 %v4682_v41  ;;  %v4458_v46 = vadd.f32 %v8896_v23, %v4457_v53  ;;  %v8904_v30 = vmax.f32 %v3941_v13, %v3942_v38  ;;  %v4681_v40 = vpack.c.bf16 %v4566_v44, %v4565_v57  ;;  %v9740_v21 = vsub.f32 %v8304_v55, %v8623_v49  ;;  %v8916_v56 = vpop.eup %7083  ;;  %v9741_v57 = vld [vmem:[#allocation4_spill] sm:$0xff] }
 0x37d   : > { %6390 = vmatprep.subr.bf16.mxu0 %v9646_v26  ;;  %v4446_v10 = vadd.f32 %v8820_v11, %v4445_v32  ;;  %v4689_v2 = vpack.c.bf16 %v4582_v50, %v8894_v6  ;;  %v3963_v41 = vrot.slane %v3962_v14, 1  ;;  %v8920_v51 = vpop.eup %7085  ;;  %v9742_v55 = vld [vmem:[#allocation56_spill] sm:$0xff]  ;;  %7097 = vpow2.f32 %v8837_v5  ;;  %v9744_v6 = vld [vmem:[#allocation54_spill] sm:$0xff]  ;;  %v9745_v50 = vld [vmem:[#allocation5_spill] sm:$0xff] }
 0x37e   : > { %v4283_v24 = vmul.f32 1.442695, %v9740_v21  ;;  %v4459_v13 = vadd.f32 %v8909_v59, %v4458_v46  ;;  %6407 = vmatpush3.bf16.msra.mxu1 %v4691_v39  ;;  %v4061_v49 = vsub.f32 %v9742_v55, %v8904_v30  ;;  %v4062_v44 = vsub.f32 %v9743_v7, %v8904_v30 }
 0x37f   : > { %v4447_v38 = vadd.f32 %v8878_v43, %v4446_v10  ;;  %6408 = vmatprep.subr.bf16.mxu1 %v9646_v26  ;;  %v8930_v20 = vpop.eup %7087  ;;  %v4063_v32 = vsub.f32 %v9744_v6, %v8904_v30  ;;  %v4690_v39 = vpack.c.bf16 %v4584_v31, %v4583_v12  ;;  %v9746_v10 = vld [vmem:[#allocation68_spill] sm:$0xff]  ;;  %v8948_v12 = vmax.f32 %v3962_v14, %v3963_v41  ;;  %v9748_v31 = vld [vmem:[#allocation70_spill] sm:$0xff]  ;;  %v9750_v14 = vld [vmem:[#allocation51_spill] sm:$0xff] }
 0x380   : > { %v4460_v3 = vadd.f32 %v8916_v56, %v4459_v13  ;;  %6391 = vmatpush3.bf16.msra.mxu0 %v4681_v40  ;;  %v8936_v48 = vpop.eup %7089  ;;  %7099 = vpow2.f32 %v4283_v24  ;;  %v8943_v21 = vmul.f32 %v8722_v1, %v9746_v10  ;;  %v9747_v13 = vld [vmem:[#allocation59_spill] sm:$0xff]  ;;  %v8952_v40 = vmul.f32 %v8722_v1, %v9748_v31  ;;  %v9749_v6 = vld [vmem:[#allocation46_spill] sm:$0xff] }
 0x381   : > { %v4448_v15 = vrot.slane %v4447_v38, 4  ;;  %6392 = vmatprep.subr.bf16.mxu0 %v9646_v26  ;;  %v4064_v55 = vsub.f32 %v9747_v13, %v8904_v30  ;;  %v8954_v7 = vpop.eup %7091  ;;  %v4065_v46 = vsub.f32 %v9749_v6, %v8904_v30  ;;  %v4285_v10 = vmul.f32 1.442695, %v4061_v49 }
 0x382   : > { %v4461_v5 = vadd.f32 %v8920_v51, %v4460_v3  ;;  %6409 = vmatpush3.bf16.msra.mxu1 %v4690_v39  ;;  %v4287_v53 = vmul.f32 1.442695, %v4062_v44  ;;  %v4066_v41 = vsub.f32 %v9750_v14, %v8904_v30  ;;  %v9751_v39 = vld [vmem:[#allocation69_spill] sm:$0xff]  ;;  %v4289_v31 = vmul.f32 1.442695, %v4063_v32 }
 0x383   : > { %v4449_v24 = vadd.f32 %v4448_v15, %v4447_v38  ;;  %6410 = vmatprep.subr.bf16.mxu1 %v9646_v26  ;;  %v4067_v13 = vsub.f32 %v9751_v39, %v8904_v30  ;;  %v4068_v38 = vsub.f32 %v9752_v18, %v8904_v30  ;;  %v9753_v15 = vld [vmem:[#allocation16_spill] sm:$0xff]  ;;  %7101 = vpow2.f32 %v4285_v10 }
 0x384   : > { %v4462_v3 = vadd.f32 %v8930_v20, %v4461_v5  ;;  %v4069_v6 = vsub.f32 %v9753_v15, %v8904_v30  ;;  %v4070_v44 = vsub.f32 %v8607_v54, %v8904_v30  ;;  %7103 = vpow2.f32 %v4287_v53  ;;  %v8976_v15 = vpop.eup %7093 }
 0x385   : > { %v4450_v17 = vrot.slane %v4449_v24, 2  ;;  %v4291_v5 = vmul.f32 1.442695, %v4064_v55  ;;  %v4071_v32 = vsub.f32 %v8532_v22, %v8904_v30  ;;  %v4072_v39 = vsub.f32 %v8580_v34, %v8904_v30 }
 0x386   : > { %v4463_v49 = vadd.f32 %v8936_v48, %v4462_v3  ;;  %6411 = vmatpush3.bf16.msra.mxu1 %v4689_v2  ;;  %v4293_v18 = vmul.f32 1.442695, %v4065_v46  ;;  %v4073_v54 = vsub.f32 %v8708_v58, %v8904_v30  ;;  %7105 = vpow2.f32 %v4289_v31  ;;  %v8988_v3 = vpop.eup %7095 }
 0x387   : > { %v4451_v14 = vadd.f32 %v4450_v17, %v4449_v24  ;;  %6412 = vmatprep.subr.bf16.mxu1 %v9646_v26  ;;  %v4295_v53 = vmul.f32 1.442695, %v4066_v41  ;;  %v4074_v17 = vsub.f32 %v8763_v37, %v8904_v30  ;;  %v4075_v22 = vsub.f32 %v8684_v36, %v8904_v30 }
 0x388   : > { %v4464_v10 = vadd.f32 %v8954_v7, %v4463_v49  ;;  %v4297_v34 = vmul.f32 1.442695, %v4067_v13  ;;  %v4076_v55 = vsub.f32 %v8727_v16, %v8904_v30  ;;  %7107 = vpow2.f32 %v4291_v5  ;;  %v9755_v5 = vld [vmem:[#allocation65_spill] sm:$0xff] }
 0x389   : > { %v4452_v2 = vrot.slane %v4451_v14, 1  ;;  %v4299_v24 = vmul.f32 1.442695, %v4068_v38  ;;  %7109 = vpow2.f32 %v4293_v18  ;;  %v4301_v41 = vmul.f32 1.442695, %v4069_v6  ;;  %v9754_v6 = vld [vmem:[#allocation57_spill] sm:$0xff] }
 0x38a   : > { %v4465_v46 = vadd.f32 %v8976_v15, %v4464_v10  ;;  %v4303_v31 = vmul.f32 1.442695, %v4070_v44  ;;  %7111 = vpow2.f32 %v4295_v53  ;;  %v4305_v37 = vmul.f32 1.442695, %v4071_v32  ;;  %v8991_v36 = vpop.eup %7097  ;;  %v9756_v32 = vld [vmem:[#allocation55_spill] sm:$0xff]  ;;  %v9757_v18 = vld [vmem:[#allocation60_spill] sm:$0xff] }
 0x38b   : > { %v4453_v58 = vadd.f32 %v4452_v2, %v4451_v14  ;;  %v4307_v61 = vmul.f32 1.442695, %v4072_v39  ;;  %7113 = vpow2.f32 %v4297_v34  ;;  %v4309_v13 = vmul.f32 1.442695, %v4073_v54  ;;  %v9758_v2 = vld [vmem:[#allocation49_spill] sm:$0xff] }
 0x38c   : > { %v4466_v49 = vadd.f32 %v8988_v3, %v4465_v46  ;;  %v4311_v10 = vmul.f32 1.442695, %v4074_v17  ;;  %v4313_v63 = vmul.f32 1.442695, %v4075_v22  ;;  %7115 = vpow2.f32 %v4299_v24  ;;  %v9759_v22 = vld [vmem:[#allocation52_spill] sm:$0xff]  ;;  %v9760_v46 = vld [vmem:[#allocation71_spill] sm:$0xff] }
 0x38d   : > { %v8993_v16 = vpop.eup %7099  ;;  %v4315_v38 = vmul.f32 1.442695, %v4076_v55  ;;  %v4077_v44 = vsub.f32 %v9754_v6, %v8948_v12  ;;  %7117 = vrcp.f32 %v4453_v58  ;;  %v4078_v14 = vsub.f32 %v9755_v5, %v8948_v12  ;;  %v9761_v24 = vld [vmem:[#allocation22_spill] sm:$0xff] }
 0x38e   : > { %v4467_v30 = vadd.f32 %v8991_v36, %v4466_v49  ;;  %v4079_v39 = vsub.f32 %v9756_v32, %v8948_v12  ;;  %v4080_v54 = vsub.f32 %v9757_v18, %v8948_v12  ;;  %7119 = vpow2.f32 %v4301_v41  ;;  %v9762_v49 = vld [vmem:[#allocation28_spill] sm:$0xff]  ;;  %v9764_v41 = vld [vmem:[#allocation15_spill] sm:$0xff] }
 0x38f   : > { %v4081_v17 = vsub.f32 %v9758_v2, %v8948_v12  ;;  %v4082_v34 = vsub.f32 %v9759_v22, %v8948_v12  ;;  %7121 = vpow2.f32 %v4303_v31  ;;  %v4083_v55 = vsub.f32 %v9760_v46, %v8948_v12  ;;  %v9766_v31 = vld [vmem:[#allocation19_spill] sm:$0xff] }
 0x390   : > { %v4468_v53 = vadd.f32 %v8993_v16, %v4467_v30  ;;  %v4084_v58 = vsub.f32 %v9761_v24, %v8948_v12  ;;  %v9015_v5 = vpop.eup %7101  ;;  %7123 = vpow2.f32 %v4305_v37  ;;  %v4086_v32 = vsub.f32 %v9764_v41, %v8948_v12 }
 0x391   : > { %9763 = vst [vmem:[#allocation39_spill] sm:$0xff] %v9015_v5  ;;  %v4317_v18 = vmul.f32 1.442695, %v4077_v44  ;;  %v9019_v2 = vpop.eup %7103  ;;  %7125 = vpow2.f32 %v4307_v61  ;;  %v4319_v24 = vmul.f32 1.442695, %v4078_v14 }
 0x392   : > { %v4469_v30 = vrot.slane %v4468_v53, 4  ;;  %9765 = vst [vmem:[#allocation30_spill] sm:$0xff] %v9019_v2  ;;  %7127 = vpow2.f32 %v4309_v13  ;;  %v4475_v6 = vadd.f32 %v9019_v2, %v9015_v5  ;;  %v4321_v22 = vmul.f32 1.442695, %v4079_v39 }
 0x393   : > { %v9029_v41 = vpop.eup %7105  ;;  %7129 = vpow2.f32 %v4311_v10  ;;  %v4323_v13 = vmul.f32 1.442695, %v4080_v54  ;;  %v4327_v37 = vmul.f32 1.442695, %v4082_v34  ;;  %v4329_v2 = vmul.f32 1.442695, %v4083_v55 }
 0x394   : > { %v4470_v23 = vadd.f32 %v4469_v30, %v4468_v53  ;;  %v4476_v14 = vadd.f32 %v9029_v41, %v4475_v6  ;;  %7131 = vpow2.f32 %v4317_v18  ;;  %v4325_v30 = vmul.f32 1.442695, %v4081_v17  ;;  %v9768_v54 = vld [vmem:[#allocation34_spill] sm:$0xff]  ;;  %v9769_v18 = vld [vmem:[#allocation37_spill] sm:$0xff] }
 0x395   : > { %v9036_v53 = vpop.eup %7107  ;;  %7133 = vpow2.f32 %v4319_v24  ;;  %v4331_v47 = vmul.f32 1.442695, %v4084_v58  ;;  %v4680_v39 = vpack.c.bf16 %v8952_v40, %v8943_v21  ;;  %v4579_v6 = vmul.f32 %v8849_v35, %v9768_v54  ;;  %v9771_v40 = vld [vmem:[#allocation67_spill] sm:$0xff]  ;;  %v9772_v24 = vld [vmem:[#allocation41_spill] sm:$0xff] }
 0x396   : > { %v4471_v46 = vrot.slane %v4470_v23, 2  ;;  %9767 = vst [vmem:[#allocation36_spill] sm:$0xff] %v9036_v53  ;;  %v9038_v5 = vpop.eup %7109  ;;  %7135 = vpow2.f32 %v4313_v63  ;;  %v4477_v61 = vadd.f32 %v9036_v53, %v4476_v14  ;;  %v4580_v17 = vmul.f32 %v8849_v35, %v9769_v18 }
 0x397   : > { %v9041_v44 = vpop.eup %7111  ;;  %7137 = vpow2.f32 %v4321_v22  ;;  %6393 = vmatpush3.bf16.msra.mxu0 %v4680_v39  ;;  %v4562_v22 = vmul.f32 %v8722_v1, %v9771_v40  ;;  %v4577_v14 = vmul.f32 %v8849_v35, %v9772_v24  ;;  %v9775_v40 = vld [vmem:[#allocation64_spill] sm:$0xff] }
 0x398   : > { %v4472_v10 = vadd.f32 %v4471_v46, %v4470_v23  ;;  %v9049_v34 = vpop.eup %7113  ;;  %7139 = vpow2.f32 %v4315_v38  ;;  %v4478_v63 = vadd.f32 %v9038_v5, %v4477_v61  ;;  %v9770_v23 = vld [vmem:[#allocation66_spill] sm:$0xff]  ;;  %v4688_v21 = vpack.c.bf16 %v4580_v17, %v4579_v6  ;;  %6394 = vmatprep.subr.bf16.mxu0 %v9646_v26 }
 0x399   : > { %v4561_v58 = vmul.f32 %v8722_v1, %v9770_v23  ;;  %v9054_v46 = vpop.eup %7115  ;;  %7141 = vpow2.f32 %v4323_v13  ;;  %v9773_v61 = vld [vmem:[#allocation18_spill] sm:$0xff]  ;;  %v4560_v24 = vmul.f32 %v8722_v1, %v9775_v40 }
 0x39a   : > { %v4473_v55 = vrot.slane %v4472_v10, 1  ;;  %v9060_v54 = vpop.eup %7117  ;;  %v4479_v38 = vadd.f32 %v9041_v44, %v4478_v63  ;;  %7143 = vpow2.f32 %v4325_v30  ;;  %v4578_v23 = vmul.f32 %v8849_v35, %v9773_v61  ;;  %6413 = vmatpush3.bf16.msra.mxu1 %v4688_v21  ;;  %v9774_v6 = vld [vmem:[#allocation62_spill] sm:$0xff]  ;;  %v9777_v21 = vld [vmem:[#allocation24_spill] sm:$0xff] }
 0x39b   : > { %v9066_v13 = vpop.eup %7119  ;;  %7145 = vpow2.f32 %v4327_v37  ;;  %v4679_v39 = vpack.c.bf16 %v4562_v22, %v4561_v58  ;;  %v4559_v17 = vmul.f32 %v8722_v1, %v9774_v6  ;;  %v4335_v61 = vmul.f32 1.442695, %v4086_v32  ;;  %6414 = vmatprep.subr.bf16.mxu1 %v9646_v26  ;;  %v9778_v6 = vld [vmem:[#allocation40_spill] sm:$0xff] }
 0x39c   : > { %v4474_v18 = vadd.f32 %v4473_v55, %v4472_v10  ;;  %v9072_v10 = vpop.eup %7121  ;;  %v4480_v30 = vadd.f32 %v9049_v34, %v4479_v38  ;;  %v9776_v55 = vsub.f32 %v9762_v49, %v8948_v12  ;;  %v4687_v58 = vpack.c.bf16 %v4578_v23, %v4577_v14  ;;  %v9780_v14 = vld [vmem:[#allocation58_spill] sm:$0xff] }
 0x39d   : > { %v9079_v37 = vpop.eup %7123  ;;  %6395 = vmatpush3.bf16.msra.mxu0 %v4679_v39  ;;  %v4575_v22 = vmul.f32 %v8849_v35, %v9777_v21  ;;  %v9779_v49 = vsub.f32 %v9766_v31, %v8948_v12  ;;  %v4557_v23 = vmul.f32 %v8722_v1, %v9780_v14 }
 0x39e   : > { %7147 = vrcp.f32 %v4474_v18  ;;  %v4333_v63 = vmul.f32 1.442695, %v9776_v55  ;;  %v4576_v18 = vmul.f32 %v8849_v35, %v9778_v6  ;;  %v9085_v40 = vpop.eup %7125  ;;  %v4481_v38 = vadd.f32 %v9054_v46, %v4480_v30  ;;  %6396 = vmatprep.subr.bf16.mxu0 %v9646_v26  ;;  %6415 = vmatpush3.bf16.msra.mxu1 %v4687_v58  ;;  %v9781_v55 = vld [vmem:[#allocation61_spill] sm:$0xff]  ;;  %v9782_v6 = vld [vmem:[#allocation44_spill] sm:$0xff] }
 0x39f   : > { %7149 = vpow2.f32 %v4329_v2  ;;  %v4337_v32 = vmul.f32 1.442695, %v9779_v49  ;;  %v4678_v2 = vpack.c.bf16 %v4560_v24, %v4559_v17  ;;  %v9092_v39 = vpop.eup %7127  ;;  %v4558_v21 = vmul.f32 %v8722_v1, %v9781_v55  ;;  %6416 = vmatprep.subr.bf16.mxu1 %v9646_v26 }
 0x3a0   : > { %7151 = vpow2.f32 %v4331_v47  ;;  %v4573_v30 = vmul.f32 %v8849_v35, %v9782_v6  ;;  %v9783_v47 = vld [vmem:[#allocation45_spill] sm:$0xff]  ;;  %v9102_v31 = vpop.eup %7129  ;;  %v4482_v49 = vadd.f32 %v9066_v13, %v4481_v38  ;;  %v4092_v17 = vsub.f32 %v8741_v29, %v8948_v12 }
 0x3a1   : > { %v4574_v53 = vmul.f32 %v8849_v35, %v9783_v47  ;;  %7153 = vpow2.f32 %v4333_v63  ;;  %v9784_v24 = vsub.f32 %v8587_v4, %v8948_v12  ;;  %v9111_v1 = vpop.eup %7131  ;;  %6397 = vmatpush3.bf16.msra.mxu0 %v4678_v2  ;;  %v4686_v14 = vpack.c.bf16 %v4576_v18, %v4575_v22 }
 0x3a2   : > { %7155 = vpow2.f32 %v4335_v61  ;;  %v4603_v35 = vmul.f32 %v9060_v54, %v8820_v11  ;;  %v4604_v38 = vmul.f32 %v9060_v54, %v8878_v43  ;;  %v9117_v55 = vpop.eup %7133  ;;  %v4483_v29 = vadd.f32 %v9072_v10, %v4482_v49  ;;  %6398 = vmatprep.subr.bf16.mxu0 %v9646_v26 }
 0x3a3   : > { %v4339_v58 = vmul.f32 1.442695, %v9784_v24  ;;  %7157 = vpow2.f32 %v4337_v32  ;;  %v9785_v4 = vsub.f32 %v8712_v60, %v8948_v12  ;;  %v9786_v61 = vsub.f32 %v8770_v25, %v8948_v12  ;;  %v9127_v22 = vpop.eup %7135  ;;  %6417 = vmatpush3.bf16.msra.mxu1 %v4686_v14 }
 0x3a4   : > { %v4496_v11 = vadd.f32 %v9117_v55, %v9111_v1  ;;  %v4677_v43 = vpack.c.bf16 %v4558_v21, %v4557_v23  ;;  %v4685_v18 = vpack.c.bf16 %v4574_v53, %v4573_v30  ;;  %v4601_v32 = vmul.f32 %v9060_v54, %v8800_v33  ;;  %v9133_v6 = vpop.eup %7137  ;;  %6418 = vmatprep.subr.bf16.mxu1 %v9646_v26 }
 0x3a5   : > { %v4341_v63 = vmul.f32 1.442695, %v9785_v4  ;;  %v4343_v2 = vmul.f32 1.442695, %v9786_v61  ;;  %v4484_v60 = vadd.f32 %v9079_v37, %v4483_v29  ;;  %v4602_v25 = vmul.f32 %v9060_v54, %v8811_v62  ;;  %v9147_v53 = vpop.eup %7139 }
 0x3a6   : > { %v9141_v47 = vmul.f32 %v9060_v54, %v8772_v0  ;;  %v9145_v23 = vmul.f32 %v9060_v54, %v8779_v27  ;;  %v4497_v33 = vadd.f32 %v9133_v6, %v4496_v11  ;;  %6399 = vmatpush3.bf16.msra.mxu0 %v4677_v43  ;;  %v4700_v21 = vpack.c.bf16 %v4604_v38, %v4603_v35  ;;  %v9158_v0 = vpop.eup %7141 }
 0x3a7   : > { %v9152_v30 = vmul.f32 %v9060_v54, %v8757_v52  ;;  %v9156_v62 = vmul.f32 %v9060_v54, %v8765_v28  ;;  %v4485_v49 = vadd.f32 %v9085_v40, %v4484_v60  ;;  %6424 = vmatprep.subr.bf16.mxu0 %v9646_v26  ;;  %v9166_v24 = vmul.f32 %v9060_v54, %v8743_v42  ;;  %v9172_v14 = vpop.eup %7143 }
 0x3a8   : > { %v4697_v27 = vpack.c.bf16 %v9145_v23, %v9141_v47  ;;  %v9170_v52 = vmul.f32 %v9060_v54, %v8750_v9  ;;  %v4498_v28 = vadd.f32 %v9158_v0, %v4497_v33  ;;  %6419 = vmatpush3.bf16.msra.mxu1 %v4685_v18  ;;  %v4599_v35 = vmul.f32 %v9060_v54, %v8787_v45  ;;  %v9181_v42 = vpop.eup %7145 }
 0x3a9   : > { %v4600_v38 = vmul.f32 %v9060_v54, %v8795_v19  ;;  %v4696_v29 = vpack.c.bf16 %v9156_v62, %v9152_v30  ;;  %v4486_v4 = vadd.f32 %v9092_v39, %v4485_v49  ;;  %7159 = vpow2.f32 %v4339_v58  ;;  %6444 = vmatprep.subr.bf16.mxu1 %v9646_v26 }
 0x3aa   : > { %v9787_v9 = vsub.f32 %v8692_v8, %v8948_v12  ;;  %v9788_v11 = vpack.c.bf16 %v9741_v57, %v9741_v57  ;;  %v4695_v45 = vpack.c.bf16 %v9170_v52, %v9166_v24  ;;  %7161 = vpow2.f32 %v4341_v63 }
 0x3ab   : > { %v7148_v19 = vpop.eup %7147  ;;  %v4347_v43 = vmul.f32 1.442695, %v4092_v17  ;;  %v4499_v18 = vadd.f32 %v9172_v14, %v4498_v28  ;;  %v4699_v58 = vpack.c.bf16 %v4602_v25, %v4601_v32  ;;  %v4487_v57 = vadd.f32 %v9102_v31, %v4486_v4 }
 0x3ac   : > { %v4345_v61 = vmul.f32 1.442695, %v9787_v9  ;;  %6401 = vmatmul.mubr.bf16.vlgmr.msra.gmra.mxu0 %v9788_v11  ;;  %v9196_v8 = vpop.eup %7149  ;;  %7163 = vpow2.f32 %v4343_v2  ;;  %v9789_v12 = vpack.c.bf16 %v9745_v50, %v9745_v50  ;;  %v4619_v60 = vmul.f32 %v7148_v19, %v8991_v36 }
 0x3ad   : > { %6425 = vmatpush3.bf16.msra.mxu0 %v4700_v21  ;;  %6440 = vmatprep.mubr.msk.bf16.mxu0 %vm7190_vm1, %v9646_v26  ;;  %v4620_v17 = vmul.f32 %v7148_v19, %v8993_v16  ;;  %v9205_v63 = vpop.eup %7151  ;;  %v4500_v32 = vadd.f32 %v9181_v42, %v4499_v18  ;;  %v4617_v25 = vmul.f32 %v7148_v19, %v8976_v15  ;;  %v9791_v18 = vld [vmem:[#allocation33_spill] sm:$0xff] }
 0x3ae   : > { %6421 = vmatmul.mubr.bf16.vlgmr.msra.gmra.mxu1 %v9789_v12  ;;  %6426 = vmatprep.subr.bf16.mxu0 %v9646_v26  ;;  %v4618_v33 = vmul.f32 %v7148_v19, %v8988_v3  ;;  %v4698_v21 = vpack.c.bf16 %v4600_v38, %v4599_v35  ;;  %v4488_v50 = vadd.f32 %v9127_v22, %v4487_v57  ;;  %v9215_v49 = vpop.eup %7153  ;;  %7165 = vpow2.f32 %v4345_v61  ;;  %v9792_v61 = vld [vmem:[#allocation29_spill] sm:$0xff] }
 0x3af   : > { %6460 = vmatprep.mubr.msk.bf16.mxu1 %vm7190_vm1, %v9646_v26  ;;  %v4708_v2 = vpack.c.bf16 %v4620_v17, %v4619_v60  ;;  %v4615_v36 = vmul.f32 %v7148_v19, %v8936_v48  ;;  %v4613_v16 = vmul.f32 %v7148_v19, %v8920_v51  ;;  %v4501_v28 = vadd.f32 %v9196_v8, %v4500_v32  ;;  %v9221_v38 = vpop.eup %7155  ;;  %v9793_v17 = vld [vmem:[#allocation35_spill] sm:$0xff] }
 0x3b0   : > { %v4616_v15 = vmul.f32 %v7148_v19, %v8954_v7  ;;  %v4614_v3 = vmul.f32 %v7148_v19, %v8930_v20  ;;  %v4611_v35 = vmul.f32 %v7148_v19, %v8909_v59  ;;  %v4489_v4 = vadd.f32 %v9147_v53, %v4488_v50  ;;  %v9226_v9 = vpop.eup %7157  ;;  %v9790_v7 = vld [vmem:[#allocation42_spill] sm:$0xff] }
 0x3b1   : > { %6427 = vmatpush3.bf16.msra.mxu0 %v4699_v58  ;;  %6445 = vmatpush3.bf16.msra.mxu1 %v4708_v2  ;;  %v4707_v48 = vpack.c.bf16 %v4618_v33, %v4617_v25  ;;  %v4612_v51 = vmul.f32 %v7148_v19, %v8916_v56  ;;  %v4502_v11 = vadd.f32 %v9205_v63, %v4501_v28  ;;  %7167 = vpow2.f32 %v4347_v43  ;;  %v9794_v33 = vld [vmem:[#allocation32_spill] sm:$0xff]  ;;  %v9795_v28 = vld [vmem:[#allocation38_spill] sm:$0xff] }
 0x3b2   : > { %6428 = vmatprep.subr.bf16.mxu0 %v9646_v26  ;;  %6446 = vmatprep.subr.bf16.mxu1 %v9646_v26  ;;  %v4705_v20 = vpack.c.bf16 %v4614_v3, %v4613_v16  ;;  %v4609_v59 = vmul.f32 %v7148_v19, %v9790_v7  ;;  %v4610_v58 = vmul.f32 %v7148_v19, %v9791_v18  ;;  %v4490_v57 = vrot.slane %v4489_v4, 4 }
 0x3b3   : > { %v4704_v12 = vpack.c.bf16 %v4612_v51, %v4611_v35  ;;  %v4607_v60 = vmul.f32 %v7148_v19, %v9792_v61  ;;  %v4608_v32 = vmul.f32 %v7148_v19, %v9793_v17  ;;  %v4503_v56 = vadd.f32 %v9215_v49, %v4502_v11 }
 0x3b4   : > { %v4703_v25 = vpack.c.bf16 %v4610_v58, %v4609_v59  ;;  %v4605_v50 = vmul.f32 %v7148_v19, %v9794_v33  ;;  %v4491_v2 = vadd.f32 %v4490_v57, %v4489_v4  ;;  %v4606_v3 = vmul.f32 %v7148_v19, %v9795_v28  ;;  %v9796_v59 = vld [vmem:[#allocation2_spill] sm:$0xff]  ;;  %v9797_v57 = vld [vmem:[#allocation3_spill] sm:$0xff] }
 0x3b5   : > { %6429 = vmatpush3.bf16.msra.mxu0 %v4698_v21  ;;  %6447 = vmatpush3.bf16.msra.mxu1 %v4707_v48  ;;  %v4702_v16 = vpack.c.bf16 %v4608_v32, %v4607_v60  ;;  %v4504_v35 = vadd.f32 %v9221_v38, %v4503_v56  ;;  %v4706_v7 = vpack.c.bf16 %v4616_v15, %v4615_v36  ;;  %v9798_v60 = vld [vmem:[#allocation26_spill] sm:$0xff]  ;;  %v9799_v32 = vld [vmem:[#allocation27_spill] sm:$0xff] }
 0x3b6   : > { %6430 = vmatprep.subr.bf16.mxu0 %v9646_v26  ;;  %6448 = vmatprep.subr.bf16.mxu1 %v9646_v26  ;;  %v4492_v51 = vrot.slane %v4491_v2, 2  ;;  %v4701_v43 = vpack.c.bf16 %v4606_v3, %v4605_v50  ;;  %v9240_v18 = vpop.eup %7159  ;;  %v4591_v58 = vmul.f32 %v9060_v54, %v9796_v59  ;;  %v4592_v61 = vmul.f32 %v9060_v54, %v9797_v57 }
 0x3b7   : > { %v4505_v21 = vadd.f32 %v9226_v9, %v4504_v35  ;;  %v9246_v4 = vpop.eup %7161  ;;  %v4589_v17 = vmul.f32 %v9060_v54, %v9798_v60  ;;  %v4590_v56 = vmul.f32 %v9060_v54, %v9799_v32  ;;  %v9801_v35 = vld [vmem:[#allocation7_spill] sm:$0xff] }
 0x3b8   : > { %v4493_v48 = vadd.f32 %v4492_v51, %v4491_v2  ;;  %v4658_v51 = vpack.c.bf16 %v9801_v35, %v9801_v35 }
 0x3b9   : > { %6431 = vmatpush3.bf16.msra.mxu0 %v4697_v27  ;;  %6449 = vmatpush3.bf16.msra.mxu1 %v4706_v7  ;;  %v9249_v19 = vpop.eup %7163  ;;  %v4506_v11 = vadd.f32 %v9240_v18, %v4505_v21  ;;  %v4693_v52 = vpack.c.bf16 %v4590_v56, %v4589_v17 }
 0x3ba   : > { %6432 = vmatprep.subr.bf16.mxu0 %v9646_v26  ;;  %6450 = vmatprep.subr.bf16.mxu1 %v9646_v26  ;;  %v4494_v36 = vrot.slane %v4493_v48, 1 }
 0x3bb   : > { %v4507_v15 = vadd.f32 %v9246_v4, %v4506_v11  ;;  %v9258_v23 = vpop.eup %7165 }
 0x3bc   : > { %v4495_v47 = vadd.f32 %v4494_v36, %v4493_v48 }
 0x3bd   : > { %6433 = vmatpush3.bf16.msra.mxu0 %v4696_v29  ;;  %6451 = vmatpush3.bf16.msra.mxu1 %v4705_v20  ;;  %v4508_v27 = vadd.f32 %v9249_v19, %v4507_v15  ;;  %v4694_v20 = vpack.c.bf16 %v4592_v61, %v4591_v58  ;;  %v9804_v58 = vld [vmem:[#allocation30_spill] sm:$0xff] }
 0x3be   : > { %6434 = vmatprep.subr.bf16.mxu0 %v9646_v26  ;;  %6452 = vmatprep.subr.bf16.mxu1 %v9646_v26  ;;  %7169 = vrcp.f32 %v4495_v47  ;;  %v9270_v62 = vpop.eup %7167 }
 0x3bf   : > { %v4509_v30 = vadd.f32 %v9258_v23, %v4508_v27  ;;  %v9802_v27 = vld [vmem:[#allocation36_spill] sm:$0xff] }
 0x3c1   : > { %6435 = vmatpush3.bf16.msra.mxu0 %v4695_v45  ;;  %6453 = vmatpush3.bf16.msra.mxu1 %v4704_v12  ;;  %v4510_v29 = vadd.f32 %v9270_v62, %v4509_v30  ;;  %v9800_v12 = vld [vmem:[#allocation6_spill] sm:$0xff] }
 0x3c2   : > { %6436 = vmatprep.subr.bf16.mxu0 %v9646_v26  ;;  %6454 = vmatprep.subr.bf16.mxu1 %v9646_v26  ;;  %v4657_v50 = vpack.c.bf16 %v9800_v12, %v9800_v12 }
 0x3c3   : > { %v4511_v33 = vrot.slane %v4510_v29, 4 }
 0x3c5   : > { %6437 = vmatpush3.bf16.msra.mxu0 %v4694_v20  ;;  %6455 = vmatpush3.bf16.msra.mxu1 %v4703_v25  ;;  %v4512_v24 = vadd.f32 %v4511_v33, %v4510_v29 }
 0x3c6   : > { %6438 = vmatprep.subr.bf16.mxu0 %v9646_v26  ;;  %6456 = vmatprep.subr.bf16.mxu1 %v9646_v26 }
 0x3c7   : > { %v4513_v45 = vrot.slane %v4512_v24, 2 }
 0x3c9   : > { %6439 = vmatpush3.bf16.msra.mxu0 %v4693_v52  ;;  %6457 = vmatpush3.bf16.msra.mxu1 %v4702_v16  ;;  %v4514_v2 = vadd.f32 %v4513_v45, %v4512_v24 }
 0x3ca   : > { %6464 = vmatprep.subr.bf16.mxu0 %v9646_v26  ;;  %6458 = vmatprep.subr.bf16.mxu1 %v9646_v26 }
 0x3cb   : > { %v7170_v54 = vpop.eup %7169  ;;  %v4515_v25 = vrot.slane %v4514_v2, 1 }
 0x3cc   : > { %6441 = vmatmul.mubr.bf16.vlgmr.msra.gmra.mxu0 %v4657_v50  ;;  %v4635_v28 = vmul.f32 %v7170_v54, %v9127_v22  ;;  %v4636_v3 = vmul.f32 %v7170_v54, %v9147_v53  ;;  %v4633_v7 = vmul.f32 %v7170_v54, %v9092_v39  ;;  %v4629_v21 = vmul.f32 %v7170_v54, %v9066_v13 }
 0x3cd   : > { %6480 = vmatprep.mubr.msk.bf16.mxu0 %vm7190_vm1, %v9646_v26  ;;  %6459 = vmatpush3.bf16.msra.mxu1 %v4701_v43  ;;  %v4516_v16 = vadd.f32 %v4515_v25, %v4514_v2  ;;  %v4634_v11 = vmul.f32 %v7170_v54, %v9102_v31  ;;  %v4630_v36 = vmul.f32 %v7170_v54, %v9072_v10  ;;  %v9349_v2 = vld [vmem:[%s7341_s30] sm:$0xf] }
 0x3ce   : > { %6484 = vmatprep.subr.bf16.mxu1 %v9646_v26  ;;  %v4716_v48 = vpack.c.bf16 %v4636_v3, %v4635_v28  ;;  %v4627_v43 = vmul.f32 %v7170_v54, %v9049_v34  ;;  %v4631_v22 = vmul.f32 %v7170_v54, %v9079_v37  ;;  %v4628_v53 = vmul.f32 %v7170_v54, %v9054_v46  ;;  %v9803_v34 = vld [vmem:[#allocation39_spill] sm:$0xff]  ;;  %v9353_v28 = vld [vmem:[%s7341_s30 + $0x4] sm:$0xf] }
 0x3cf   : > { %7171 = vrcp.f32 %v4516_v16  ;;  %v4625_v15 = vmul.f32 %v7170_v54, %v9038_v5  ;;  %v4713_v47 = vpack.c.bf16 %v4630_v36, %v4629_v21  ;;  %v4626_v39 = vmul.f32 %v7170_v54, %v9041_v44 }
 0x3d0   : > { %6461 = vmatmul.mubr.bf16.vlgmr.msra.gmra.mxu1 %v4658_v51  ;;  %6465 = vmatpush3.bf16.msra.mxu0 %v4716_v48  ;;  %v4623_v13 = vmul.f32 %v7170_v54, %v9029_v41  ;;  %v4624_v31 = vmul.f32 %v7170_v54, %v9802_v27  ;;  %v4712_v10 = vpack.c.bf16 %v4628_v53, %v4627_v43 }
 0x3d1   : > { %6466 = vmatprep.subr.bf16.mxu0 %v9646_v26  ;;  %v4621_v59 = vmul.f32 %v7170_v54, %v9803_v34  ;;  %v4622_v57 = vmul.f32 %v7170_v54, %v9804_v58  ;;  %6500 = vmatprep.mubr.msk.bf16.mxu1 %vm7190_vm1, %v9646_v26  ;;  %v4715_v46 = vpack.c.bf16 %v4634_v11, %v4633_v7 }
 0x3d2   : > { %v4632_v5 = vmul.f32 %v7170_v54, %v9085_v40  ;;  %v4711_v37 = vpack.c.bf16 %v4626_v39, %v4625_v15  ;;  %v4710_v61 = vpack.c.bf16 %v4624_v31, %v4623_v13  ;;  %v5061_v15 = vld [vmem:[%s9465_s10] sm:$0xf]  ;;  %v9377_v13 = vld [vmem:[%s7341_s30 + $0x8] sm:$0xf] }
 0x3d3   : > { %v4709_v44 = vpack.c.bf16 %v4622_v57, %v4621_v59  ;;  %v9381_v59 = vld [vmem:[%s7341_s30 + $0xc] sm:$0xf] }
 0x3d4   : > { %6467 = vmatpush3.bf16.msra.mxu0 %v4715_v46  ;;  %v4714_v41 = vpack.c.bf16 %v4632_v5, %v4631_v22  ;;  %v9361_v22 = vld [vmem:[%s9464_s9] sm:$0x3] }
 0x3d5   : > { %6468 = vmatprep.subr.bf16.mxu0 %v9646_v26 }
 0x3d8   : > { %6469 = vmatpush3.bf16.msra.mxu0 %v4714_v41 }
 0x3d9   : > { %6470 = vmatprep.subr.bf16.mxu0 %v9646_v26 }
 0x3dc   : > { %v7172_v30 = vpop.eup %7171  ;;  %6471 = vmatpush3.bf16.msra.mxu0 %v4713_v47  ;;  %v7192_v47 = vmov 0  }
 0x3dd   : > { %v4651_v29 = vmul.f32 %v7172_v30, %v9258_v23  ;;  %v4652_v20 = vmul.f32 %v7172_v30, %v9270_v62  ;;  %6472 = vmatprep.subr.bf16.mxu0 %v9646_v26  ;;  %v4649_v40 = vmul.f32 %v7172_v30, %v9246_v4  ;;  %v4645_v60 = vmul.f32 %v7172_v30, %v9215_v49 }
 0x3de   : > { %v4646_v17 = vmul.f32 %v7172_v30, %v9221_v38  ;;  %v4650_v56 = vmul.f32 %v7172_v30, %v9249_v19  ;;  %v4643_v33 = vmul.f32 %v7172_v30, %v9196_v8  ;;  %v4644_v24 = vmul.f32 %v7172_v30, %v9205_v63  ;;  %6900 = vset.pattern.permute.xlu0 %v7192_v47 }
 0x3df   : > { %v4724_v32 = vpack.c.bf16 %v4652_v20, %v4651_v29  ;;  %v4641_v23 = vmul.f32 %v7172_v30, %v9172_v14  ;;  %v4642_v62 = vmul.f32 %v7172_v30, %v9181_v42  ;;  %v4639_v49 = vmul.f32 %v7172_v30, %v9133_v6  ;;  %5064 = vperm.xlu0 %6900, %v5061_v15   ;;  %v9397_v20 = vld [vmem:[%s7341_s30 + $0x10] sm:$0xf] }
 0x3e0   : > { %v4721_v52 = vpack.c.bf16 %v4646_v17, %v4645_v60  ;;  %6473 = vmatpush3.bf16.msra.mxu0 %v4712_v10  ;;  %v4720_v45 = vpack.c.bf16 %v4644_v24, %v4643_v33  ;;  %v4640_v38 = vmul.f32 %v7172_v30, %v9158_v0  ;;  %v4637_v8 = vmul.f32 %v7172_v30, %v9111_v1  ;;  %v9805_v1 = vld [vmem:[#allocation8_spill] sm:$0xff]  ;;  %v9806_v0 = vld [vmem:[#allocation9_spill] sm:$0xff] }
 0x3e1   : > { %6485 = vmatpush3.bf16.msra.mxu1 %v4724_v32  ;;  %6474 = vmatprep.subr.bf16.mxu0 %v9646_v26  ;;  %v4719_v4 = vpack.c.bf16 %v4642_v62, %v4641_v23  ;;  %v4638_v63 = vmul.f32 %v7172_v30, %v9117_v55  ;;  %v4723_v19 = vpack.c.bf16 %v4650_v56, %v4649_v40  ;;  %v9402_v24 = vld [vmem:[%s7341_s30 + $0x14] sm:$0xf] }
 0x3e2   : > { %6486 = vmatprep.subr.bf16.mxu1 %v9646_v26  ;;  %v4647_v14 = vmul.f32 %v7172_v30, %v9226_v9  ;;  %v4648_v42 = vmul.f32 %v7172_v30, %v9240_v18  ;;  %v4718_v12 = vpack.c.bf16 %v4640_v38, %v4639_v49  ;;  %v4659_v55 = vpack.c.bf16 %v9805_v1, %v9805_v1 }
 0x3e3   : > { %v4717_v50 = vpack.c.bf16 %v4638_v63, %v4637_v8  ;;  %v4660_v9 = vpack.c.bf16 %v9806_v0, %v9806_v0  ;;  %v9417_v63 = vld [vmem:[%s7341_s30 + $0x18] sm:$0xf] }
 0x3e4   : > { %6475 = vmatpush3.bf16.msra.mxu0 %v4711_v37  ;;  %v4722_v6 = vpack.c.bf16 %v4648_v42, %v4647_v14 }
 0x3e5   : > { %6487 = vmatpush3.bf16.msra.mxu1 %v4723_v19  ;;  %6476 = vmatprep.subr.bf16.mxu0 %v9646_v26 }
 0x3e6   : > { %6488 = vmatprep.subr.bf16.mxu1 %v9646_v26 }
 0x3e8   : > { %6477 = vmatpush3.bf16.msra.mxu0 %v4710_v61 }
 0x3e9   : > { %6489 = vmatpush3.bf16.msra.mxu1 %v4722_v6  ;;  %6478 = vmatprep.subr.bf16.mxu0 %v9646_v26 }
 0x3ea   : > { %6490 = vmatprep.subr.bf16.mxu1 %v9646_v26 }
 0x3ec   : > { %6479 = vmatpush3.bf16.msra.mxu0 %v4709_v44 }
 0x3ed   : > { %6491 = vmatpush3.bf16.msra.mxu1 %v4721_v52  ;;  %6504 = vmatprep.subr.bf16.mxu0 %v9646_v26 }
 0x3ee   : > { %6492 = vmatprep.subr.bf16.mxu1 %v9646_v26 }
 0x3ef   : > { %6481 = vmatmul.mubr.bf16.vlgmr.msra.gmra.mxu0 %v4659_v55  ;;  %v9424_v55 = vld [vmem:[%s7341_s30 + $0x1c] sm:$0xf]  ;;  %s9434_s30 = scalar_lea.vmem %s9466_s11, %s7267_s19 }
 0x3f0   : > { %6506 = vmatprep.mubr.msk.bf16.mxu0 %vm7190_vm1, %v9646_v26 }
 0x3f1   : > { %6493 = vmatpush3.bf16.msra.mxu1 %v4720_v45 }
 0x3f2   : > { %6494 = vmatprep.subr.bf16.mxu1 %v9646_v26 }
 0x3f5   : > { %6495 = vmatpush3.bf16.msra.mxu1 %v4719_v4 }
 0x3f6   : > { %6496 = vmatprep.subr.bf16.mxu1 %v9646_v26 }
 0x3f9   : > { %6497 = vmatpush3.bf16.msra.mxu1 %v4718_v12 }
 0x3fa   : > { %6498 = vmatprep.subr.bf16.mxu1 %v9646_v26 }
 0x3fd   : > { %6499 = vmatpush3.bf16.msra.mxu1 %v4717_v50 }
 0x3fe   : > { %6510 = vmatprep.subr.bf16.mxu1 %v9646_v26 }
 0x400   : > { %6501 = vmatmul.mubr.bf16.vlgmr.msra.gmra.mxu1 %v4660_v9 }
 0x401   : > { %6512 = vmatprep.mubr.msk.bf16.mxu1 %vm7190_vm1, %v9646_v26 }
 0x433   : > { %v4759_v18 = vpop.f32.mrf.mxu0 }
 0x434   : > { %v5045_v54 = vsub.f32 %v4759_v18, %v9349_v2  ;;  %v4799_v25 = vpop.f32.mrf.mxu1 }
 0x435   : > { %v5046_v3 = vsub.f32 %v4799_v25, %v9353_v28  ;;  %v6362_v35 = vpop.f32.mrf.mxu0 }
 0x436   : > { %v5053_v51 = vpack.c.bf16 %v5045_v54, %v5045_v54  ;;  %v6382_v16 = vpop.f32.mrf.mxu1 }
 0x437   : > { %v5054_v7 = vpack.c.bf16 %v5046_v3, %v5046_v3  ;;  %v4762_v21 = vpop.f32.mrf.mxu0 }
 0x438   : > { %v5071_v48 = vsel %vm488_vm2, %v5053_v51, 0  ;;  %v4802_v11 = vpop.f32.mrf.mxu1 }
 0x439   : > { %v5114_v36 = vsel %vm488_vm2, %v5054_v7, 0  ;;  %v6363_v43 = vpop.f32.mrf.mxu0  ;;  %6505 = vmatpush3.bf16.msra.mxu0 %v5071_v48 }
 0x43a   : > { %v6383_v53 = vpop.f32.mrf.mxu1  ;;  %6511 = vmatpush3.bf16.msra.mxu1 %v5114_v36  ;;  %6516 = vmatprep.subr.bf16.mxu0 %v9646_v26 }
 0x43b   : > { %6522 = vmatprep.subr.bf16.mxu1 %v9646_v26 }
 0x43c   : > { %6507 = vmatmul.mubr.msk.bf16.vlgmr.msra.gmra.mxu0 %vm835_vm4, %v9361_v22 }
 0x43d   : > { %6513 = vmatmul.mubr.msk.bf16.vlgmr.msra.gmra.mxu1 %vm835_vm4, %v9361_v22  ;;  %6518 = vmatprep.mubr.msk.bf16.mxu0 %vm7190_vm1, %v9646_v26 }
 0x43e   : > { %6524 = vmatprep.mubr.msk.bf16.mxu1 %vm7190_vm1, %v9646_v26 }
 0x45a   : > { %v5065_v3 = vpop.permute.xlu0 %5064 }
 0x46c   : > { %v4839_v39 = vpop.f32.mrf.mxu0 }
 0x46d   : > { %v5047_v27 = vsub.f32 %v4839_v39, %v9377_v13 }
 0x46e   : > { %v4879_v31 = vpop.f32.mrf.mxu1  ;;  %v6402_v10 = vpop.f32.mrf.mxu0 }
 0x46f   : > { %v5055_v34 = vpack.c.bf16 %v5047_v27, %v5047_v27  ;;  %v5048_v58 = vsub.f32 %v4879_v31, %v9381_v59 }
 0x470   : > { %v6422_v57 = vpop.f32.mrf.mxu1  ;;  %v4842_v46 = vpop.f32.mrf.mxu0 }
 0x471   : > { %v5157_v5 = vsel %vm488_vm2, %v5055_v34, 0  ;;  %v5056_v37 = vpack.c.bf16 %v5048_v58, %v5048_v58 }
 0x472   : > { %v4882_v61 = vpop.f32.mrf.mxu1  ;;  %v6403_v44 = vpop.f32.mrf.mxu0  ;;  %6517 = vmatpush3.bf16.msra.mxu0 %v5157_v5 }
 0x473   : > { %v5200_v41 = vsel %vm488_vm2, %v5056_v37, 0  ;;  %6528 = vmatprep.subr.bf16.mxu0 %v9646_v26 }
 0x474   : > { %v6423_v30 = vpop.f32.mrf.mxu1  ;;  %6523 = vmatpush3.bf16.msra.mxu1 %v5200_v41 }
 0x475   : > { %6534 = vmatprep.subr.bf16.mxu1 %v9646_v26  ;;  %6519 = vmatmul.mubr.msk.bf16.vlgmr.msra.gmra.mxu0 %vm835_vm4, %v9361_v22 }
 0x476   : > { %6530 = vmatprep.mubr.msk.bf16.mxu0 %vm7190_vm1, %v9646_v26 }
 0x477   : > { %6525 = vmatmul.mubr.msk.bf16.vlgmr.msra.gmra.mxu1 %vm835_vm4, %v9361_v22 }
 0x478   : > { %6536 = vmatprep.mubr.msk.bf16.mxu1 %vm7190_vm1, %v9646_v26 }
 0x48c   : > { %v4919_v29 = vpop.f32.mrf.mxu0 }
 0x48d   : > { %v5049_v40 = vsub.f32 %v4919_v29, %v9397_v20 }
 0x48e   : > { %v6442_v60 = vpop.f32.mrf.mxu0 }
 0x48f   : > { %v5057_v17 = vpack.c.bf16 %v5049_v40, %v5049_v40 }
 0x490   : > { %v4922_v32 = vpop.f32.mrf.mxu0  ;;  %v4959_v33 = vpop.f32.mrf.mxu1 }
 0x491   : > { %v5243_v56 = vsel %vm488_vm2, %v5057_v17, 0  ;;  %v5050_v52 = vsub.f32 %v4959_v33, %v9402_v24 }
 0x492   : > { %v6443_v23 = vpop.f32.mrf.mxu0  ;;  %6529 = vmatpush3.bf16.msra.mxu0 %v5243_v56  ;;  %v6462_v62 = vpop.f32.mrf.mxu1 }
 0x493   : > { %6540 = vmatprep.subr.bf16.mxu0 %v9646_v26  ;;  %v5058_v45 = vpack.c.bf16 %v5050_v52, %v5050_v52 }
 0x494   : > { %v4962_v49 = vpop.f32.mrf.mxu1 }
 0x495   : > { %6531 = vmatmul.mubr.msk.bf16.vlgmr.msra.gmra.mxu0 %vm835_vm4, %v9361_v22  ;;  %v5286_v38 = vsel %vm488_vm2, %v5058_v45, 0 }
 0x496   : > { %6542 = vmatprep.mubr.msk.bf16.mxu0 %vm7190_vm1, %v9646_v26  ;;  %v6463_v4 = vpop.f32.mrf.mxu1  ;;  %6535 = vmatpush3.bf16.msra.mxu1 %v5286_v38 }
 0x497   : > { %6546 = vmatprep.subr.bf16.mxu1 %v9646_v26 }
 0x499   : > { %6537 = vmatmul.mubr.msk.bf16.vlgmr.msra.gmra.mxu1 %vm835_vm4, %v9361_v22 }
 0x49a   : > { %6548 = vmatprep.mubr.msk.bf16.mxu1 %vm7190_vm1, %v9646_v26 }
 0x4af   : > { %v4999_v8 = vpop.f32.mrf.mxu0 }
 0x4b0   : > { %v5051_v19 = vsub.f32 %v4999_v8, %v9417_v63 }
 0x4b1   : > { %v6482_v14 = vpop.f32.mrf.mxu0 }
 0x4b2   : > { %v5059_v42 = vpack.c.bf16 %v5051_v19, %v5051_v19 }
 0x4b3   : > { %v5002_v12 = vpop.f32.mrf.mxu0 }
 0x4b4   : > { %v5329_v50 = vsel %vm488_vm2, %v5059_v42, 0 }
 0x4b5   : > { %v6483_v6 = vpop.f32.mrf.mxu0  ;;  %6541 = vmatpush3.bf16.msra.mxu0 %v5329_v50 }
 0x4b8   : > { %6543 = vmatmul.mubr.msk.bf16.vlgmr.msra.gmra.mxu0 %vm835_vm4, %v9361_v22 }
 0x4c0   : > { %v5039_v1 = vpop.f32.mrf.mxu1 }
 0x4c1   : > { %v5052_v26 = vsub.f32 %v5039_v1, %v9424_v55 }
 0x4c2   : > { %v6502_v0 = vpop.f32.mrf.mxu1 }
 0x4c3   : > { %v5060_v9 = vpack.c.bf16 %v5052_v26, %v5052_v26 }
 0x4c4   : > { %v5042_v18 = vpop.f32.mrf.mxu1 }
 0x4c5   : > { %v5372_v54 = vsel %vm488_vm2, %v5060_v9, 0 }
 0x4c6   : > { %v6503_v25 = vpop.f32.mrf.mxu1  ;;  %6547 = vmatpush3.bf16.msra.mxu1 %v5372_v54 }
 0x4c9   : > { %6549 = vmatmul.mubr.msk.bf16.vlgmr.msra.gmra.mxu1 %vm835_vm4, %v9361_v22 }
 0x4fc   : > { %v5107_v35 = vpop.f32.mrf.mxu0 }
 0x4fd   : > { %v5150_v51 = vpop.f32.mrf.mxu1  ;;  %v5108_v16 = vadd.f32 %v5107_v35, %v5065_v3 }
 0x4fe   : > { %v6508_v7 = vpop.f32.mrf.mxu0  ;;  %v5151_v21 = vadd.f32 %v5150_v51, %v5065_v3 }
 0x4ff   : > { %v6514_v48 = vpop.f32.mrf.mxu1  ;;  %v5414_v11 = vmax.f32 %v5108_v16, 0.0 }
 0x500   : > { %v5110_v36 = vpop.f32.mrf.mxu0  ;;  %v5415_v43 = vmax.f32 %v5151_v21, 0.0 }
 0x501   : > { %v5153_v53 = vpop.f32.mrf.mxu1  ;;  %v5422_v22 = vadd.f32 %v9349_v2, %v5414_v11 }
 0x502   : > { %v5423_v15 = vadd.f32 %v9353_v28, %v5415_v43  ;;  %v6509_v47 = vpop.f32.mrf.mxu0 }
 0x503   : > { %5430 = vst [vmem:[%s9434_s30] sm:$0xf] %v5422_v22  ;;  %v6515_v39 = vpop.f32.mrf.mxu1 }
 0x504   : > { %5431 = vst [vmem:[%s9434_s30 + $0x4] sm:$0xf] %v5423_v15 }
 0x535   : > { %v5193_v27 = vpop.f32.mrf.mxu0 }
 0x536   : > { %v5194_v31 = vadd.f32 %v5193_v27, %v5065_v3 }
 0x537   : > { %v5236_v10 = vpop.f32.mrf.mxu1  ;;  %v6520_v34 = vpop.f32.mrf.mxu0 }
 0x538   : > { %v5416_v58 = vmax.f32 %v5194_v31, 0.0  ;;  %v5237_v57 = vadd.f32 %v5236_v10, %v5065_v3 }
 0x539   : > { %v6526_v46 = vpop.f32.mrf.mxu1  ;;  %v5196_v5 = vpop.f32.mrf.mxu0 }
 0x53a   : > { %v5424_v37 = vadd.f32 %v9377_v13, %v5416_v58  ;;  %v5417_v61 = vmax.f32 %v5237_v57, 0.0 }
 0x53b   : > { %v5239_v2 = vpop.f32.mrf.mxu1  ;;  %v6521_v28 = vpop.f32.mrf.mxu0 }
 0x53c   : > { %5432 = vst [vmem:[%s9434_s30 + $0x8] sm:$0xf] %v5424_v37  ;;  %v5425_v44 = vadd.f32 %v9381_v59, %v5417_v61 }
 0x53d   : > { %v6527_v41 = vpop.f32.mrf.mxu1 }
 0x53e   : > { %5433 = vst [vmem:[%s9434_s30 + $0xc] sm:$0xf] %v5425_v44 }
 0x555   : > { %v5279_v30 = vpop.f32.mrf.mxu0 }
 0x556   : > { %v5280_v29 = vadd.f32 %v5279_v30, %v5065_v3 }
 0x557   : > { %v6532_v40 = vpop.f32.mrf.mxu0 }
 0x558   : > { %v5418_v60 = vmax.f32 %v5280_v29, 0.0 }
 0x559   : > { %v5282_v17 = vpop.f32.mrf.mxu0  ;;  %v5322_v56 = vpop.f32.mrf.mxu1 }
 0x55a   : > { %v5426_v32 = vadd.f32 %v9397_v20, %v5418_v60  ;;  %v5323_v33 = vadd.f32 %v5322_v56, %v5065_v3 }
 0x55b   : > { %v6533_v13 = vpop.f32.mrf.mxu0  ;;  %v6538_v52 = vpop.f32.mrf.mxu1 }
 0x55c   : > { %5434 = vst [vmem:[%s9434_s30 + $0x10] sm:$0xf] %v5426_v32  ;;  %v5419_v23 = vmax.f32 %v5323_v33, 0.0 }
 0x55d   : > { %v5325_v62 = vpop.f32.mrf.mxu1 }
 0x55e   : > { %v5427_v59 = vadd.f32 %v9402_v24, %v5419_v23 }
 0x55f   : > { %v6539_v45 = vpop.f32.mrf.mxu1 }
 0x560   : > { %5435 = vst [vmem:[%s9434_s30 + $0x14] sm:$0xf] %v5427_v59 }
 0x578   : > { %v5365_v49 = vpop.f32.mrf.mxu0 }
 0x579   : > { %v5366_v38 = vadd.f32 %v5365_v49, %v5065_v3 }
 0x57a   : > { %v6544_v4 = vpop.f32.mrf.mxu0 }
 0x57b   : > { %v5420_v8 = vmax.f32 %v5366_v38, 0.0 }
 0x57c   : > { %v5368_v19 = vpop.f32.mrf.mxu0 }
 0x57d   : > { %v5428_v20 = vadd.f32 %v9417_v63, %v5420_v8 }
 0x57e   : > { %v6545_v14 = vpop.f32.mrf.mxu0 }
 0x57f   : > { %5436 = vst [vmem:[%s9434_s30 + $0x18] sm:$0xf] %v5428_v20 }
 0x589   : > { %v5408_v42 = vpop.f32.mrf.mxu1 }
 0x58a   : > { %v5409_v12 = vadd.f32 %v5408_v42, %v5065_v3 }
 0x58b   : > { %v6550_v50 = vpop.f32.mrf.mxu1 }
 0x58c   : > { %v5421_v6 = vmax.f32 %v5409_v12, 0.0 }
 0x58d   : > { %v5411_v1 = vpop.f32.mrf.mxu1 }
 0x58e   : > { %v5429_v26 = vadd.f32 %v9424_v55, %v5421_v6 }
 0x58f   : > { %v6551_v24 = vpop.f32.mrf.mxu1 }
 0x590   : > { %5437 = vst [vmem:[%s9434_s30 + $0x1c] sm:$0xf] %v5429_v26 }
 0x591 PF: > { %s21_s17 = sadd.s32 1, %s7187_s17  }
 0x592   : > { %p18_p4 = scmp.ge.s32.totalorder %s21_s17, 4  }
 0x594   :  { %20 = sbr.rel (!%p18_p4) target bundleno = 1 (0x1), region = 100 }

</bundles_post_ra>
